<compile_context>
chip_gen: v6e
topology: v6e:2x2x1
jax: 0.10.0
libtpu: 0.0.40
codegen_flags: <defaults>
</compile_context>

<pallas_src>
import functools

import jax
import jax.numpy as jnp
from jax.experimental import pallas as pl
from jax.experimental.pallas import tpu as pltpu


def _convlstm_kernel(x_ref, h_ref, c_ref, w_ref, b_ref, out_ref, comb_ref, *, KH, KW):
    # x_ref    : [1, H, W, Cin]          bf16   (whole image, fetched once per b)
    # h_ref    : [1, H, W, hid]          bf16   (whole image, fetched once per b)
    # c_ref    : [1, TH, W, hid]         f32    (row tile)
    # w_ref    : [KH*KW*(Cin+hid), 4hid] bf16   (im2col-ordered weights)
    # b_ref    : [1, 4hid]               f32
    # out_ref  : [1, TH, W, 2*hid]       f32    (h_next | c_next packed)
    # comb_ref : [Hp, Wp, Cin+hid]       bf16   scratch, zero-padded [x, h]
    r = pl.program_id(1)
    _, H, W, Cin = x_ref.shape
    _, TH, _, hid = c_ref.shape
    Hp, Wp, C = comb_ref.shape
    ph, pw = KH // 2, KW // 2
    THp = TH + KH - 1  # row window incl. halo

    # Build the zero-padded combined [x, h] image once per batch element.
    # (Replaces the wrapper-side jnp.concatenate + jnp.pad HBM round trips.)
    @pl.when(r == 0)
    def _fill():
        comb_ref[...] = jnp.zeros_like(comb_ref)
        comb_ref[ph:ph + H, pw:pw + W, 0:Cin] = x_ref[0]
        comb_ref[ph:ph + H, pw:pw + W, Cin:C] = h_ref[0]

    # Row window (with halo) for this output row tile.
    row0 = pl.multiple_of(r * TH, TH)
    win = comb_ref[pl.ds(row0, THp), :, :]               # [THp, Wp, C] bf16

    # im2col over the KH*KW taps: the kj shift touches the (sublane) W axis once
    # per kj; the ki shifts are leading-axis slices (no relayout).
    parts = []
    for kj in range(KW):
        shifted = win[:, kj:kj + W, :]                   # [THp, W, C]
        for ki in range(KH):
            parts.append(shifted[ki:ki + TH])            # [TH, W, C]
    lhs = jnp.concatenate(parts, axis=-1)                # [TH, W, KH*KW*C]
    lhs = lhs.reshape(TH * W, KH * KW * C)               # W % 8 == 0 -> cheap merge

    # Single big-K MXU contraction, bf16 operands, f32 accumulation.
    z = jnp.dot(lhs, w_ref[...], preferred_element_type=jnp.float32)
    z = z + b_ref[...]                                   # [TH*W, 4*hid]

    # Gates (torch.split order: i, f, o, g), elementwise math in f32.
    i = jax.nn.sigmoid(z[:, 0 * hid:1 * hid])
    f = jax.nn.sigmoid(z[:, 1 * hid:2 * hid])
    o = jax.nn.sigmoid(z[:, 2 * hid:3 * hid])
    g = jnp.tanh(z[:, 3 * hid:4 * hid])

    c_cur = c_ref[0].reshape(TH * W, hid)                # f32
    c_next = f * c_cur + i * g
    h_next = o * jnp.tanh(c_next)

    packed = jnp.concatenate([h_next, c_next], axis=-1)  # [TH*W, 2*hid]
    out_ref[0] = packed.reshape(TH, W, 2 * hid).astype(out_ref.dtype)


def _pick_row_tile(H):
    """Largest row tile <= 32 dividing H, preferring >= 2 tiles for pipelining."""
    for t in (32, 16, 8, 4, 2, 1):
        if H % t == 0 and H // t >= 2:
            return t
    return H


def conv_lstm_cell(x_nchw, h_nchw, c_nchw, w_oihw, bias, kernel_size):
    """Pallas ConvLSTMCell.forward. Inputs/outputs use PyTorch NCHW layout."""
    KH, KW = kernel_size
    assert KH % 2 == 1 and KW % 2 == 1, "only odd 'same' kernels supported"

    B, Cin, H, W = x_nchw.shape
    hid = h_nchw.shape[1]
    C = Cin + hid
    O = 4 * hid

    # Layout glue (XLA): NCHW -> NHWC; bf16 MXU operands; im2col weight order.
    x = jnp.transpose(x_nchw, (0, 2, 3, 1)).astype(jnp.bfloat16)
    h = jnp.transpose(h_nchw, (0, 2, 3, 1)).astype(jnp.bfloat16)
    c = jnp.transpose(c_nchw, (0, 2, 3, 1)).astype(jnp.float32)
    # Rows ordered (kj, ki, cin) to match the kernel's im2col packing.
    w_im2col = jnp.transpose(w_oihw, (3, 2, 1, 0)).reshape(KH * KW * C, O)
    w_im2col = w_im2col.astype(jnp.bfloat16)
    b2 = bias.reshape(1, O).astype(jnp.float32)

    TH = _pick_row_tile(H)
    R = H // TH
    Hp, Wp = H + KH - 1, W + KW - 1

    kernel = functools.partial(_convlstm_kernel, KH=KH, KW=KW)

    out = pl.pallas_call(
        kernel,
        out_shape=jax.ShapeDtypeStruct((B, H, W, 2 * hid), jnp.float32),
        grid_spec=pltpu.PrefetchScalarGridSpec(
            num_scalar_prefetch=0,
            grid=(B, R),
            in_specs=[
                # Whole image per batch element (constant in r -> fetched once per b).
                pl.BlockSpec((1, H, W, Cin), lambda b, r: (b, 0, 0, 0)),
                pl.BlockSpec((1, H, W, hid), lambda b, r: (b, 0, 0, 0)),
                # Row-tiled cell state (pipelined).
                pl.BlockSpec((1, TH, W, hid), lambda b, r: (b, r, 0, 0)),
                # Weights / bias: grid-invariant, fetched once.
                pl.BlockSpec((KH * KW * C, O), lambda b, r: (0, 0)),
                pl.BlockSpec((1, O), lambda b, r: (0, 0)),
            ],
            out_specs=pl.BlockSpec((1, TH, W, 2 * hid), lambda b, r: (b, r, 0, 0)),
            scratch_shapes=[pltpu.VMEM((Hp, Wp, C), jnp.bfloat16)],
        ),
        compiler_params=pltpu.CompilerParams(
            # Batch axis megacore-parallel; row axis must run in order per batch
            # element because the scratch is filled at r == 0.
            dimension_semantics=("parallel", "arbitrary")),
    )(x, h, c, w_im2col, b2)

    h_next = jnp.transpose(out[..., :hid], (0, 3, 1, 2)).astype(x_nchw.dtype)
    c_next = jnp.transpose(out[..., hid:], (0, 3, 1, 2)).astype(x_nchw.dtype)
    return h_next, c_next


def _reference(x, h, c, w, b, conv_dtype=jnp.float32):
    """Pure-JAX reference mirroring the PyTorch forward (NCHW)."""
    comb = jnp.concatenate([x, h], axis=1)
    pad = (w.shape[2] // 2, w.shape[3] // 2)
    conv = jax.lax.conv_general_dilated(
        comb.astype(conv_dtype), w.astype(conv_dtype), (1, 1),
        ((pad[0], pad[0]), (pad[1], pad[1])),
        dimension_numbers=('NCHW', 'OIHW', 'NCHW'),
        preferred_element_type=jnp.float32) + b[None, :, None, None]
    cc_i, cc_f, cc_o, cc_g = jnp.split(conv, 4, axis=1)
    i = jax.nn.sigmoid(cc_i)
    f = jax.nn.sigmoid(cc_f)
    o = jax.nn.sigmoid(cc_o)
    g = jnp.tanh(cc_g)
    c_next = f * c + i * g
    h_next = o * jnp.tanh(c_next)
    return h_next, c_next


if __name__ == "__main__":
    B, Cin, hid, H, W = 2, 4, 32, 16, 16
    KH, KW = 3, 3

    key = jax.random.PRNGKey(0)
    ks = jax.random.split(key, 5)
    x = jax.random.normal(ks[0], (B, Cin, H, W), jnp.float32)
    h0 = jax.random.normal(ks[1], (B, hid, H, W), jnp.float32)
    c0 = jax.random.normal(ks[2], (B, hid, H, W), jnp.float32)

    # Deterministic Conv2d-like params (kaiming-uniform-ish bounds).
    fan_in = (Cin + hid) * KH * KW
    bound = 1.0 / (fan_in ** 0.5)
    w = jax.random.uniform(ks[3], (4 * hid, Cin + hid, KH, KW), jnp.float32, -bound, bound)
    b = jax.random.uniform(ks[4], (4 * hid,), jnp.float32, -bound, bound)

    h_next, c_next = conv_lstm_cell(x, h0, c0, w, b, (KH, KW))
    jax.block_until_ready((h_next, c_next))

    assert h_next.shape == (B, hid, H, W) and c_next.shape == (B, hid, H, W)

    # Tight check against a bf16-conv reference (same bf16 operands / f32 acc).
    h_ref_bf, c_ref_bf = _reference(x, h0, c0, w, b, conv_dtype=jnp.bfloat16)
    assert jnp.allclose(h_next, h_ref_bf, atol=1e-3, rtol=1e-3)
    assert jnp.allclose(c_next, c_ref_bf, atol=1e-3, rtol=1e-3)

    # Loose sanity check against the full-f32 reference (bf16 MXU operand error).
    h_ref32, c_ref32 = _reference(x, h0, c0, w, b, conv_dtype=jnp.float32)
    assert jnp.allclose(h_next, h_ref32, atol=5e-2, rtol=5e-2)
    assert jnp.allclose(c_next, c_ref32, atol=5e-2, rtol=5e-2)

    print("KERNEL_OK")
</pallas_src>

<mosaic_0001>
module attributes {stable_mosaic.version = 11 : i64} {
  func.func @_convlstm_kernel(%arg0: i32, %arg1: i32, %arg2: memref<1x16x16x4xbf16, #tpu.memory_space<vmem>>, %arg3: memref<1x16x16x32xbf16, #tpu.memory_space<vmem>>, %arg4: memref<1x8x16x32xf32, #tpu.memory_space<vmem>>, %arg5: memref<324x128xbf16, #tpu.memory_space<vmem>>, %arg6: memref<1x128xf32, #tpu.memory_space<vmem>>, %arg7: memref<1x8x16x64xf32, #tpu.memory_space<vmem>>, %arg8: memref<18x18x36xbf16, #tpu.memory_space<vmem>>) attributes {dimension_semantics = [#tpu.dimension_semantics<parallel>, #tpu.dimension_semantics<arbitrary>], iteration_bounds = array<i64: 2, 2>, scalar_prefetch = 0 : i64, scratch_operands = 1 : i64, tpu.core_type = #tpu.core_type<tc>, window_params = [{transform_indices = @transform_0, window_bounds = array<i64: 1, 16, 16, 4>}, {transform_indices = @transform_1, window_bounds = array<i64: 1, 16, 16, 32>}, {transform_indices = @transform_2, window_bounds = array<i64: 1, 8, 16, 32>}, {pipeline_mode = #tpu.pipeline_mode<synchronous>, transform_indices = @transform_3, window_bounds = array<i64: 324, 128>}, {pipeline_mode = #tpu.pipeline_mode<synchronous>, transform_indices = @transform_4, window_bounds = array<i64: 1, 128>}, {transform_indices = @transform_5, window_bounds = array<i64: 1, 8, 16, 64>}]} {
    %c0_i32 = arith.constant 0 : i32
    %0 = arith.cmpi eq, %arg1, %c0_i32 : i32
    %1 = arith.extui %0 : i1 to i32
    %c0_i32_0 = arith.constant 0 : i32
    %2 = arith.cmpi ne, %1, %c0_i32_0 : i32
    scf.if %2 {
      %cst_17 = arith.constant 0.000000e+00 : bf16
      %59 = vector.broadcast %cst_17 : bf16 to vector<18x18x36xbf16>
      %c0_18 = arith.constant 0 : index
      %c0_19 = arith.constant 0 : index
      %c0_20 = arith.constant 0 : index
      %60 = vector.load %arg8[%c0_18, %c0_19, %c0_20] : memref<18x18x36xbf16, #tpu.memory_space<vmem>>, vector<18x18x36xbf16>
      tpu.vector_store %arg8[%c0_18, %c0_19, %c0_20], %59 {strides = array<i32>} : memref<18x18x36xbf16, #tpu.memory_space<vmem>>, vector<18x18x36xbf16>,
      %c0_21 = arith.constant 0 : index
      %c0_22 = arith.constant 0 : index
      %c0_23 = arith.constant 0 : index
      %c0_24 = arith.constant 0 : index
      %61 = vector.load %arg2[%c0_21, %c0_22, %c0_23, %c0_24] : memref<1x16x16x4xbf16, #tpu.memory_space<vmem>>, vector<1x16x16x4xbf16>
      %62 = vector.shape_cast %61 : vector<1x16x16x4xbf16> to vector<16x16x4xbf16>
      %c1 = arith.constant 1 : index
      %c1_25 = arith.constant 1 : index
      %c0_26 = arith.constant 0 : index
      %63 = vector.load %arg8[%c1, %c1_25, %c0_26] : memref<18x18x36xbf16, #tpu.memory_space<vmem>>, vector<16x16x4xbf16>
      tpu.vector_store %arg8[%c1, %c1_25, %c0_26], %62 {strides = array<i32>} : memref<18x18x36xbf16, #tpu.memory_space<vmem>>, vector<16x16x4xbf16>,
      %c0_27 = arith.constant 0 : index
      %c0_28 = arith.constant 0 : index
      %c0_29 = arith.constant 0 : index
      %c0_30 = arith.constant 0 : index
      %64 = vector.load %arg3[%c0_27, %c0_28, %c0_29, %c0_30] : memref<1x16x16x32xbf16, #tpu.memory_space<vmem>>, vector<1x16x16x32xbf16>
      %65 = vector.shape_cast %64 : vector<1x16x16x32xbf16> to vector<16x16x32xbf16>
      %c1_31 = arith.constant 1 : index
      %c1_32 = arith.constant 1 : index
      %c4 = arith.constant 4 : index
      %66 = vector.load %arg8[%c1_31, %c1_32, %c4] : memref<18x18x36xbf16, #tpu.memory_space<vmem>>, vector<16x16x32xbf16>
      tpu.vector_store %arg8[%c1_31, %c1_32, %c4], %65 {strides = array<i32>} : memref<18x18x36xbf16, #tpu.memory_space<vmem>>, vector<16x16x32xbf16>,
    } else {
    }
    %c8_i32 = arith.constant 8 : i32
    %3 = arith.muli %arg1, %c8_i32 : i32
    %4 = tpu.assume_multiple %3, 8 : i32
    %5 = arith.index_cast %4 : i32 to index
    %c0 = arith.constant 0 : index
    %c0_1 = arith.constant 0 : index
    %6 = vector.load %arg8[%5, %c0, %c0_1] : memref<18x18x36xbf16, #tpu.memory_space<vmem>>, vector<10x18x36xbf16>
    %7 = vector.extract_strided_slice %6 {offsets = [0, 0, 0], sizes = [10, 16, 36], strides = [1, 1, 1]} : vector<10x18x36xbf16> to vector<10x16x36xbf16>
    %8 = vector.extract_strided_slice %7 {offsets = [0, 0, 0], sizes = [8, 16, 36], strides = [1, 1, 1]} : vector<10x16x36xbf16> to vector<8x16x36xbf16>
    %9 = vector.extract_strided_slice %7 {offsets = [1, 0, 0], sizes = [8, 16, 36], strides = [1, 1, 1]} : vector<10x16x36xbf16> to vector<8x16x36xbf16>
    %10 = vector.extract_strided_slice %7 {offsets = [2, 0, 0], sizes = [8, 16, 36], strides = [1, 1, 1]} : vector<10x16x36xbf16> to vector<8x16x36xbf16>
    %11 = vector.extract_strided_slice %6 {offsets = [0, 1, 0], sizes = [10, 16, 36], strides = [1, 1, 1]} : vector<10x18x36xbf16> to vector<10x16x36xbf16>
    %12 = vector.extract_strided_slice %11 {offsets = [0, 0, 0], sizes = [8, 16, 36], strides = [1, 1, 1]} : vector<10x16x36xbf16> to vector<8x16x36xbf16>
    %13 = vector.extract_strided_slice %11 {offsets = [1, 0, 0], sizes = [8, 16, 36], strides = [1, 1, 1]} : vector<10x16x36xbf16> to vector<8x16x36xbf16>
    %14 = vector.extract_strided_slice %11 {offsets = [2, 0, 0], sizes = [8, 16, 36], strides = [1, 1, 1]} : vector<10x16x36xbf16> to vector<8x16x36xbf16>
    %15 = vector.extract_strided_slice %6 {offsets = [0, 2, 0], sizes = [10, 16, 36], strides = [1, 1, 1]} : vector<10x18x36xbf16> to vector<10x16x36xbf16>
    %16 = vector.extract_strided_slice %15 {offsets = [0, 0, 0], sizes = [8, 16, 36], strides = [1, 1, 1]} : vector<10x16x36xbf16> to vector<8x16x36xbf16>
    %17 = vector.extract_strided_slice %15 {offsets = [1, 0, 0], sizes = [8, 16, 36], strides = [1, 1, 1]} : vector<10x16x36xbf16> to vector<8x16x36xbf16>
    %18 = vector.extract_strided_slice %15 {offsets = [2, 0, 0], sizes = [8, 16, 36], strides = [1, 1, 1]} : vector<10x16x36xbf16> to vector<8x16x36xbf16>
    %19 = tpu.concatenate %8, %9, %10, %12, %13, %14, %16, %17, %18 in 2 : vector<8x16x36xbf16>, vector<8x16x36xbf16>, vector<8x16x36xbf16>, vector<8x16x36xbf16>, vector<8x16x36xbf16>, vector<8x16x36xbf16>, vector<8x16x36xbf16>, vector<8x16x36xbf16>, vector<8x16x36xbf16> -> vector<8x16x324xbf16>
    %20 = vector.shape_cast %19 : vector<8x16x324xbf16> to vector<128x324xbf16>
    %c0_2 = arith.constant 0 : index
    %c0_3 = arith.constant 0 : index
    %21 = vector.load %arg5[%c0_2, %c0_3] : memref<324x128xbf16, #tpu.memory_space<vmem>>, vector<324x128xbf16>
    %cst = arith.constant dense<0.000000e+00> : vector<128x128xf32>
    %22 = tpu.matmul %20, %21, %cst {dimension_numbers = #tpu.dot_dimension_numbers<[1], [0], [0], [1], [0, 0, 1, 1], [], []>} : vector<128x324xbf16>, vector<324x128xbf16>, vector<128x128xf32> -> vector<128x128xf32>
    %c0_4 = arith.constant 0 : index
    %c0_5 = arith.constant 0 : index
    %23 = vector.load %arg6[%c0_4, %c0_5] : memref<1x128xf32, #tpu.memory_space<vmem>>, vector<1x128xf32>
    %24 = vector.broadcast %23 : vector<1x128xf32> to vector<128x128xf32>
    %25 = arith.addf %22, %24 : vector<128x128xf32>
    %26 = vector.extract_strided_slice %25 {offsets = [0, 0], sizes = [128, 32], strides = [1, 1]} : vector<128x128xf32> to vector<128x32xf32>
    %27 = arith.negf %26 : vector<128x32xf32>
    %28 = math.exp %27 : vector<128x32xf32>
    %cst_6 = arith.constant 1.000000e+00 : f32
    %29 = vector.broadcast %cst_6 : f32 to vector<128x32xf32>
    %30 = arith.addf %29, %28 : vector<128x32xf32>
    %31 = arith.divf %29, %30 : vector<128x32xf32>
    %32 = vector.extract_strided_slice %25 {offsets = [0, 32], sizes = [128, 32], strides = [1, 1]} : vector<128x128xf32> to vector<128x32xf32>
    %33 = arith.negf %32 : vector<128x32xf32>
    %34 = math.exp %33 : vector<128x32xf32>
    %cst_7 = arith.constant 1.000000e+00 : f32
    %35 = vector.broadcast %cst_7 : f32 to vector<128x32xf32>
    %36 = arith.addf %35, %34 : vector<128x32xf32>
    %37 = arith.divf %35, %36 : vector<128x32xf32>
    %38 = vector.extract_strided_slice %25 {offsets = [0, 64], sizes = [128, 32], strides = [1, 1]} : vector<128x128xf32> to vector<128x32xf32>
    %39 = arith.negf %38 : vector<128x32xf32>
    %40 = math.exp %39 : vector<128x32xf32>
    %cst_8 = arith.constant 1.000000e+00 : f32
    %41 = vector.broadcast %cst_8 : f32 to vector<128x32xf32>
    %42 = arith.addf %41, %40 : vector<128x32xf32>
    %43 = arith.divf %41, %42 : vector<128x32xf32>
    %44 = vector.extract_strided_slice %25 {offsets = [0, 96], sizes = [128, 32], strides = [1, 1]} : vector<128x128xf32> to vector<128x32xf32>
    %45 = math.tanh %44 : vector<128x32xf32>
    %c0_9 = arith.constant 0 : index
    %c0_10 = arith.constant 0 : index
    %c0_11 = arith.constant 0 : index
    %c0_12 = arith.constant 0 : index
    %46 = vector.load %arg4[%c0_9, %c0_10, %c0_11, %c0_12] : memref<1x8x16x32xf32, #tpu.memory_space<vmem>>, vector<1x8x16x32xf32>
    %47 = vector.shape_cast %46 : vector<1x8x16x32xf32> to vector<8x16x32xf32>
    %48 = vector.shape_cast %47 : vector<8x16x32xf32> to vector<128x32xf32>
    %49 = arith.mulf %37, %48 : vector<128x32xf32>
    %50 = arith.mulf %31, %45 : vector<128x32xf32>
    %51 = arith.addf %49, %50 : vector<128x32xf32>
    %52 = math.tanh %51 : vector<128x32xf32>
    %53 = arith.mulf %43, %52 : vector<128x32xf32>
    %54 = tpu.concatenate %53, %51 in 1 : vector<128x32xf32>, vector<128x32xf32> -> vector<128x64xf32>
    %55 = vector.shape_cast %54 : vector<128x64xf32> to vector<8x16x64xf32>
    %c0_13 = arith.constant 0 : index
    %c0_14 = arith.constant 0 : index
    %c0_15 = arith.constant 0 : index
    %c0_16 = arith.constant 0 : index
    %56 = vector.load %arg7[%c0_13, %c0_14, %c0_15, %c0_16] : memref<1x8x16x64xf32, #tpu.memory_space<vmem>>, vector<1x8x16x64xf32>
    %57 = vector.shape_cast %56 : vector<1x8x16x64xf32> to vector<8x16x64xf32>
    %58 = vector.shape_cast %55 : vector<8x16x64xf32> to vector<1x8x16x64xf32>
    tpu.vector_store %arg7[%c0_13, %c0_14, %c0_15, %c0_16], %58 {strides = array<i32>} : memref<1x8x16x64xf32, #tpu.memory_space<vmem>>, vector<1x8x16x64xf32>,
    return
  }
  func.func @transform_0(%arg0: i32, %arg1: i32) -> (i32, i32, i32, i32) {
    %c0_i32 = arith.constant 0 : i32
    %c0_i32_0 = arith.constant 0 : i32
    %c0_i32_1 = arith.constant 0 : i32
    %c0_i32_2 = arith.constant 0 : i32
    return %arg0, %c0_i32, %c0_i32_0, %c0_i32_1 : i32, i32, i32, i32
  }
  func.func @transform_1(%arg0: i32, %arg1: i32) -> (i32, i32, i32, i32) {
    %c0_i32 = arith.constant 0 : i32
    %c0_i32_0 = arith.constant 0 : i32
    %c0_i32_1 = arith.constant 0 : i32
    %c0_i32_2 = arith.constant 0 : i32
    return %arg0, %c0_i32, %c0_i32_0, %c0_i32_1 : i32, i32, i32, i32
  }
  func.func @transform_2(%arg0: i32, %arg1: i32) -> (i32, i32, i32, i32) {
    %c0_i32 = arith.constant 0 : i32
    %c0_i32_0 = arith.constant 0 : i32
    %c0_i32_1 = arith.constant 0 : i32
    return %arg0, %arg1, %c0_i32, %c0_i32_0 : i32, i32, i32, i32
  }
  func.func @transform_3(%arg0: i32, %arg1: i32) -> (i32, i32) {
    %c0_i32 = arith.constant 0 : i32
    %c0_i32_0 = arith.constant 0 : i32
    %c0_i32_1 = arith.constant 0 : i32
    return %c0_i32, %c0_i32_0 : i32, i32
  }
  func.func @transform_4(%arg0: i32, %arg1: i32) -> (i32, i32) {
    %c0_i32 = arith.constant 0 : i32
    %c0_i32_0 = arith.constant 0 : i32
    %c0_i32_1 = arith.constant 0 : i32
    return %c0_i32, %c0_i32_0 : i32, i32
  }
  func.func @transform_5(%arg0: i32, %arg1: i32) -> (i32, i32, i32, i32) {
    %c0_i32 = arith.constant 0 : i32
    %c0_i32_0 = arith.constant 0 : i32
    %c0_i32_1 = arith.constant 0 : i32
    return %arg0, %arg1, %c0_i32, %c0_i32_0 : i32, i32, i32, i32
  }
}

</mosaic_0001>

<bundles_post_ra>
// kernel: tpu_custom_call.1
= control target key start
LH: loop header
LB: loop body
LE: loop exit
PB: predicated region body
PF: predicated region fallthrough
CT: control target
= control target key end

     0   :  { %s5542_s0 = inlined_call_operand.vmem [shape: bf16[2,16,16,4], index: 0, kind: input, shape index: {}]   ;;  %s5543_s1 = inlined_call_operand.vmem [shape: bf16[2,16,16,32], index: 1, kind: input, shape index: {}]   ;;  %s5544_s2 = inlined_call_operand.hbm [shape: f32[2,16,16,32], index: 2, kind: input, shape index: {}]   ;;  %s5545_s3 = inlined_call_operand.hbm [shape: bf16[324,128], index: 3, kind: input, shape index: {}]   ;;  %s5546_s4 = inlined_call_operand.vmem [shape: f32[1,128], index: 4, kind: input, shape index: {}]   ;;  %s5547_s5 = inlined_call_operand.hbm [shape: f32[2,16,16,64], index: 5, kind: output, shape index: {}]  }
   0x1   :  { %5556 = sst [smem:[#allocation17_spill]] %s5545_s3 }
   0x2   :  { %5557 = sst [smem:[#allocation18_spill]] %s5547_s5 }
   0x3   :  { %10 = vsyncpa [#allocation4], 0 }
   0x4   :  { %12 = vsyncpa [#allocation4 + $0x1], 0 }
   0x5   :  { %13 = vsyncpa [#allocation7], 0 }
   0x6   :  { %14 = vsyncpa [#allocation5], 0 }
   0x7   :  { %16 = vsyncpa [#allocation5 + $0x1], 0  ;;  %s3740_s18 = smov 0   ;;  %s3742_s19 = smov 0  }
   0x8   :  { %s3744_s20 = smov 0   ;;  %s3746_s21 = smov 0  }
   0x9   :  { %s3748_s22 = smov 0   ;;  %s3750_s23 = smov 0  }
   0xa   :  { %s3752_s24 = smov 0   ;;  %s3754_s25 = smov 0  }
   0xb LB: > { %5558 = sst [smem:[#allocation12_spill]] %s3660_s18  ;;  %s3055_s26 = sadd.s32 4294967295, %s3688_s25   ;;  %s3688_s25 = sphi %s3754_s25, %s22_s25   ;;  %s3684_s24 = sphi %s3752_s24, %s5595_s24   ;;  %s3680_s23 = sphi %s3750_s23, %s5590_s23   ;;  %s3676_s22 = sphi %s3748_s22, %s5594_s22   ;;  %s3672_s21 = sphi %s3746_s21, %s5589_s21   ;;  %s3668_s20 = sphi %s3744_s20, %s5593_s20   ;;  %s3664_s19 = sphi %s3742_s19, %s5592_s19   ;;  %s3660_s18 = sphi %s3740_s18, %s5591_s18  }
   0xc   : > { %5559 = sst [smem:[#allocation13_spill]] %s3680_s23  ;;  %s3056_s27 = sadd.s32 4294967294, %s3688_s25  }
   0xd   : > { %p108_p0 = scmp.ne.s32.totalorder %s3664_s19, %s3660_s18  ;;  %p3784_p1 = scmp.eq.s32.totalorder %s3055_s26, 0 }
   0xe   : > { %p3788_p2 = scmp.eq.s32.totalorder %s3055_s26, 3  ;;  %p182_p3 = scmp.eq.s32.totalorder %s3056_s27, 3 }
   0xf   : > { %p3794_p4 = por %p3784_p1, %p108_p0  ;;  %p3057_p5 = scmp.ge.s32.totalorder %s3688_s25, 1 }
  0x10   : > { %p3799_p6 = por %p182_p3, %p108_p0  ;;  %p189_p7 = scmp.lt.s32.totalorder %s3688_s25, 5 }
  0x11   : > { %s5562_s30 = scalar_select %p3794_p4, 1, 0 }
  0x12   : > { %s5563_s6 = scalar_select %p3799_p6, 1, 0 }
  0x13   : > { %p3804_p8 = pnand %p3057_p5, %p189_p7  ;;  %s3690_s8 = smov [#allocation6]  }
  0x14   : > { %5564 = sst [smem:[#allocation14_spill]] %s5563_s6  ;;  %s201_s9 = sshll.u32 %s3690_s8, 4  ;;  %s202_s9 = int_to_ptr.vmem [resolvable:$true] %s201_s9 }
  0x15   : > { %p3267_p9 = pneg %p3804_p8  ;;  %s3545_s10 = scalar_lea.vmem %s202_s9, 2624 }
  0x16   : > { %p3546_p12 = scmp.ne.s32.totalorder %s202_s9, %s3545_s10  ;;  %p3553_p3 = scmp.lt.s32.totalorder %s202_s9, %s202_s9 }
  0x17   : > { %p3268_p10 = pnand %p3267_p9, %p3784_p1  ;;  %p3554_p6 = scmp.lt.s32.totalorder %s3545_s10, %s3545_s10 }
  0x19   : > { %p3536_p11 = pneg %p3268_p10  ;;  %p3555_p4 = por %p3554_p6, %p3553_p3 }
  0x1b   : > { %p3548_p13 = pnand %p3546_p12, %p3536_p11 }
  0x1d   : > { %p3549_p0 = pneg %p3548_p13 }
  0x1f   : > { %p3556_p5 = pnand %p3555_p4, %p3549_p0 }
  0x21   : > { %3559 = shalt.err (!%p3556_p5)
}
  0x22   : > { %s3691_s11 = smov 64   ;;  %s3692_s12 = smov 4  }
  0x23   : > { %s5566_s3 = sld [smem:[#allocation17_spill]]  ;;  %s31_s15 = sadd.s32 1, %s3680_s23 }
  0x24   : > { %p32_p4 = scmp.ge.s32.totalorder %s31_s15, 2  ;;  %s34_s16 = sadd.s32 1, %s3684_s24 }
  0x25   : > { %s95_s17 = sadd.s32 1, %s3668_s20  ;;  %p102_p6 = scmp.ne.s32.totalorder %s3668_s20, %s3664_s19 }
  0x26   : > { %s5597_s15 = smov (%p32_p4, %s31_s15), 0  ;;  %s5599_s16 = smov (!%p32_p4, %s34_s16), %s3684_s24 }
  0x27   : > { %5567 = sst [smem:[#allocation15_spill]] %s5597_s15  ;;  %s91_s26 = ssub.s32 %s3680_s23, %s5597_s15 }
  0x28   : > { %p103_p7 = scmp.eq.s32.totalorder %s3688_s25, 0  ;;  %p36_p9 = scmp.ge.s32.totalorder %s5599_s16, 2 }
  0x29   : > { %3270 = dma.hbm_to_vmem [thread:$0]  (!%p3268_p10), %s5566_s3, 2624, %s202_s9, [#allocation7], %s3691_s11, %s3691_s11, %s3692_s12  }
  0x2a   : > { %p3828_p11 = por %p3788_p2, %p102_p6  ;;  %p3832_p10 = por %p103_p7, %p102_p6 }
  0x2b   : > { %p3280_p12 = scmp.lt.s32.totalorder %s3688_s25, 4  ;;  %s5601_s16 = smov (%p36_p9, %s5599_s16), 0 }
  0x2c   : > { %s5568_s27 = scalar_select %p3828_p11, 1, 0 }
  0x2d   : > { %s234_s9 = sand.u32 1, %s3668_s20   ;;  %s3150_s10 = sshll.u32 %s3680_s23, 4 }
  0x2e   : > { %5569 = sst [smem:[#allocation16_spill]] %s5568_s27  ;;  %s90_s11 = ssub.s32 %s3684_s24, %s5601_s16 }
  0x2f   : > { %s92_s12 = sor.u32 %s91_s26, %s90_s11  ;;  %s3060_s13 = sshll.u32 %s234_s9, 7 }
  0x30   : > { %p93_p13 = scmp.eq.s32.totalorder %s92_s12, 0  ;;  %s3063_s29 = sshll.u32 %s3684_s24, 5 }
  0x31   : > { %s238_s14 = scalar_lea.vmem [#allocation3], %s3060_s13  ;;  %s245_s6 = sadd.s32 %s3150_s10, %s3063_s29 }
  0x32   : > { %s248_s3 = sshll.u32 %s238_s14, 4  ;;  %s3064_s18 = sshll.u32 %s245_s6, 7  ;;  %s249_s3 = int_to_ptr.vmem [resolvable:$true] %s248_s3 }
  0x33   : > { %s3845_s15 = scalar_select %p93_p13, %s3668_s20, %s95_s17  }
  0x34   : > { %p3851_p2 = pnand %p3280_p12, %p3832_p10  ;;  %s247_s26 = scalar_lea.hbm %s5544_s2, %s3064_s18 }
  0x35   : > { %s235_s11 = scalar_lea.sflag [#allocation4], %s234_s9  ;;  %s3573_s12 = scalar_lea.vmem %s249_s3, 2048 }
  0x36   : > { %p3562_p0 = pneg %p3851_p2  ;;  %p3574_p3 = scmp.ne.s32.totalorder %s249_s3, %s3573_s12 }
  0x37   : > { %s3693_s17 = smov [#allocation3]  }
  0x38   : > { %p3576_p5 = pnand %p3574_p3, %p3562_p0  ;;  %s3578_s6 = sshll.u32 %s3693_s17, 4  ;;  %s3579_s6 = int_to_ptr.vmem [resolvable:$false] %s3578_s6 }
  0x39   : > { %s3580_s8 = scalar_lea.vmem %s3579_s6, 4096  ;;  %p3581_p6 = scmp.lt.s32.totalorder %s249_s3, %s3579_s6 }
  0x3a   : > { %p3577_p4 = pneg %p3576_p5  ;;  %p3582_p7 = scmp.lt.s32.totalorder %s3580_s8, %s3573_s12 }
  0x3c   : > { %p3583_p9 = por %p3582_p7, %p3581_p6 }
  0x3e   : > { %p3584_p10 = pnand %p3583_p9, %p3577_p4 }
  0x40   : > { %3587 = shalt.err (!%p3584_p10)
}
  0x41   : > { %s3694_s10 = smov 128   ;;  %s3695_s23 = smov 8  }
  0x42   : > { %3274 = dma.hbm_to_vmem [thread:$0]  (!%p3851_p2), %s247_s26, 2048, %s249_s3, %s235_s11, %s3694_s10, %s3694_s10, %s3695_s23  }
  0x43   : > { %260 = sbr.rel (%p3804_p8) target bundleno = 1275 (0x4fb), region = 40  ;;  %s3865_s18 = sand.u32 (!%p3804_p8), 1, %s3664_s19  }
  0x44   : > { %s3066_s27 = sshll.u32 (!%p3804_p8), %s3865_s18, 7  ;;  %s263_s9 = scalar_lea.sflag (!%p3804_p8), [#allocation4], %s3865_s18 }
  0x45   : > { %s3869_s13 = scalar_lea.vmem (!%p3804_p8), [#allocation3], %s3066_s27  ;;  %p5572_p12 = scmp.ne.s32.totalorder (!%p3804_p8), %s5562_s30, 0 }
  0x48   : > { %3647 = dma.done.wait (%p5572_p12), %s263_s9, 2048  }
  0x49   : > { %3649 = vsyncadd (%p5572_p12), %s263_s9, 4294965248 }
  0x4a   : > { %3651 = dma.done.wait (%p3784_p1), [#allocation7], 2624  }
  0x4b   : > { %3653 = vsyncadd (%p3784_p1), [#allocation7], 4294964672  ;;  %p307_p8 = scmp.lt.s32.totalorder %s3676_s22, 1  ;;  %s3891_s12 = scalar_lea.vmem [#allocation8], %s3066_s27 }
  0x4c   : > { %p3073_p13 = scmp.ne.s32.totalorder %s3672_s21, 0 }
  0x4d   : > { %s308_s3 = scalar_select %p307_p8, %s3676_s22, 1 }
  0x4e   : > { %323 = sbr.rel (%p3073_p13) target bundleno = 309 (0x135), region = 52  ;;  %s3696_s28 = smov (!%p3073_p13), 4  }
  0x4f   : > { %s3151_s5 = sshll.u32 %s308_s3, 7 }
  0x50   : > { %s3884_s14 = scalar_lea.vmem %s5542_s0, %s3151_s5  ;;  %s3889_s30 = scalar_lea.vmem %s5543_s1, %s3151_s5 }
  0x53   : > { %v855_v0 = vld [vmem:[%s3889_s30 + $0x4] sm:$0xf]  ;;  %v854_v1 = vld [vmem:[%s3889_s30] sm:$0xf]  ;;  %v856_v6 = vld [vmem:[%s3889_s30 + $0x8] sm:$0xf] }
  0x54   : > { %v895_v2 = vshrl.u32 %v855_v0, 16  ;;  %v898_v3 = vshll.u32 %v855_v0, 16  ;;  %v887_v4 = vshrl.u32 %v854_v1, 16  ;;  %v890_v5 = vshll.u32 %v854_v1, 16  ;;  %v857_v11 = vld [vmem:[%s3889_s30 + $0xc] sm:$0xf] }
  0x55   : > { %v904_v7 = vshrl.u32 %v856_v6, 16  ;;  %v907_v8 = vshll.u32 %v856_v6, 16  ;;  %vm412_vm0 = vsmask.f32 256  ;;  %vm413_vm1 = vsmask.f32 4368 }
  0x56   : > { %v897_v9 = vrot.slane %v895_v2, 7  ;;  %v889_v10 = vrot.slane %v887_v4, 7  ;;  %v858_v12 = vld [vmem:[%s3889_s30 + $0x10] sm:$0xf]  ;;  %v912_v14 = vshrl.u32 %v857_v11, 16  ;;  %v915_v15 = vshll.u32 %v857_v11, 16  ;;  %vm3901_vm2 = vmor %vm412_vm0, %vm413_vm1 }
  0x57   : > { %v906_v13 = vrot.slane %v904_v7, 7  ;;  %v859_v16 = vld [vmem:[%s3889_s30 + $0x14] sm:$0xf]  ;;  %v921_v17 = vshrl.u32 %v858_v12, 16  ;;  %v860_v23 = vld [vmem:[%s3889_s30 + $0x18] sm:$0xf] }
  0x58   : > { %v902_v18 = vrot.slane %v897_v9, 4  ;;  %v900_v19 = vor.u32 %v898_v3, %v897_v9  ;;  %v892_v20 = vor.u32 %v890_v5, %v889_v10  ;;  %v893_v21 = vrot.slane %v889_v10, 4  ;;  %v861_v26 = vld [vmem:[%s3889_s30 + $0x1c] sm:$0xf]  ;;  %v862_v31 = vld [vmem:[%s3889_s30 + $0x20] sm:$0xf] }
  0x59   : > { %v914_v24 = vrot.slane %v912_v14, 7  ;;  %v923_v25 = vrot.slane %v921_v17, 7  ;;  %v909_v27 = vor.u32 %v907_v8, %v906_v13  ;;  %v910_v28 = vrot.slane %v906_v13, 4  ;;  %v863_v36 = vld [vmem:[%s3889_s30 + $0x24] sm:$0xf] }
  0x5a   : > { %1162 = vrot.lane.b32.xlu1 %v902_v18, %s3696_s28  ;;  %1158 = vrot.lane.b32.xlu0 %v892_v20, %s3696_s28  ;;  %v929_v29 = vshrl.u32 %v859_v16, 16  ;;  %v932_v30 = vshll.u32 %v859_v16, 16  ;;  %v901_v32 = vsel %vm3901_vm2, %v893_v21, %v900_v19  ;;  %v924_v34 = vshll.u32 %v858_v12, 16  ;;  %v864_v47 = vld [vmem:[%s3889_s30 + $0x28] sm:$0xf] }
  0x5b   : > { %v917_v33 = vor.u32 %v915_v15, %v914_v24  ;;  %v938_v35 = vshrl.u32 %v860_v23, 16  ;;  %v946_v38 = vshrl.u32 %v861_v26, 16  ;;  %v919_v39 = vrot.slane %v914_v24, 4  ;;  %v865_v52 = vld [vmem:[%s3889_s30 + $0x2c] sm:$0xf] }
  0x5c   : > { %v3913_v37 = vrot.slane %v929_v29, 7  ;;  %v927_v40 = vrot.slane %v923_v25, 4  ;;  %v949_v41 = vshll.u32 %v861_v26, 16  ;;  %v955_v42 = vshrl.u32 %v862_v31, 16  ;;  %v3928_v57 = vld [vmem:[%s3889_s30 + $0x34] sm:$0xf] }
  0x5d   : > { %v940_v44 = vrot.slane %v938_v35, 7  ;;  %v3918_v45 = vrot.slane %v946_v38, 7  ;;  %v963_v46 = vshrl.u32 %v863_v36, 16  ;;  %v918_v48 = vsel %vm3901_vm2, %v910_v28, %v917_v33  ;;  %v866_v62 = vld [vmem:[%s3889_s30 + $0x30] sm:$0xf] }
  0x5e   : > { %1164 = vrot.lane.b32.xlu1 %v909_v27, %s3696_s28  ;;  %1160 = vrot.lane.b32.xlu0 %v901_v32, %s3696_s28  ;;  %v934_v43 = vor.u32 %v932_v30, %v3913_v37  ;;  %v926_v49 = vor.u32 %v924_v34, %v923_v25  ;;  %v957_v50 = vrot.slane %v955_v42, 7  ;;  %v966_v51 = vshll.u32 %v863_v36, 16  ;;  %v3939_v3 = vld [vmem:[%s3889_s30 + $0x3c] sm:$0xf]  ;;  %v868_v8 = vld [vmem:[%s3889_s30 + $0x38] sm:$0xf] }
  0x5f   : > { %v941_v53 = vshll.u32 %v860_v23, 16  ;;  %v944_v54 = vrot.slane %v940_v44, 4  ;;  %v951_v55 = vor.u32 %v949_v41, %v3918_v45  ;;  %v3925_v56 = vrot.slane %v963_v46, 7  ;;  %v3948_v13 = vld [vmem:[%s3889_s30 + $0x44] sm:$0xf] }
  0x60   : > { %v935_v58 = vsel %vm3901_vm2, %v927_v40, %v934_v43  ;;  %v936_v59 = vrot.slane %v3913_v37, 4  ;;  %v958_v60 = vshll.u32 %v862_v31, 16  ;;  %v972_v61 = vshrl.u32 %v864_v47, 16  ;;  %v870_v14 = vld [vmem:[%s3889_s30 + $0x40] sm:$0xf] }
  0x61   : > { %v953_v63 = vrot.slane %v3918_v45, 4  ;;  %v961_v0 = vrot.slane %v957_v50, 4  ;;  %v968_v1 = vor.u32 %v966_v51, %v3925_v56  ;;  %v980_v2 = vshrl.u32 %v865_v52, 16  ;;  %v3958_v19 = vld [vmem:[%s3889_s30 + $0x4c] sm:$0xf] }
  0x62   : > { %1168 = vrot.lane.b32.xlu1 %v919_v39, %s3696_s28  ;;  %1166 = vrot.lane.b32.xlu0 %v918_v48, %s3696_s28  ;;  %v974_v4 = vrot.slane %v972_v61, 7  ;;  %v975_v5 = vshll.u32 %v864_v47, 16  ;;  %v983_v6 = vshll.u32 %v865_v52, 16  ;;  %v997_v7 = vshrl.u32 %v3928_v57, 16  ;;  %v872_v25 = vld [vmem:[%s3889_s30 + $0x48] sm:$0xf] }
  0x63   : > { %v943_v9 = vor.u32 %v941_v53, %v940_v44  ;;  %v952_v10 = vsel %vm3901_vm2, %v944_v54, %v951_v55  ;;  %v3945_v11 = vrot.slane %v980_v2, 7  ;;  %v989_v12 = vshrl.u32 %v866_v62, 16  ;;  %v3969_v26 = vld [vmem:[%s3889_s30 + $0x54] sm:$0xf]  ;;  %v874_v31 = vld [vmem:[%s3889_s30 + $0x50] sm:$0xf] }
  0x64   : > { %v3951_v15 = vor.u32 %v958_v60, %v957_v50  ;;  %v970_v16 = vrot.slane %v3925_v56, 4  ;;  %v3954_v17 = vrot.slane %v997_v7, 7  ;;  %v1014_v18 = vshrl.u32 %v3939_v3, 16  ;;  %v3982_v36 = vld [vmem:[%s3889_s30 + $0x5c] sm:$0xf] }
  0x65   : > { %v3964_v20 = vsel %vm3901_vm2, %v961_v0, %v968_v1  ;;  %v978_v21 = vrot.slane %v974_v4, 4  ;;  %v985_v23 = vor.u32 %v983_v6, %v3945_v11  ;;  %v1006_v24 = vshrl.u32 %v868_v8, 16  ;;  %v876_v41 = vld [vmem:[%s3889_s30 + $0x58] sm:$0xf]  ;;  %v3999_v47 = vld [vmem:[%s3889_s30 + $0x64] sm:$0xf] }
  0x66   : > { %1172 = vrot.lane.b32.xlu1 %v935_v58, %s3696_s28  ;;  %1170 = vrot.lane.b32.xlu0 %v926_v49, %s3696_s28  ;;  %v3971_v27 = vor.u32 %v975_v5, %v974_v4  ;;  %v987_v28 = vrot.slane %v3945_v11, 4  ;;  %v992_v29 = vshll.u32 %v866_v62, 16  ;;  %v1031_v30 = vshrl.u32 %v3948_v13, 16  ;;  %v878_v52 = vld [vmem:[%s3889_s30 + $0x60] sm:$0xf] }
  0x67   : > { %v1004_v32 = vrot.slane %v3954_v17, 4  ;;  %v3977_v33 = vrot.slane %v989_v12, 7  ;;  %v3979_v34 = vrot.slane %v1014_v18, 7  ;;  %v1023_v35 = vshrl.u32 %v870_v14, 16  ;;  %v880_v1 = vld [vmem:[%s3889_s30 + $0x68] sm:$0xf] }
  0x68   : > { %v3984_v37 = vrot.slane %v1006_v24, 7  ;;  %v1009_v38 = vshll.u32 %v868_v8, 16  ;;  %v3986_v39 = vrot.slane %v1031_v30, 7  ;;  %v1048_v40 = vshrl.u32 %v3958_v19, 16  ;;  %v4032_v7 = vld [vmem:[%s3889_s30 + $0x74] sm:$0xf] }
  0x69   : > { %v3994_v42 = vsel %vm3901_vm2, %v978_v21, %v985_v23  ;;  %v3996_v43 = vrot.slane %v1023_v35, 7  ;;  %v1026_v44 = vshll.u32 %v870_v14, 16  ;;  %v1040_v46 = vshrl.u32 %v872_v25, 16  ;;  %v4047_v23 = vld [vmem:[%s3889_s30 + $0x7c] sm:$0xf] }
  0x6a   : > { %1176 = vrot.lane.b32.xlu1 %v943_v9, %s3696_s28  ;;  %1174 = vrot.lane.b32.xlu0 %v936_v59, %s3696_s28  ;;  %v4001_v48 = vrot.slane %v1048_v40, 7  ;;  %v1043_v49 = vshll.u32 %v872_v25, 16  ;;  %v1065_v50 = vshrl.u32 %v3969_v26, 16  ;;  %v1057_v51 = vshrl.u32 %v874_v31, 16  ;;  %v4013_v59 = vld [vmem:[%s3889_s30 + $0x6c] sm:$0xf] }
  0x6b   : > { %v4006_v53 = vor.u32 %v992_v29, %v3977_v33  ;;  %v1021_v54 = vrot.slane %v3979_v34, 4  ;;  %v4009_v55 = vrot.slane %v1040_v46, 7  ;;  %v1082_v58 = vshrl.u32 %v3982_v36, 16 }
  0x6c   : > { %v4016_v60 = vor.u32 %v1009_v38, %v3984_v37  ;;  %v1038_v61 = vrot.slane %v3986_v39, 4  ;;  %v4019_v62 = vrot.slane %v1065_v50, 7  ;;  %v1074_v0 = vshrl.u32 %v876_v41, 16 }
  0x6d   : > { %v4027_v2 = vor.u32 %v1026_v44, %v3996_v43  ;;  %v1055_v4 = vrot.slane %v4001_v48, 4  ;;  %v1060_v5 = vshll.u32 %v874_v31, 16  ;;  %v1099_v6 = vshrl.u32 %v3999_v47, 16  ;;  %v884_v31 = vld [vmem:[%s3889_s30 + $0x78] sm:$0xf] }
  0x6e   : > { %1180 = vrot.lane.b32.xlu1 %v953_v63, %s3696_s28  ;;  %1178 = vrot.lane.b32.xlu0 %v952_v10, %s3696_s28  ;;  %v4035_v8 = vor.u32 %v1043_v49, %v4009_v55  ;;  %v4037_v9 = vrot.slane %v1057_v51, 7  ;;  %v4039_v45 = vrot.slane %v1082_v58, 7  ;;  %v1091_v63 = vshrl.u32 %v878_v52, 16  ;;  %v882_v10 = vld [vmem:[%s3889_s30 + $0x70] sm:$0xf] }
  0x6f   : > { %v1072_v12 = vrot.slane %v4019_v62, 4  ;;  %v4043_v14 = vrot.slane %v1074_v0, 7  ;;  %v1077_v18 = vshll.u32 %v876_v41, 16  ;;  %v1116_v21 = vshrl.u32 %v4013_v59, 16 }
  0x70   : > { %v4049_v24 = vrot.slane %v1099_v6, 7  ;;  %v4051_v25 = vrot.slane %v1091_v63, 7  ;;  %v1094_v29 = vshll.u32 %v878_v52, 16  ;;  %v1108_v30 = vshrl.u32 %v880_v1, 16 }
  0x71   : > { %v4058_v35 = vrot.slane %v1116_v21, 7  ;;  %v1111_v38 = vshll.u32 %v880_v1, 16  ;;  %v1133_v40 = vshrl.u32 %v4032_v7, 16  ;;  %v1125_v41 = vshrl.u32 %v882_v10, 16 }
  0x72   : > { %1184 = vrot.lane.b32.xlu1 %v3964_v20, %s3696_s28  ;;  %1182 = vrot.lane.b32.xlu0 %v3951_v15, %s3696_s28  ;;  %v4062_v44 = vor.u32 %v1060_v5, %v4037_v9  ;;  %v1089_v46 = vrot.slane %v4039_v45, 4  ;;  %v4065_v49 = vrot.slane %v1108_v30, 7  ;;  %v1150_v50 = vshrl.u32 %v4047_v23, 16 }
  0x73   : > { %v4068_v51 = vrot.slane %v1133_v40, 7  ;;  %v4070_v20 = vrot.slane %v1125_v41, 7  ;;  %v1128_v15 = vshll.u32 %v882_v10, 16  ;;  %v1142_v52 = vshrl.u32 %v884_v31, 16 }
  0x74   : > { %v4073_v58 = vor.u32 %v1077_v18, %v4043_v14  ;;  %v1106_v0 = vrot.slane %v4049_v24, 4  ;;  %v4077_v1 = vor.u32 %v1094_v29, %v4051_v25  ;;  %v1123_v5 = vrot.slane %v4058_v35, 4 }
  0x75   : > { %v4086_v6 = vor.u32 %v1111_v38, %v4065_v49  ;;  %v4088_v63 = vrot.slane %v1150_v50, 7  ;;  %v1145_v10 = vshll.u32 %v884_v31, 16  ;;  %v1017_v18 = vshll.u32 %v3939_v3, 16 }
  0x76   : > { %1188 = vrot.lane.b32.xlu1 %v3971_v27, %s3696_s28  ;;  %1186 = vrot.lane.b32.xlu0 %v970_v16, %s3696_s28  ;;  %v1140_v21 = vrot.slane %v4068_v51, 4  ;;  %v4092_v29 = vrot.slane %v1142_v52, 7  ;;  %v1012_v30 = vrot.slane %v3984_v37, 4  ;;  %v1000_v27 = vshll.u32 %v3928_v57, 16 }
  0x77   : > { %v4097_v40 = vor.u32 %v1128_v15, %v4070_v20  ;;  %v1019_v56 = vor.u32 %v1017_v18, %v3979_v34  ;;  %v995_v16 = vrot.slane %v3977_v33, 4  ;;  %v1051_v38 = vshll.u32 %v3958_v19, 16  ;;  %v4139_v18 = vld [vmem:[%s3884_s14 + $0x4] sm:$0xf]  ;;  %v384_v34 = vld [vmem:[%s3884_s14 + $0x10] sm:$0xf] }
  0x78   : > { %v1002_v31 = vor.u32 %v1000_v27, %v3954_v17  ;;  %v1046_v3 = vrot.slane %v4009_v55, 4  ;;  %v1034_v41 = vshll.u32 %v3948_v13, 16  ;;  %v1085_v50 = vshll.u32 %v3982_v36, 16 }
  0x79   : > { %v1157_v57 = vrot.slane %v4088_v63, 4  ;;  %v1053_v19 = vor.u32 %v1051_v38, %v4001_v48  ;;  %v1029_v33 = vrot.slane %v3996_v43, 4  ;;  %v1068_v37 = vshll.u32 %v3969_v26, 16  ;;  %v4207_v38 = vld [vmem:[%s3884_s14 + $0x8] sm:$0xf] }
  0x7a   : > { %1192 = vrot.lane.b32.xlu1 %v987_v28, %s3696_s28  ;;  %1190 = vrot.lane.b32.xlu0 %v3994_v42, %s3696_s28  ;;  %v4116_v13 = vor.u32 %v1145_v10, %v4092_v29  ;;  %v1036_v36 = vor.u32 %v1034_v41, %v3986_v39  ;;  %v1080_v11 = vrot.slane %v4043_v14, 4  ;;  %v1087_v28 = vor.u32 %v1085_v50, %v4039_v45  ;;  %v4218_v50 = vld [vmem:[%s3884_s14 + $0xc] sm:$0xf] }
  0x7b   : > { %v4123_v42 = vsel %vm3901_vm2, %v1012_v30, %v1019_v56  ;;  %v1063_v55 = vrot.slane %v4037_v9, 4  ;;  %v1070_v15 = vor.u32 %v1068_v37, %v4019_v62  ;;  %v1119_v26 = vshll.u32 %v4013_v59, 16  ;;  %v4383_v62 = vld [vmem:[%s3884_s14 + $0x34] sm:$0xf] }
  0x7c   : > { %v4130_v43 = vsel %vm3901_vm2, %v995_v16, %v1002_v31  ;;  %v4134_v14 = vsel %vm3901_vm2, %v1046_v3, %v1053_v19  ;;  %v1114_v52 = vrot.slane %v4065_v49, 4  ;;  %v1102_v10 = vshll.u32 %v3999_v47, 16 }
  0x7d   : > { %v4148_v59 = vsel %vm3901_vm2, %v1029_v33, %v1036_v36  ;;  %v1121_v9 = vor.u32 %v1119_v26, %v4058_v35  ;;  %v1097_v30 = vrot.slane %v4051_v25, 4  ;;  %v1153_v49 = vshll.u32 %v4047_v23, 16 }
  0x7e   : > { %1198 = vrot.lane.b32.xlu1 %v1004_v32, %s3696_s28  ;;  %1194 = vrot.lane.b32.xlu0 %v4006_v53, %s3696_s28  ;;  %v4155_v47 = vsel %vm3901_vm2, %v1080_v11, %v1087_v28  ;;  %v4158_v17 = vor.u32 %v1102_v10, %v4049_v24  ;;  %vm327_vm3 = vcmask 286720   ;;  %v4161_v32 = vld [vmem:[%s3884_s14] sm:$0xf]  ;;  %v4165_v53 = vsel %vm3901_vm2, %v1063_v55, %v1070_v15  ;;  %v385_v10 = vld [vmem:[%s3884_s14 + $0x14] sm:$0xf] }
  0x7f   : > { %v1148_v27 = vrot.slane %v4092_v29, 4  ;;  %v1131_v56 = vrot.slane %v4070_v20, 4  ;;  %v3697_v16 = vmov 0   ;;  %v424_v23 = vshrl.u32 %v4139_v18, 16 }
  0x80   : > { %331 = vst.msk [vmem:[#allocation2 + $0x14] sm:$0x1] %vm327_vm3, %v3697_v16  ;;  %328 = vst.msk [vmem:[#allocation2 + $0x8] sm:$0x1] %vm327_vm3, %v3697_v16  ;;  %v4211_v31 = vsel %vm3901_vm2, %v1114_v52, %v1121_v9  ;;  %v4214_v3 = vor.u32 %v1153_v49, %v4088_v63  ;;  %v1136_v41 = vshll.u32 %v4032_v7, 16  ;;  %vm324_vm4 = vcmask 289792  }
  0x81   : > { %334 = vst.msk [vmem:[#allocation2 + $0x20] sm:$0x1] %vm327_vm3, %v3697_v16  ;;  %337 = vst.msk [vmem:[#allocation2 + $0x2c] sm:$0x1] %vm327_vm3, %v3697_v16  ;;  %v4225_v19 = vrot.slane %v424_v23, 7  ;;  %vm744_vm5 = vcmask 24576  }
  0x82   : > { %340 = vst.msk [vmem:[#allocation2 + $0x38] sm:$0x1] %vm327_vm3, %v3697_v16  ;;  %343 = vst.msk [vmem:[#allocation2 + $0x44] sm:$0x1] %vm327_vm3, %v3697_v16  ;;  %1204 = vrot.lane.b32.xlu1 %v1021_v54, %s3696_s28  ;;  %1200 = vrot.lane.b32.xlu0 %v4016_v60, %s3696_s28  ;;  %v416_v33 = vshrl.u32 %v4161_v32, 16  ;;  %v419_v37 = vshll.u32 %v4161_v32, 16  ;;  %v4307_v54 = vsel %vm3901_vm2, %v1097_v30, %v4158_v17 }
  0x83   : > { %346 = vst.msk [vmem:[#allocation2 + $0x50] sm:$0x1] %vm327_vm3, %v3697_v16  ;;  %349 = vst.msk [vmem:[#allocation2 + $0x5c] sm:$0x1] %vm327_vm3, %v3697_v16  ;;  %vm736_vm6 = vcmask 27648   ;;  %v433_v60 = vshrl.u32 %v4207_v38, 16  ;;  %v4331_v32 = vor.u32 %v1136_v41, %v4068_v51 }
  0x84   : > { %352 = vst.msk [vmem:[#allocation2 + $0x68] sm:$0x1] %vm327_vm3, %v3697_v16  ;;  %355 = vst.msk [vmem:[#allocation2 + $0x74] sm:$0x1] %vm327_vm3, %v3697_v16  ;;  %vm737_vm7 = vsmask.f32 7938 }
  0x85   : > { %358 = vst.msk [vmem:[#allocation2 + $0x80] sm:$0x1] %vm327_vm3, %v3697_v16  ;;  %361 = vst.msk [vmem:[#allocation2 + $0x8c] sm:$0x1] %vm327_vm3, %v3697_v16  ;;  %v431_v36 = vrot.slane %v4225_v19, 4  ;;  %v418_v11 = vrot.slane %v416_v33, 7 }
  0x86   : > { %364 = vst.msk [vmem:[#allocation2 + $0x98] sm:$0x1] %vm327_vm3, %v3697_v16  ;;  %367 = vst.msk [vmem:[#allocation2 + $0xa4] sm:$0x1] %vm327_vm3, %v3697_v16  ;;  %v436_v28 = vshll.u32 %v4207_v38, 16  ;;  %v427_v55 = vshll.u32 %v4139_v18, 16  ;;  %1210 = vrot.lane.b32.xlu1 %v1038_v61, %s3696_s28  ;;  %1206 = vrot.lane.b32.xlu0 %v4027_v2, %s3696_s28 }
  0x87   : > { %370 = vst.msk [vmem:[#allocation2 + $0xb0] sm:$0x1] %vm327_vm3, %v3697_v16  ;;  %373 = vst.msk [vmem:[#allocation2 + $0xbc] sm:$0x1] %vm327_vm3, %v3697_v16  ;;  %v435_v25 = vrot.slane %v433_v60, 7  ;;  %v441_v26 = vshrl.u32 %v4218_v50, 16  ;;  %v421_v18 = vor.u32 %v419_v37, %v418_v11 }
  0x88   : > { %376 = vst.msk [vmem:[#allocation2 + $0xc8] sm:$0x1] %vm327_vm3, %v3697_v16  ;;  %379 = vst.msk [vmem:[#allocation2 + $0xd4] sm:$0x1] %vm327_vm3, %v3697_v16  ;;  %v444_v52 = vshll.u32 %v4218_v50, 16  ;;  %v450_v9 = vshrl.u32 %v384_v34, 16  ;;  %v429_v49 = vor.u32 %v427_v55, %v4225_v19 }
  0x89   : > { %329 = vst.msk [vmem:[#allocation2 + $0xc] sm:$0xf] %vm324_vm4, %v3697_v16  ;;  %325 = vst.msk [vmem:[#allocation2] sm:$0xf] %vm324_vm4, %v3697_v16  ;;  %v422_v30 = vrot.slane %v418_v11, 4  ;;  %v453_v17 = vshll.u32 %v384_v34, 16  ;;  %v438_v61 = vor.u32 %v436_v28, %v435_v25  ;;  %v4350_v34 = vsel %vm3901_vm2, %v1148_v27, %v4214_v3 }
  0x8a   : > { %326 = vst.msk [vmem:[#allocation2 + $0x4] sm:$0xf] %vm324_vm4, %v3697_v16  ;;  %330 = vst.msk [vmem:[#allocation2 + $0x10] sm:$0xf] %vm324_vm4, %v3697_v16  ;;  %v443_v2 = vrot.slane %v441_v26, 7  ;;  %v439_v23 = vrot.slane %v435_v25, 4  ;;  %1216 = vrot.lane.b32.xlu1 %v1055_v4, %s3696_s28  ;;  %1212 = vrot.lane.b32.xlu0 %v4035_v8, %s3696_s28 }
  0x8b   : > { %332 = vst.msk [vmem:[#allocation2 + $0x18] sm:$0xf] %vm324_vm4, %v3697_v16  ;;  %333 = vst.msk [vmem:[#allocation2 + $0x1c] sm:$0xf] %vm324_vm4, %v3697_v16  ;;  %v386_v38 = vld [vmem:[%s3884_s14 + $0x18] sm:$0xf]  ;;  %v430_v19 = vsel %vm3901_vm2, %v422_v30, %v429_v49 }
  0x8c   : > { %335 = vst.msk [vmem:[#allocation2 + $0x24] sm:$0xf] %vm324_vm4, %v3697_v16  ;;  %336 = vst.msk [vmem:[#allocation2 + $0x28] sm:$0xf] %vm324_vm4, %v3697_v16  ;;  %v753_v7 = vld [vmem:[#allocation2 + $0x20] sm:$0x1]  ;;  %v446_v28 = vor.u32 %v444_v52, %v443_v2 }
  0x8d   : > { %338 = vst.msk [vmem:[#allocation2 + $0x30] sm:$0xf] %vm324_vm4, %v3697_v16  ;;  %339 = vst.msk [vmem:[#allocation2 + $0x34] sm:$0xf] %vm324_vm4, %v3697_v16  ;;  %v452_v41 = vrot.slane %v450_v9, 7  ;;  %v458_v33 = vshrl.u32 %v385_v10, 16 }
  0x8e   : > { %341 = vst.msk [vmem:[#allocation2 + $0x3c] sm:$0xf] %vm324_vm4, %v3697_v16  ;;  %342 = vst.msk [vmem:[#allocation2 + $0x40] sm:$0xf] %vm324_vm4, %v3697_v16  ;;  %v387_v37 = vld [vmem:[%s3884_s14 + $0x1c] sm:$0xf]  ;;  %v447_v4 = vsel %vm3901_vm2, %v439_v23, %v446_v28  ;;  %1222 = vrot.lane.b32.xlu1 %v1072_v12, %s3696_s28  ;;  %1218 = vrot.lane.b32.xlu0 %v4062_v44, %s3696_s28 }
  0x8f   : > { %344 = vst.msk [vmem:[#allocation2 + $0x48] sm:$0xf] %vm324_vm4, %v3697_v16  ;;  %345 = vst.msk [vmem:[#allocation2 + $0x4c] sm:$0xf] %vm324_vm4, %v3697_v16  ;;  %v461_v55 = vshll.u32 %v385_v10, 16  ;;  %v455_v3 = vor.u32 %v453_v17, %v452_v41  ;;  %v456_v25 = vrot.slane %v452_v41, 4 }
  0x90   : > { %347 = vst.msk [vmem:[#allocation2 + $0x54] sm:$0xf] %vm324_vm4, %v3697_v16  ;;  %348 = vst.msk [vmem:[#allocation2 + $0x58] sm:$0xf] %vm324_vm4, %v3697_v16  ;;  %v739_v60 = vld [vmem:[#allocation2 + $0xc] sm:$0xf] }
  0x91   : > { %350 = vst.msk [vmem:[#allocation2 + $0x60] sm:$0xf] %vm324_vm4, %v3697_v16  ;;  %351 = vst.msk [vmem:[#allocation2 + $0x64] sm:$0xf] %vm324_vm4, %v3697_v16  ;;  %v388_v52 = vld [vmem:[%s3884_s14 + $0x20] sm:$0xf] }
  0x92   : > { %353 = vst.msk [vmem:[#allocation2 + $0x6c] sm:$0xf] %vm324_vm4, %v3697_v16  ;;  %354 = vst.msk [vmem:[#allocation2 + $0x70] sm:$0xf] %vm324_vm4, %v3697_v16  ;;  %v749_v11 = vld [vmem:[#allocation2 + $0x18] sm:$0xf]  ;;  %1228 = vrot.lane.b32.xlu1 %v1089_v46, %s3696_s28  ;;  %1224 = vrot.lane.b32.xlu0 %v4073_v58, %s3696_s28 }
  0x93   : > { %356 = vst.msk [vmem:[#allocation2 + $0x78] sm:$0xf] %vm324_vm4, %v3697_v16  ;;  %357 = vst.msk [vmem:[#allocation2 + $0x7c] sm:$0xf] %vm324_vm4, %v3697_v16  ;;  %v756_v26 = vld [vmem:[#allocation2 + $0x24] sm:$0xf] }
  0x94   : > { %359 = vst.msk [vmem:[#allocation2 + $0x84] sm:$0xf] %vm324_vm4, %v3697_v16  ;;  %360 = vst.msk [vmem:[#allocation2 + $0x88] sm:$0xf] %vm324_vm4, %v3697_v16  ;;  %v460_v8 = vrot.slane %v458_v33, 7  ;;  %v467_v10 = vshrl.u32 %v386_v38, 16 }
  0x95   : > { %362 = vst.msk [vmem:[#allocation2 + $0x90] sm:$0xf] %vm324_vm4, %v3697_v16  ;;  %363 = vst.msk [vmem:[#allocation2 + $0x94] sm:$0xf] %vm324_vm4, %v3697_v16  ;;  %v389_v9 = vld [vmem:[%s3884_s14 + $0x24] sm:$0xf] }
  0x96   : > { %365 = vst.msk [vmem:[#allocation2 + $0x9c] sm:$0xf] %vm324_vm4, %v3697_v16  ;;  %366 = vst.msk [vmem:[#allocation2 + $0xa0] sm:$0xf] %vm324_vm4, %v3697_v16  ;;  %v470_v30 = vshll.u32 %v386_v38, 16  ;;  %v475_v17 = vshrl.u32 %v387_v37, 16  ;;  %1234 = vrot.lane.b32.xlu1 %v1106_v0, %s3696_s28  ;;  %1230 = vrot.lane.b32.xlu0 %v4077_v1, %s3696_s28 }
  0x97   : > { %368 = vst.msk [vmem:[#allocation2 + $0xa8] sm:$0xf] %vm324_vm4, %v3697_v16  ;;  %369 = vst.msk [vmem:[#allocation2 + $0xac] sm:$0xf] %vm324_vm4, %v3697_v16  ;;  %v760_v49 = vld [vmem:[#allocation2 + $0x2c] sm:$0x1] }
  0x98   : > { %371 = vst.msk [vmem:[#allocation2 + $0xb4] sm:$0xf] %vm324_vm4, %v3697_v16  ;;  %372 = vst.msk [vmem:[#allocation2 + $0xb8] sm:$0xf] %vm324_vm4, %v3697_v16  ;;  %v469_v23 = vrot.slane %v467_v10, 7  ;;  %v477_v38 = vrot.slane %v475_v17, 7 }
  0x99   : > { %374 = vst.msk [vmem:[#allocation2 + $0xc0] sm:$0xf] %vm324_vm4, %v3697_v16  ;;  %375 = vst.msk [vmem:[#allocation2 + $0xc4] sm:$0xf] %vm324_vm4, %v3697_v16  ;;  %v763_v41 = vld [vmem:[#allocation2 + $0x30] sm:$0xf] }
  0x9a   : > { %377 = vst.msk [vmem:[#allocation2 + $0xcc] sm:$0xf] %vm324_vm4, %v3697_v16  ;;  %378 = vst.msk [vmem:[#allocation2 + $0xd0] sm:$0xf] %vm324_vm4, %v3697_v16  ;;  %v746_v16 = vld [vmem:[#allocation2 + $0x14] sm:$0x1]  ;;  %1240 = vrot.lane.b32.xlu1 %v1123_v5, %s3696_s28  ;;  %1236 = vrot.lane.b32.xlu0 %v4086_v6, %s3696_s28 }
  0x9b   : > { %vm4315_vm8 = vmand %vm744_vm5, %vm412_vm0  ;;  %743 = vst.msk [vmem:[#allocation2 + $0x10] sm:$0xf] %vm736_vm6, %v430_v19  ;;  %v484_v19 = vshrl.u32 %v388_v52, 16  ;;  %v487_v33 = vshll.u32 %v388_v52, 16  ;;  %v482_v12 = vrot.slane %v477_v38, 4  ;;  %vm1309_vm10 = vcmask 286752  }
  0x9c   : > { %vm4335_vm9 = vmand %vm736_vm6, %vm737_vm7  ;;  %v747_v50 = vsel %vm4315_vm8, %v431_v36, %v746_v16  ;;  %v448_v36 = vrot.slane %v443_v2, 4  ;;  %752 = vst.msk [vmem:[#allocation2 + $0x1c] sm:$0xf] %vm736_vm6, %v447_v4  ;;  %v478_v16 = vshll.u32 %v387_v37, 16  ;;  %v463_v2 = vor.u32 %v461_v55, %v460_v8  ;;  %v767_v55 = vld [vmem:[#allocation2 + $0x38] sm:$0x1] }
  0x9d   : > { %748 = vst [vmem:[#allocation2 + $0x14] sm:$0x1] %v747_v50  ;;  %v740_v29 = vsel %vm4335_vm9, %v421_v18, %v739_v60  ;;  %v750_v27 = vsel %vm4335_vm9, %v438_v61, %v749_v11  ;;  %v757_v18 = vsel %vm4335_vm9, %v455_v3, %v756_v26  ;;  %v390_v61 = vld [vmem:[%s3884_s14 + $0x28] sm:$0xf]  ;;  %v465_v50 = vrot.slane %v460_v8, 4  ;;  %vm4667_vm12 = vmand %vm1309_vm10, %vm412_vm0 }
  0x9e   : > { %741 = vst [vmem:[#allocation2 + $0xc] sm:$0xf] %v740_v29  ;;  %751 = vst [vmem:[#allocation2 + $0x18] sm:$0xf] %v750_v27  ;;  %v754_v48 = vsel %vm4315_vm8, %v448_v36, %v753_v7  ;;  %v391_v7 = vld [vmem:[%s3884_s14 + $0x2c] sm:$0xf]  ;;  %v464_v11 = vsel %vm3901_vm2, %v456_v25, %v463_v2  ;;  %v472_v36 = vor.u32 %v470_v30, %v469_v23  ;;  %1246 = vrot.lane.b32.xlu1 %v1140_v21, %s3696_s28 }
  0x9f   : > { %755 = vst [vmem:[#allocation2 + $0x20] sm:$0x1] %v754_v48  ;;  %758 = vst [vmem:[#allocation2 + $0x24] sm:$0xf] %v757_v18  ;;  %v492_v37 = vshrl.u32 %v389_v9, 16  ;;  %v495_v60 = vshll.u32 %v389_v9, 16  ;;  %v761_v28 = vsel %vm4315_vm8, %v465_v50, %v760_v49  ;;  %v480_v44 = vor.u32 %v478_v16, %v477_v38  ;;  %1242 = vrot.lane.b32.xlu0 %v4097_v40, %s3696_s28 }
  0xa0   : > { %v473_v29 = vrot.slane %v469_v23, 4  ;;  %759 = vst.msk [vmem:[#allocation2 + $0x28] sm:$0xf] %vm736_vm6, %v464_v11  ;;  %762 = vst [vmem:[#allocation2 + $0x2c] sm:$0x1] %v761_v28  ;;  %v486_v27 = vrot.slane %v484_v19, 7  ;;  %v764_v25 = vsel %vm4335_vm9, %v472_v36, %v763_v41  ;;  %v768_v10 = vsel %vm4315_vm8, %v482_v12, %v767_v55 }
  0xa1   : > { %v494_v3 = vrot.slane %v492_v37, 7  ;;  %v392_v26 = vld [vmem:[%s3884_s14 + $0x30] sm:$0xf]  ;;  %v770_v52 = vld [vmem:[#allocation2 + $0x3c] sm:$0xf]  ;;  %v501_v48 = vshrl.u32 %v390_v61, 16 }
  0xa2   : > { %v504_v4 = vshll.u32 %v390_v61, 16  ;;  %v509_v8 = vshrl.u32 %v391_v7, 16  ;;  %765 = vst [vmem:[#allocation2 + $0x30] sm:$0xf] %v764_v25  ;;  %v481_v9 = vsel %vm3901_vm2, %v473_v29, %v480_v44  ;;  %v489_v18 = vor.u32 %v487_v33, %v486_v27  ;;  %v774_v49 = vld [vmem:[#allocation2 + $0x44] sm:$0x1]  ;;  %1252 = vrot.lane.b32.xlu1 %v1157_v57, %s3696_s28 }
  0xa3   : > { %v490_v30 = vrot.slane %v486_v27, 4  ;;  %v4399_v17 = vld [vmem:[%s3884_s14 + $0x3c] sm:$0xf]  ;;  %769 = vst [vmem:[#allocation2 + $0x38] sm:$0x1] %v768_v10  ;;  %v497_v45 = vor.u32 %v495_v60, %v494_v3  ;;  %v499_v46 = vrot.slane %v494_v3, 4  ;;  %1248 = vrot.lane.b32.xlu0 %v4116_v13, %s3696_s28 }
  0xa4   : > { %766 = vst.msk [vmem:[#allocation2 + $0x34] sm:$0xf] %vm736_vm6, %v481_v9  ;;  %v503_v58 = vrot.slane %v501_v48, 7  ;;  %v777_v16 = vld [vmem:[#allocation2 + $0x48] sm:$0xf]  ;;  %v511_v61 = vrot.slane %v509_v8, 7  ;;  %v771_v50 = vsel %vm4335_vm9, %v489_v18, %v770_v52 }
  0xa5   : > { %v394_v2 = vld [vmem:[%s3884_s14 + $0x38] sm:$0xf]  ;;  %v781_v23 = vld [vmem:[#allocation2 + $0x50] sm:$0x1]  ;;  %v512_v19 = vshll.u32 %v391_v7, 16  ;;  %v526_v41 = vshrl.u32 %v4383_v62, 16  ;;  %v498_v33 = vsel %vm3901_vm2, %v490_v30, %v497_v45  ;;  %v775_v60 = vsel %vm4315_vm8, %v499_v46, %v774_v49 }
  0xa6   : > { %v518_v38 = vshrl.u32 %v392_v26, 16  ;;  %772 = vst [vmem:[#allocation2 + $0x3c] sm:$0xf] %v771_v50  ;;  %v506_v37 = vor.u32 %v504_v4, %v503_v58  ;;  %v516_v11 = vrot.slane %v511_v61, 4  ;;  %v4411_v36 = vld [vmem:[%s3884_s14 + $0x44] sm:$0xf]  ;;  %1202 = vrot.lane.b32.xlu1 %v4123_v42, %s3696_s28 }
  0xa7   : > { %v396_v28 = vld [vmem:[%s3884_s14 + $0x40] sm:$0xf]  ;;  %773 = vst.msk [vmem:[#allocation2 + $0x40] sm:$0xf] %vm736_vm6, %v498_v33  ;;  %776 = vst [vmem:[#allocation2 + $0x44] sm:$0x1] %v775_v60  ;;  %v514_v55 = vor.u32 %v512_v19, %v511_v61  ;;  %1196 = vrot.lane.b32.xlu0 %v4130_v43, %s3696_s28 }
  0xa8   : > { %v507_v7 = vrot.slane %v503_v58, 4  ;;  %v4420_v29 = vrot.slane %v526_v41, 7  ;;  %v4422_v12 = vrot.slane %v518_v38, 7  ;;  %v4425_v44 = vld [vmem:[%s3884_s14 + $0x4c] sm:$0xf]  ;;  %v778_v27 = vsel %vm4335_vm9, %v506_v37, %v777_v16 }
  0xa9   : > { %v782_v24 = vsel %vm4315_vm8, %v516_v11, %v781_v23  ;;  %v788_v0 = vld [vmem:[#allocation2 + $0x5c] sm:$0x1]  ;;  %v521_v1 = vshll.u32 %v392_v26, 16  ;;  %v543_v3 = vshrl.u32 %v4399_v17, 16  ;;  %v398_v25 = vld [vmem:[%s3884_s14 + $0x48] sm:$0xf] }
  0xaa   : > { %779 = vst [vmem:[#allocation2 + $0x48] sm:$0xf] %v778_v27  ;;  %783 = vst [vmem:[#allocation2 + $0x50] sm:$0x1] %v782_v24  ;;  %v515_v52 = vsel %vm3901_vm2, %v507_v7, %v514_v55  ;;  %v533_v48 = vrot.slane %v4420_v29, 4  ;;  %v535_v8 = vshrl.u32 %v394_v2, 16  ;;  %1214 = vrot.lane.b32.xlu1 %v4134_v14, %s3696_s28 }
  0xab   : > { %v784_v4 = vld [vmem:[#allocation2 + $0x54] sm:$0xf]  ;;  %v538_v10 = vshll.u32 %v394_v2, 16  ;;  %780 = vst.msk [vmem:[#allocation2 + $0x4c] sm:$0xf] %vm736_vm6, %v515_v52  ;;  %v523_v26 = vor.u32 %v521_v1, %v4422_v12  ;;  %v4441_v18 = vrot.slane %v543_v3, 7  ;;  %1208 = vrot.lane.b32.xlu0 %v4148_v59, %s3696_s28 }
  0xac   : > { %v4437_v9 = vld [vmem:[%s3884_s14 + $0x54] sm:$0xf]  ;;  %v795_v30 = vld [vmem:[#allocation2 + $0x68] sm:$0x1]  ;;  %v560_v49 = vshrl.u32 %v4411_v36, 16  ;;  %v552_v45 = vshrl.u32 %v396_v28, 16  ;;  %v789_v58 = vsel %vm4315_vm8, %v533_v48, %v788_v0 }
  0xad   : > { %v400_v46 = vld [vmem:[%s3884_s14 + $0x50] sm:$0xf]  ;;  %v4452_v16 = vrot.slane %v535_v8, 7  ;;  %v791_v61 = vld [vmem:[#allocation2 + $0x60] sm:$0xf]  ;;  %v555_v2 = vshll.u32 %v396_v28, 16  ;;  %v785_v23 = vsel %vm4335_vm9, %v523_v26, %v784_v4 }
  0xae   : > { %v577_v50 = vshrl.u32 %v4425_v44, 16  ;;  %790 = vst [vmem:[#allocation2 + $0x5c] sm:$0x1] %v789_v58  ;;  %v550_v35 = vrot.slane %v4441_v18, 4  ;;  %v4458_v5 = vrot.slane %v560_v49, 7  ;;  %v4460_v19 = vrot.slane %v552_v45, 7  ;;  %1226 = vrot.lane.b32.xlu1 %v4155_v47, %s3696_s28 }
  0xaf   : > { %v802_v6 = vld [vmem:[#allocation2 + $0x74] sm:$0x1]  ;;  %v4463_v41 = vld [vmem:[%s3884_s14 + $0x5c] sm:$0xf]  ;;  %786 = vst [vmem:[#allocation2 + $0x54] sm:$0xf] %v785_v23  ;;  %v540_v38 = vor.u32 %v538_v10, %v4452_v16  ;;  %1220 = vrot.lane.b32.xlu0 %v4165_v53, %s3696_s28 }
  0xb0   : > { %v798_v33 = vld [vmem:[#allocation2 + $0x6c] sm:$0xf]  ;;  %v4466_v37 = vrot.slane %v577_v50, 7  ;;  %v569_v60 = vshrl.u32 %v398_v25, 16  ;;  %v572_v11 = vshll.u32 %v398_v25, 16  ;;  %v796_v7 = vsel %vm4315_vm8, %v550_v35, %v795_v30 }
  0xb1   : > { %v402_v28 = vld [vmem:[%s3884_s14 + $0x58] sm:$0xf]  ;;  %v567_v55 = vrot.slane %v4458_v5, 4  ;;  %v557_v27 = vor.u32 %v555_v2, %v4460_v19  ;;  %v809_v24 = vld [vmem:[#allocation2 + $0x80] sm:$0x1]  ;;  %v594_v0 = vshrl.u32 %v4437_v9, 16  ;;  %v792_v3 = vsel %vm4335_vm9, %v540_v38, %v791_v61 }
  0xb2   : > { %v4475_v1 = vld [vmem:[%s3884_s14 + $0x64] sm:$0xf]  ;;  %797 = vst [vmem:[#allocation2 + $0x68] sm:$0x1] %v796_v7  ;;  %v584_v25 = vrot.slane %v4466_v37, 4  ;;  %v4485_v52 = vrot.slane %v569_v60, 7  ;;  %1238 = vrot.lane.b32.xlu1 %v4211_v31, %s3696_s28 }
  0xb3   : > { %v586_v48 = vshrl.u32 %v400_v46, 16  ;;  %v404_v4 = vld [vmem:[%s3884_s14 + $0x60] sm:$0xf]  ;;  %793 = vst [vmem:[#allocation2 + $0x60] sm:$0xf] %v792_v3  ;;  %v803_v8 = vsel %vm4315_vm8, %v567_v55, %v802_v6  ;;  %v799_v51 = vsel %vm4335_vm9, %v557_v27, %v798_v33  ;;  %v4492_v40 = vrot.slane %v594_v0, 7  ;;  %1232 = vrot.lane.b32.xlu0 %v4307_v54, %s3696_s28 }
  0xb4   : > { %v805_v21 = vld [vmem:[#allocation2 + $0x78] sm:$0xf]  ;;  %v589_v10 = vshll.u32 %v400_v46, 16  ;;  %v4495_v26 = vld [vmem:[%s3884_s14 + $0x6c] sm:$0xf]  ;;  %v810_v30 = vsel %vm4315_vm8, %v584_v25, %v809_v24  ;;  %v574_v49 = vor.u32 %v572_v11, %v4485_v52  ;;  %v611_v61 = vshrl.u32 %v4463_v41, 16 }
  0xb5   : > { %804 = vst [vmem:[#allocation2 + $0x74] sm:$0x1] %v803_v8  ;;  %800 = vst [vmem:[#allocation2 + $0x6c] sm:$0xf] %v799_v51  ;;  %v816_v45 = vld [vmem:[#allocation2 + $0x8c] sm:$0x1] }
  0xb6   : > { %v4500_v58 = vrot.slane %v586_v48, 7  ;;  %v406_v2 = vld [vmem:[%s3884_s14 + $0x68] sm:$0xf]  ;;  %811 = vst [vmem:[#allocation2 + $0x80] sm:$0x1] %v810_v30  ;;  %v601_v46 = vrot.slane %v4492_v40, 4  ;;  %v806_v33 = vsel %vm4335_vm9, %v574_v49, %v805_v21  ;;  %1250 = vrot.lane.b32.xlu1 %v4350_v34, %s3696_s28 }
  0xb7   : > { %v812_v50 = vld [vmem:[#allocation2 + $0x84] sm:$0xf]  ;;  %v603_v23 = vshrl.u32 %v402_v28, 16  ;;  %v606_v35 = vshll.u32 %v402_v28, 16  ;;  %v628_v6 = vshrl.u32 %v4475_v1, 16  ;;  %v4517_v11 = vrot.slane %v611_v61, 7 }
  0xb8   : > { %v4507_v38 = vld [vmem:[%s3884_s14 + $0x74] sm:$0xf]  ;;  %v591_v60 = vor.u32 %v589_v10, %v4500_v58  ;;  %v823_v7 = vld [vmem:[#allocation2 + $0x98] sm:$0x1]  ;;  %v620_v28 = vshrl.u32 %v404_v4, 16  ;;  %v817_v27 = vsel %vm4315_vm8, %v601_v46, %v816_v45  ;;  %v623_v13 = vshll.u32 %v404_v4, 16 }
  0xb9   : > { %v408_v55 = vld [vmem:[%s3884_s14 + $0x70] sm:$0xf]  ;;  %807 = vst [vmem:[#allocation2 + $0x78] sm:$0xf] %v806_v33  ;;  %v4522_v24 = vrot.slane %v603_v23, 7  ;;  %v4524_v57 = vrot.slane %v628_v6, 7 }
  0xba   : > { %v819_v63 = vld [vmem:[#allocation2 + $0x90] sm:$0xf]  ;;  %818 = vst [vmem:[#allocation2 + $0x8c] sm:$0x1] %v817_v27  ;;  %v813_v0 = vsel %vm4335_vm9, %v591_v60, %v812_v50  ;;  %v618_v3 = vrot.slane %v4517_v11, 4  ;;  %v4529_v48 = vrot.slane %v620_v28, 7 }
  0xbb   : > { %v830_v25 = vld [vmem:[#allocation2 + $0xa4] sm:$0x1]  ;;  %v645_v8 = vshrl.u32 %v4495_v26, 16  ;;  %814 = vst [vmem:[#allocation2 + $0x84] sm:$0xf] %v813_v0  ;;  %v608_v51 = vor.u32 %v606_v35, %v4522_v24  ;;  %v635_v21 = vrot.slane %v4524_v57, 4 }
  0xbc   : > { %v826_v10 = vld [vmem:[#allocation2 + $0x9c] sm:$0xf]  ;;  %v637_v4 = vshrl.u32 %v406_v2, 16  ;;  %v640_v30 = vshll.u32 %v406_v2, 16  ;;  %v824_v49 = vsel %vm4315_vm8, %v618_v3, %v823_v7  ;;  %v625_v45 = vor.u32 %v623_v13, %v4529_v48  ;;  %v410_v23 = vld [vmem:[%s3884_s14 + $0x78] sm:$0xf] }
  0xbd   : > { %v4541_v61 = vrot.slane %v645_v8, 7  ;;  %v662_v46 = vshrl.u32 %v4507_v38, 16  ;;  %v4545_v50 = vld [vmem:[%s3884_s14 + $0x7c] sm:$0xf]  ;;  %825 = vst [vmem:[#allocation2 + $0x98] sm:$0x1] %v824_v49  ;;  %v820_v2 = vsel %vm4335_vm9, %v608_v51, %v819_v63  ;;  %v831_v42 = vsel %vm4315_vm8, %v635_v21, %v830_v25 }
  0xbe   : > { %v837_v43 = vld [vmem:[#allocation2 + $0xb0] sm:$0x1]  ;;  %v4552_v35 = vrot.slane %v637_v4, 7  ;;  %v654_v6 = vshrl.u32 %v408_v55, 16  ;;  %821 = vst [vmem:[#allocation2 + $0x90] sm:$0xf] %v820_v2  ;;  %v827_v33 = vsel %vm4335_vm9, %v625_v45, %v826_v10 }
  0xbf   : > { %832 = vst [vmem:[#allocation2 + $0xa4] sm:$0x1] %v831_v42  ;;  %v652_v60 = vrot.slane %v4541_v61, 4  ;;  %v833_v7 = vld [vmem:[#allocation2 + $0xa8] sm:$0xf]  ;;  %v4557_v28 = vrot.slane %v662_v46, 7 }
  0xc0   : > { %v657_v27 = vshll.u32 %v408_v55, 16  ;;  %828 = vst [vmem:[#allocation2 + $0x9c] sm:$0xf] %v827_v33  ;;  %v642_v63 = vor.u32 %v640_v30, %v4552_v35  ;;  %v844_v13 = vld [vmem:[#allocation2 + $0xbc] sm:$0x1]  ;;  %v4560_v0 = vrot.slane %v654_v6, 7  ;;  %v4572_v55 = vsel %vm3901_vm2, %v1131_v56, %v4331_v32 }
  0xc1   : > { %v679_v3 = vshrl.u32 %v4545_v50, 16  ;;  %v671_v25 = vshrl.u32 %v410_v23, 16  ;;  %v838_v8 = vsel %vm4315_vm8, %v652_v60, %v837_v43  ;;  %v669_v51 = vrot.slane %v4557_v28, 4  ;;  %v840_v21 = vld [vmem:[#allocation2 + $0xb4] sm:$0xf]  ;;  %1244 = vrot.lane.b32.xlu0 %v4572_v55, %s3696_s28 }
  0xc2   : > { %v674_v10 = vshll.u32 %v410_v23, 16  ;;  %839 = vst [vmem:[#allocation2 + $0xb0] sm:$0x1] %v838_v8  ;;  %v834_v14 = vsel %vm4335_vm9, %v642_v63, %v833_v7  ;;  %v659_v59 = vor.u32 %v657_v27, %v4560_v0  ;;  %v851_v20 = vld [vmem:[#allocation2 + $0xc8] sm:$0x1]  ;;  %v541_v49 = vrot.slane %v4452_v16, 4 }
  0xc3   : > { %v4580_v4 = vrot.slane %v679_v3, 7  ;;  %v4582_v30 = vrot.slane %v671_v25, 7  ;;  %835 = vst [vmem:[#allocation2 + $0xa8] sm:$0xf] %v834_v14  ;;  %v845_v56 = vsel %vm4315_vm8, %v669_v51, %v844_v13  ;;  %v847_v32 = vld [vmem:[#allocation2 + $0xc0] sm:$0xf] }
  0xc4   : > { %v546_v45 = vshll.u32 %v4399_v17, 16  ;;  %v524_v46 = vrot.slane %v4422_v12, 4  ;;  %846 = vst [vmem:[#allocation2 + $0xbc] sm:$0x1] %v845_v56  ;;  %v841_v23 = vsel %vm4335_vm9, %v659_v59, %v840_v21  ;;  %v529_v43 = vshll.u32 %v4383_v62, 16 }
  0xc5   : > { %v686_v2 = vrot.slane %v4580_v4, 4  ;;  %v676_v42 = vor.u32 %v674_v10, %v4582_v30  ;;  %842 = vst [vmem:[#allocation2 + $0xb4] sm:$0xf] %v841_v23  ;;  %v575_v12 = vrot.slane %v4485_v52, 4  ;;  %v580_v16 = vshll.u32 %v4425_v44, 16 }
  0xc6   : > { %v548_v17 = vor.u32 %v546_v45, %v4441_v18  ;;  %v558_v6 = vrot.slane %v4460_v19, 4  ;;  %v531_v47 = vor.u32 %v529_v43, %v4420_v29  ;;  %v563_v60 = vshll.u32 %v4411_v36, 16  ;;  %v1314_v8 = vld [vmem:[#allocation2 + $0x18] sm:$0xf]  ;;  %v1318_v14 = vld [vmem:[#allocation2 + $0x20] sm:$0x1] }
  0xc7   : > { %v852_v33 = vsel %vm4315_vm8, %v686_v2, %v851_v20  ;;  %v848_v62 = vsel %vm4335_vm9, %v676_v42, %v847_v32  ;;  %v582_v18 = vor.u32 %v580_v16, %v4466_v37  ;;  %v609_v44 = vrot.slane %v4522_v24, 4  ;;  %v1328_v45 = vld [vmem:[#allocation2 + $0x30] sm:$0xf] }
  0xc8   : > { %853 = vst [vmem:[#allocation2 + $0xc8] sm:$0x1] %v852_v33  ;;  %849 = vst [vmem:[#allocation2 + $0xc0] sm:$0xf] %v848_v62  ;;  %v549_v53 = vsel %vm3901_vm2, %v541_v49, %v548_v17  ;;  %v614_v19 = vshll.u32 %v4463_v41, 16  ;;  %v532_v15 = vsel %vm3901_vm2, %v524_v46, %v531_v47  ;;  %v565_v39 = vor.u32 %v563_v60, %v4458_v5 }
  0xc9   : > { %794 = vst.msk [vmem:[#allocation2 + $0x64] sm:$0xf] %vm736_vm6, %v549_v53  ;;  %v592_v36 = vrot.slane %v4500_v58, 4  ;;  %v597_v29 = vshll.u32 %v4437_v9, 16  ;;  %787 = vst.msk [vmem:[#allocation2 + $0x58] sm:$0xf] %vm736_vm6, %v532_v15  ;;  %v583_v41 = vsel %vm3901_vm2, %v575_v12, %v582_v18 }
  0xca   : > { %v616_v37 = vor.u32 %v614_v19, %v4517_v11  ;;  %v643_v52 = vrot.slane %v4552_v35, 4  ;;  %v648_v5 = vshll.u32 %v4495_v26, 16  ;;  %808 = vst.msk [vmem:[#allocation2 + $0x7c] sm:$0xf] %vm736_vm6, %v583_v41  ;;  %v566_v9 = vsel %vm3901_vm2, %v558_v6, %v565_v39  ;;  %v1325_v46 = vld [vmem:[#allocation2 + $0x2c] sm:$0x1] }
  0xcb   : > { %v599_v31 = vor.u32 %v597_v29, %v4492_v40  ;;  %v626_v54 = vrot.slane %v4529_v48, 4  ;;  %v631_v58 = vshll.u32 %v4475_v1, 16  ;;  %801 = vst.msk [vmem:[#allocation2 + $0x70] sm:$0xf] %vm736_vm6, %v566_v9  ;;  %v677_v26 = vrot.slane %v4582_v30, 4 }
  0xcc   : > { %v617_v11 = vsel %vm3901_vm2, %v609_v44, %v616_v37  ;;  %v650_v24 = vor.u32 %v648_v5, %v4541_v61  ;;  %v682_v35 = vshll.u32 %v4545_v50, 16  ;;  %v660_v1 = vrot.slane %v4560_v0, 4  ;;  %v1304_v0 = vld [vmem:[#allocation2 + $0xc] sm:$0xf]  ;;  %v1163_v3 = vpop.permute.xlu1 %1162  ;;  %v1159_v22 = vpop.permute.xlu0 %1158  ;;  %v1321_v30 = vld [vmem:[#allocation2 + $0x24] sm:$0xf] }
  0xcd   : > { %822 = vst.msk [vmem:[#allocation2 + $0x94] sm:$0xf] %vm736_vm6, %v617_v11  ;;  %v600_v40 = vsel %vm3901_vm2, %v592_v36, %v599_v31  ;;  %v633_v48 = vor.u32 %v631_v58, %v4524_v57  ;;  %v665_v7 = vshll.u32 %v4507_v38, 16  ;;  %vm1302_vm11 = vcmask 289824   ;;  %v1332_v17 = vld [vmem:[#allocation2 + $0x38] sm:$0x1] }
  0xce   : > { %815 = vst.msk [vmem:[#allocation2 + $0x88] sm:$0xf] %vm736_vm6, %v600_v40  ;;  %v651_v61 = vsel %vm3901_vm2, %v643_v52, %v650_v24  ;;  %v684_v50 = vor.u32 %v682_v35, %v4580_v4  ;;  %vm4673_vm13 = vmand %vm1302_vm11, %vm737_vm7  ;;  %v1335_v33 = vld [vmem:[#allocation2 + $0x3c] sm:$0xf]  ;;  %v1342_v53 = vld [vmem:[#allocation2 + $0x48] sm:$0xf] }
  0xcf   : > { %836 = vst.msk [vmem:[#allocation2 + $0xac] sm:$0xf] %vm736_vm6, %v651_v61  ;;  %v634_v57 = vsel %vm3901_vm2, %v626_v54, %v633_v48  ;;  %v667_v38 = vor.u32 %v665_v7, %v4557_v28  ;;  %v1311_v28 = vld [vmem:[#allocation2 + $0x14] sm:$0x1]  ;;  %v1305_v55 = vsel %vm4673_vm13, %v1159_v22, %v1304_v0  ;;  %v1339_v18 = vld [vmem:[#allocation2 + $0x44] sm:$0x1] }
  0xd0   : > { %829 = vst.msk [vmem:[#allocation2 + $0xa0] sm:$0xf] %vm736_vm6, %v634_v57  ;;  %v685_v34 = vsel %vm3901_vm2, %v677_v26, %v684_v50  ;;  %v1312_v25 = vsel %vm4667_vm12, %v1163_v3, %v1311_v28  ;;  %1306 = vst [vmem:[#allocation2 + $0xc] sm:$0xf] %v1305_v55  ;;  %v1165_v51 = vpop.permute.xlu1 %1164  ;;  %v1161_v21 = vpop.permute.xlu0 %1160  ;;  %v1346_v36 = vld [vmem:[#allocation2 + $0x50] sm:$0x1] }
  0xd1   : > { %850 = vst.msk [vmem:[#allocation2 + $0xc4] sm:$0xf] %vm736_vm6, %v685_v34  ;;  %v668_v27 = vsel %vm3901_vm2, %v660_v1, %v667_v38  ;;  %1313 = vst [vmem:[#allocation2 + $0x14] sm:$0x1] %v1312_v25  ;;  %v1315_v10 = vsel %vm4673_vm13, %v1165_v51, %v1314_v8  ;;  %v1353_v52 = vld [vmem:[#allocation2 + $0x5c] sm:$0x1] }
  0xd2   : > { %843 = vst.msk [vmem:[#allocation2 + $0xb8] sm:$0xf] %vm736_vm6, %v668_v27  ;;  %1316 = vst [vmem:[#allocation2 + $0x18] sm:$0xf] %v1315_v10  ;;  %v1349_v5 = vld [vmem:[#allocation2 + $0x54] sm:$0xf] }
  0xd3   : > { %1308 = vst.msk [vmem:[#allocation2 + $0x10] sm:$0xf] %vm1302_vm11, %v1161_v21  ;;  %v1360_v11 = vld [vmem:[#allocation2 + $0x68] sm:$0x1]  ;;  %v1356_v24 = vld [vmem:[#allocation2 + $0x60] sm:$0xf] }
  0xd4   : > { %v1169_v59 = vpop.permute.xlu1 %1168  ;;  %v1167_v4 = vpop.permute.xlu0 %1166  ;;  %v1367_v1 = vld [vmem:[#allocation2 + $0x74] sm:$0x1]  ;;  %v1363_v7 = vld [vmem:[#allocation2 + $0x6c] sm:$0xf]  ;;  %v1374_v34 = vld [vmem:[#allocation2 + $0x80] sm:$0x1] }
  0xd5   : > { %v1319_v20 = vsel %vm4667_vm12, %v1169_v59, %v1318_v14  ;;  %1317 = vst.msk [vmem:[#allocation2 + $0x1c] sm:$0xf] %vm1302_vm11, %v1167_v4  ;;  %v1370_v27 = vld [vmem:[#allocation2 + $0x78] sm:$0xf]  ;;  %v1381_v25 = vld [vmem:[#allocation2 + $0x8c] sm:$0x1] }
  0xd6   : > { %1320 = vst [vmem:[#allocation2 + $0x20] sm:$0x1] %v1319_v20  ;;  %v1377_v55 = vld [vmem:[#allocation2 + $0x84] sm:$0xf]  ;;  %v1388_v14 = vld [vmem:[#allocation2 + $0x98] sm:$0x1] }
  0xd7   : > { %v1384_v59 = vld [vmem:[#allocation2 + $0x90] sm:$0xf] }
  0xd8   : > { %v1173_v56 = vpop.permute.xlu1 %1172  ;;  %v1171_v32 = vpop.permute.xlu0 %1170 }
  0xd9   : > { %1324 = vst.msk [vmem:[#allocation2 + $0x28] sm:$0xf] %vm1302_vm11, %v1173_v56  ;;  %v1322_v49 = vsel %vm4673_vm13, %v1171_v32, %v1321_v30  ;;  %v1395_v32 = vld [vmem:[#allocation2 + $0xa4] sm:$0x1] }
  0xda   : > { %1323 = vst [vmem:[#allocation2 + $0x24] sm:$0xf] %v1322_v49  ;;  %v1391_v49 = vld [vmem:[#allocation2 + $0x9c] sm:$0xf] }
  0xdc   : > { %v1177_v23 = vpop.permute.xlu1 %1176  ;;  %v1175_v2 = vpop.permute.xlu0 %1174 }
  0xdd   : > { %v1329_v42 = vsel %vm4673_vm13, %v1177_v23, %v1328_v45  ;;  %v1326_v43 = vsel %vm4667_vm12, %v1175_v2, %v1325_v46 }
  0xde   : > { %1330 = vst [vmem:[#allocation2 + $0x30] sm:$0xf] %v1329_v42  ;;  %1327 = vst [vmem:[#allocation2 + $0x2c] sm:$0x1] %v1326_v43  ;;  %v1402_v42 = vld [vmem:[#allocation2 + $0xb0] sm:$0x1] }
  0xdf   : > { %v1398_v43 = vld [vmem:[#allocation2 + $0xa8] sm:$0xf] }
  0xe0   : > { %v1181_v12 = vpop.permute.xlu1 %1180  ;;  %v1179_v16 = vpop.permute.xlu0 %1178 }
  0xe1   : > { %v1333_v6 = vsel %vm4667_vm12, %v1181_v12, %v1332_v17  ;;  %1331 = vst.msk [vmem:[#allocation2 + $0x34] sm:$0xf] %vm1302_vm11, %v1179_v16 }
  0xe2   : > { %1334 = vst [vmem:[#allocation2 + $0x38] sm:$0x1] %v1333_v6 }
  0xe4   : > { %v1185_v62 = vpop.permute.xlu1 %1184  ;;  %v1183_v47 = vpop.permute.xlu0 %1182 }
  0xe5   : > { %1338 = vst.msk [vmem:[#allocation2 + $0x40] sm:$0xf] %vm1302_vm11, %v1185_v62  ;;  %v1336_v60 = vsel %vm4673_vm13, %v1183_v47, %v1335_v33  ;;  %v1409_v33 = vld [vmem:[#allocation2 + $0xbc] sm:$0x1]  ;;  %v1405_v62 = vld [vmem:[#allocation2 + $0xb4] sm:$0xf] }
  0xe6   : > { %1337 = vst [vmem:[#allocation2 + $0x3c] sm:$0xf] %v1336_v60 }
  0xe8   : > { %v1189_v44 = vpop.permute.xlu1 %1188  ;;  %v1187_v19 = vpop.permute.xlu0 %1186 }
  0xe9   : > { %v1343_v15 = vsel %vm4673_vm13, %v1189_v44, %v1342_v53  ;;  %v1340_v39 = vsel %vm4667_vm12, %v1187_v19, %v1339_v18  ;;  %v1416_v44 = vld [vmem:[#allocation2 + $0xc8] sm:$0x1]  ;;  %v1412_v19 = vld [vmem:[#allocation2 + $0xc0] sm:$0xf] }
  0xea   : > { %1344 = vst [vmem:[#allocation2 + $0x48] sm:$0xf] %v1343_v15  ;;  %1341 = vst [vmem:[#allocation2 + $0x44] sm:$0x1] %v1340_v39 }
  0xec   : > { %v1193_v29 = vpop.permute.xlu1 %1192  ;;  %v1191_v41 = vpop.permute.xlu0 %1190 }
  0xed   : > { %v1347_v37 = vsel %vm4667_vm12, %v1193_v29, %v1346_v36  ;;  %1345 = vst.msk [vmem:[#allocation2 + $0x4c] sm:$0xf] %vm1302_vm11, %v1191_v41 }
  0xee   : > { %1348 = vst [vmem:[#allocation2 + $0x50] sm:$0x1] %v1347_v37 }
  0xf0   : > { %v1199_v9 = vpop.permute.xlu1 %1198  ;;  %v1195_v31 = vpop.permute.xlu0 %1194 }
  0xf1   : > { %v1354_v54 = vsel %vm4667_vm12, %v1199_v9, %v1353_v52  ;;  %v1350_v58 = vsel %vm4673_vm13, %v1195_v31, %v1349_v5 }
  0xf2   : > { %1355 = vst [vmem:[#allocation2 + $0x5c] sm:$0x1] %v1354_v54  ;;  %1351 = vst [vmem:[#allocation2 + $0x54] sm:$0xf] %v1350_v58 }
  0xf4   : > { %v1205_v26 = vpop.permute.xlu1 %1204  ;;  %v1201_v35 = vpop.permute.xlu0 %1200 }
  0xf5   : > { %v1361_v40 = vsel %vm4667_vm12, %v1205_v26, %v1360_v11  ;;  %v1357_v48 = vsel %vm4673_vm13, %v1201_v35, %v1356_v24 }
  0xf6   : > { %1362 = vst [vmem:[#allocation2 + $0x68] sm:$0x1] %v1361_v40  ;;  %1358 = vst [vmem:[#allocation2 + $0x60] sm:$0xf] %v1357_v48 }
  0xf8   : > { %v1211_v61 = vpop.permute.xlu1 %1210  ;;  %v1207_v50 = vpop.permute.xlu0 %1206 }
  0xf9   : > { %v1368_v57 = vsel %vm4667_vm12, %v1211_v61, %v1367_v1  ;;  %v1364_v38 = vsel %vm4673_vm13, %v1207_v50, %v1363_v7 }
  0xfa   : > { %1369 = vst [vmem:[#allocation2 + $0x74] sm:$0x1] %v1368_v57  ;;  %1365 = vst [vmem:[#allocation2 + $0x6c] sm:$0xf] %v1364_v38 }
  0xfc   : > { %v1217_v28 = vpop.permute.xlu1 %1216  ;;  %v1213_v0 = vpop.permute.xlu0 %1212 }
  0xfd   : > { %v1375_v3 = vsel %vm4667_vm12, %v1217_v28, %v1374_v34  ;;  %v1371_v22 = vsel %vm4673_vm13, %v1213_v0, %v1370_v27 }
  0xfe   : > { %1376 = vst [vmem:[#allocation2 + $0x80] sm:$0x1] %v1375_v3  ;;  %1372 = vst [vmem:[#allocation2 + $0x78] sm:$0xf] %v1371_v22 }
 0x100   : > { %v1223_v8 = vpop.permute.xlu1 %1222  ;;  %v1219_v51 = vpop.permute.xlu0 %1218 }
 0x101   : > { %v1382_v21 = vsel %vm4667_vm12, %v1223_v8, %v1381_v25  ;;  %v1378_v10 = vsel %vm4673_vm13, %v1219_v51, %v1377_v55 }
 0x102   : > { %1383 = vst [vmem:[#allocation2 + $0x8c] sm:$0x1] %v1382_v21  ;;  %1379 = vst [vmem:[#allocation2 + $0x84] sm:$0xf] %v1378_v10 }
 0x104   : > { %v1229_v4 = vpop.permute.xlu1 %1228  ;;  %v1225_v20 = vpop.permute.xlu0 %1224 }
 0x105   : > { %v1389_v30 = vsel %vm4667_vm12, %v1229_v4, %v1388_v14  ;;  %v1385_v56 = vsel %vm4673_vm13, %v1225_v20, %v1384_v59 }
 0x106   : > { %1390 = vst [vmem:[#allocation2 + $0x98] sm:$0x1] %v1389_v30  ;;  %1386 = vst [vmem:[#allocation2 + $0x90] sm:$0xf] %v1385_v56 }
 0x108   : > { %v1235_v45 = vpop.permute.xlu1 %1234  ;;  %v1231_v46 = vpop.permute.xlu0 %1230 }
 0x109   : > { %v1396_v23 = vsel %vm4667_vm12, %v1235_v45, %v1395_v32  ;;  %v1392_v2 = vsel %vm4673_vm13, %v1231_v46, %v1391_v49 }
 0x10a   : > { %1397 = vst [vmem:[#allocation2 + $0xa4] sm:$0x1] %v1396_v23  ;;  %1393 = vst [vmem:[#allocation2 + $0x9c] sm:$0xf] %v1392_v2 }
 0x10c   : > { %v1241_v17 = vpop.permute.xlu1 %1240  ;;  %v1237_v12 = vpop.permute.xlu0 %1236 }
 0x10d   : > { %v1403_v16 = vsel %vm4667_vm12, %v1241_v17, %v1402_v42  ;;  %v1399_v6 = vsel %vm4673_vm13, %v1237_v12, %v1398_v43 }
 0x10e   : > { %1404 = vst [vmem:[#allocation2 + $0xb0] sm:$0x1] %v1403_v16  ;;  %1400 = vst [vmem:[#allocation2 + $0xa8] sm:$0xf] %v1399_v6 }
 0x110   : > { %v1247_v47 = vpop.permute.xlu1 %1246 }
 0x111   : > { %v1243_v60 = vpop.permute.xlu0 %1242  ;;  %v1410_v53 = vsel %vm4667_vm12, %v1247_v47, %v1409_v33 }
 0x112   : > { %v1406_v18 = vsel %vm4673_vm13, %v1243_v60, %v1405_v62  ;;  %1411 = vst [vmem:[#allocation2 + $0xbc] sm:$0x1] %v1410_v53 }
 0x113   : > { %1407 = vst [vmem:[#allocation2 + $0xb4] sm:$0xf] %v1406_v18 }
 0x114   : > { %v1253_v15 = vpop.permute.xlu1 %1252 }
 0x115   : > { %v1249_v39 = vpop.permute.xlu0 %1248  ;;  %v1417_v36 = vsel %vm4667_vm12, %v1253_v15, %v1416_v44 }
 0x116   : > { %v1413_v29 = vsel %vm4673_vm13, %v1249_v39, %v1412_v19  ;;  %1418 = vst [vmem:[#allocation2 + $0xc8] sm:$0x1] %v1417_v36 }
 0x117   : > { %1414 = vst [vmem:[#allocation2 + $0xc0] sm:$0xf] %v1413_v29 }
 0x118   : > { %v1203_v41 = vpop.permute.xlu1 %1202 }
 0x119   : > { %v1197_v37 = vpop.permute.xlu0 %1196  ;;  %1359 = vst.msk [vmem:[#allocation2 + $0x64] sm:$0xf] %vm1302_vm11, %v1203_v41 }
 0x11a   : > { %1352 = vst.msk [vmem:[#allocation2 + $0x58] sm:$0xf] %vm1302_vm11, %v1197_v37 }
 0x11c   : > { %v1215_v52 = vpop.permute.xlu1 %1214 }
 0x11d   : > { %v1209_v5 = vpop.permute.xlu0 %1208  ;;  %1373 = vst.msk [vmem:[#allocation2 + $0x7c] sm:$0xf] %vm1302_vm11, %v1215_v52 }
 0x11e   : > { %1366 = vst.msk [vmem:[#allocation2 + $0x70] sm:$0xf] %vm1302_vm11, %v1209_v5 }
 0x120   : > { %v1227_v9 = vpop.permute.xlu1 %1226 }
 0x121   : > { %v1221_v63 = vpop.permute.xlu0 %1220  ;;  %1387 = vst.msk [vmem:[#allocation2 + $0x94] sm:$0xf] %vm1302_vm11, %v1227_v9 }
 0x122   : > { %1380 = vst.msk [vmem:[#allocation2 + $0x88] sm:$0xf] %vm1302_vm11, %v1221_v63 }
 0x124   : > { %v1239_v13 = vpop.permute.xlu1 %1238 }
 0x125   : > { %v1233_v31 = vpop.permute.xlu0 %1232  ;;  %1401 = vst.msk [vmem:[#allocation2 + $0xac] sm:$0xf] %vm1302_vm11, %v1239_v13 }
 0x126   : > { %1394 = vst.msk [vmem:[#allocation2 + $0xa0] sm:$0xf] %vm1302_vm11, %v1233_v31 }
 0x128   : > { %v1251_v54 = vpop.permute.xlu1 %1250 }
 0x129   : > { %1415 = vst.msk [vmem:[#allocation2 + $0xc4] sm:$0xf] %vm1302_vm11, %v1251_v54 }
 0x133   : > { %v1245_v58 = vpop.permute.xlu0 %1244 }
 0x134   : > { %1408 = vst.msk [vmem:[#allocation2 + $0xb8] sm:$0xf] %vm1302_vm11, %v1245_v58 }
 0x135 PF: > { %s3153_s17 = smul.u32 96, %s3672_s21  ;;  %v3383_v11 = vld [vmem:[#allocation6 + $0x78] sm:$0xff]   ;;  %vm1734_vm14 = vcmask 1046528   ;;  %vm1559_vm15 = vsmask.f32 7424  ;;  %s3698_s8 = smov 36  }
 0x136   : > { %3155 = vmatprep.subr.bf16.mxu0 %v3383_v11  ;;  %s3699_s10 = smov 72   ;;  %s3700_s23 = smov 88   ;;  %v3384_v31 = vld [vmem:[#allocation6 + $0x38] sm:$0xff]   ;;  %vm2153_vm0 = vcmask 1041408   ;;  %vm1813_vm1 = vcmask 293888   ;;  %vm1872_vm2 = vcmask 130048  }
 0x137   : > { %s4758_s6 = scalar_lea.vmem [#allocation2], %s3153_s17  ;;  %s3701_s27 = smov 124   ;;  %3156 = vmatpush3.bf16.msra.mxu0 %v3384_v31  ;;  %v3398_v31 = vld [vmem:[#allocation6 + $0x8] sm:$0xff]   ;;  %vm1889_vm3 = vcmask 424960   ;;  %vm1906_vm4 = vcmask 719872   ;;  %vm1830_vm5 = vcmask 588800  }
 0x138   : > { %s3702_s9 = smov 52   ;;  %s3703_s3 = smov 108   ;;  %vm1923_vm6 = vcmask 1014784   ;;  %vm1847_vm7 = vcmask 883712   ;;  %vm1948_vm8 = vcmask 261120   ;;  %vm2136_vm9 = vcmask 556032  }
 0x139   : > { %s3704_s5 = smov 16   ;;  %s3705_s7 = smov 32   ;;  %vm2895_vm10 = vcmask 523264  }
 0x13a   : > { %s3154_s26 = sshll.u32 %s3672_s21, 4  ;;  %s3146_s11 = sshll.u32 %s3676_s22, 5 }
 0x13b   : > { %v4761_v24 = vld [vmem:[%s4758_s6 + $0xc] sm:$0xff]   ;;  %v4766_v26 = vld [vmem:[%s4758_s6] sm:$0xff]   ;;  %v3367_v35 = vld [vmem:[%s4758_s6 + $0x8] ss:$0 sps:$4 sm:$0x11]   ;;  %s2926_s28 = sadd.s32 %s3154_s26, %s3146_s11  ;;  %s2913_s22 = scalar_lea.sflag [#allocation5], %s3865_s18 }
 0x13c   : > { %1498 = vrot.lane.b32.xlu1 %v4761_v24, %s3698_s8  ;;  %v4770_v40 = vld [vmem:[%s4758_s6 + $0x18] sm:$0xff]   ;;  %v1738_v48 = vrot.slane %v4761_v24, 1  ;;  %v1735_v1 = vrot.slane %v4766_v26, 1  ;;  %v1736_v7 = vrot.slane %v3367_v35, 1  ;;  %v1561_v50 = vshrl.u32 %v4766_v26, 16  ;;  %v4786_v3 = vld [vmem:[%s4758_s6 + $0x24] sm:$0xff]  }
 0x13d   : > { %v3369_v61 = vld [vmem:[%s4758_s6 + $0x14] ss:$0 sps:$4 sm:$0x11]   ;;  %v4777_v57 = vld [vmem:[%s4758_s6 + $0x20] ss:$0 sps:$4 sm:$0x11]  }
 0x13e   : > { %v1585_v38 = vshrl.u32 %v4770_v40, 16  ;;  %v1737_v34 = vsel %vm1734_vm14, %v1735_v1, %v1736_v7  ;;  %v1739_v27 = vrot.slane %v3369_v61, 1  ;;  %v1587_v28 = vshll.u32 %v4770_v40, 16  ;;  %v4795_v45 = vld [vmem:[%s4758_s6 + $0x2c] ss:$0 sps:$4 sm:$0x11]  }
 0x13f   : > { %v1563_v0 = vshll.u32 %v4766_v26, 16  ;;  %1759 = vrot.lane.b32.xlu0 %v1737_v34, %s3700_s23  ;;  %v1592_v22 = vshll.u32 %v4777_v57, 16  ;;  %v1568_v25 = vshll.u32 %v3367_v35, 16  ;;  %v1573_v55 = vshrl.u32 %v4761_v24, 16  ;;  %v4808_v33 = vld [vmem:[%s4758_s6 + $0x30] sm:$0xff]   ;;  %v4824_v18 = vld [vmem:[%s4758_s6 + $0x3c] sm:$0xff]  }
 0x140   : > { %1519 = vrot.lane.b32.xlu1 %v4770_v40, %s3699_s10  ;;  %v1575_v8 = vshll.u32 %v4761_v24, 16  ;;  %v1740_v51 = vsel %vm1734_vm14, %v1738_v48, %v1739_v27  ;;  %v1589_v21 = vrot.slane %v1587_v28, 1  ;;  %v1580_v14 = vshll.u32 %v3369_v61, 16  ;;  %v4813_v62 = vld [vmem:[%s4758_s6 + $0x54] sm:$0xff]   ;;  %v4839_v63 = vld [vmem:[%s4758_s6 + $0x60] sm:$0xff]   ;;  %v3385_v35 = vld [vmem:[#allocation6 + $0x70] sm:$0xff]  }
 0x141   : > { %v1565_v10 = vrot.slane %v1563_v0, 1  ;;  %v1594_v59 = vrot.slane %v1592_v22, 1  ;;  %v1570_v4 = vrot.slane %v1568_v25, 1  ;;  %v1597_v30 = vshrl.u32 %v4786_v3, 16  ;;  %3157 = vmatprep.subr.bf16.mxu0 %v3385_v35  ;;  %v3387_v28 = vld [vmem:[#allocation6 + $0x68] sm:$0xff]   ;;  %s3147_s17 = sshll.u32 %s2926_s28, 7 }
 0x142   : > { %v1577_v20 = vrot.slane %v1575_v8, 1  ;;  %v1590_v56 = vor.u32 %v1589_v21, %v1585_v38  ;;  %v1582_v49 = vrot.slane %v1580_v14, 1  ;;  %v1599_v46 = vshll.u32 %v4786_v3, 16  ;;  %v4819_v60 = vld [vmem:[%s4758_s6 + $0x38] ss:$0 sps:$4 sm:$0x11]  }
 0x143   : > { %v1566_v32 = vor.u32 %v1565_v10, %v1561_v50  ;;  %1778 = vrot.lane.b32.xlu0 %v1740_v51, %s3701_s27  ;;  %v1604_v17 = vshll.u32 %v4795_v45, 16  ;;  %v1611_v53 = vshll.u32 %v4808_v33, 16  ;;  %v1741_v44 = vrot.slane %v4770_v40, 1  ;;  %v3380_v39 = vld [vmem:[%s4758_s6 + $0x5c] ss:$0 sps:$4 sm:$0x11]  }
 0x144   : > { %v1578_v23 = vor.u32 %v1577_v20, %v1573_v55  ;;  %v4800_v2 = vsel %vm1559_vm15, %v1590_v56, %v1594_v59  ;;  %v1601_v43 = vrot.slane %v1599_v46, 1  ;;  %v1742_v19 = vrot.slane %v4777_v57, 1  ;;  %v3382_v13 = vld [vmem:[%s4758_s6 + $0x68] ss:$0 sps:$4 sm:$0x11]   ;;  %v3388_v0 = vld [vmem:[#allocation6 + $0x28] sm:$0xff]  }
 0x145   : > { %v1571_v42 = vsel %vm1559_vm15, %v1566_v32, %v1570_v4  ;;  %1718 = vrot.lane.b32.xlu1 %v4800_v2, %s3702_s9  ;;  %v1606_v6 = vrot.slane %v1604_v17, 1  ;;  %v1609_v15 = vshrl.u32 %v4808_v33, 16  ;;  %v1645_v36 = vshrl.u32 %v4813_v62, 16  ;;  %v3386_v38 = vld [vmem:[#allocation6 + $0x30] sm:$0xff]   ;;  %v3391_v14 = vld [vmem:[#allocation6 + $0x60] sm:$0xff]  }
 0x146   : > { %v1583_v12 = vsel %vm1559_vm15, %v1578_v23, %v1582_v49  ;;  %v1602_v16 = vor.u32 %v1601_v43, %v1597_v30  ;;  %v1647_v29 = vshll.u32 %v4813_v62, 16  ;;  %v1613_v41 = vrot.slane %v1611_v53, 1  ;;  %3158 = vmatpush3.bf16.msra.mxu0 %v3386_v38  ;;  %v4860_v55 = vld [vmem:[%s4758_s6 + $0x6c] sm:$0xff]   ;;  %v3390_v8 = vld [vmem:[%s4758_s6 + $0x74] ss:$0 sps:$4 sm:$0x11]  }
 0x147   : > { %1656 = vrot.lane.b32.xlu0 %v1571_v42, %s3703_s3  ;;  %v1616_v37 = vshll.u32 %v4819_v60, 16  ;;  %v1623_v52 = vshll.u32 %v4824_v18, 16  ;;  %v1652_v9 = vshll.u32 %v3380_v39, 16  ;;  %v4844_v54 = vsel %vm1734_vm14, %v1741_v44, %v1742_v19  ;;  %v4866_v10 = vld [vmem:[%s4758_s6 + $0x44] ss:$0 sps:$4 sm:$0x11]   ;;  %3159 = vmatprep.subr.bf16.mxu0 %v3387_v28 }
 0x148   : > { %v4816_v47 = vsel %vm1559_vm15, %v1602_v16, %v1606_v6  ;;  %v1649_v5 = vrot.slane %v1647_v29, 1  ;;  %v1676_v48 = vshrl.u32 %v4839_v63, 16  ;;  %v1678_v1 = vshll.u32 %v4839_v63, 16  ;;  %v3392_v32 = vld [vmem:[#allocation6 + $0x20] sm:$0xff]   ;;  %v3393_v42 = vld [vmem:[#allocation6 + $0x58] sm:$0xff]   ;;  %v3395_v29 = vld [vmem:[#allocation6 + $0x50] sm:$0xff]  }
 0x149   : > { %1658 = vrot.lane.b32.xlu1 %v1583_v12, %s3703_s3  ;;  %v1654_v11 = vrot.slane %v1652_v9, 1  ;;  %v1683_v7 = vshll.u32 %v3382_v13, 16  ;;  %v1756_v61 = vrot.slane %v4813_v62, 1  ;;  %v1757_v57 = vrot.slane %v3380_v39, 1  ;;  %v3394_v53 = vld [vmem:[#allocation6 + $0x18] sm:$0xff]  }
 0x14a   : > { %v1650_v58 = vor.u32 %v1649_v5, %v1645_v36  ;;  %v1680_v34 = vrot.slane %v1678_v1, 1  ;;  %v1618_v21 = vrot.slane %v1616_v37, 1  ;;  %v1707_v4 = vshrl.u32 %v4860_v55, 16  ;;  %3160 = vmatpush3.bf16.msra.mxu0 %v3388_v0  ;;  %v3397_v5 = vld [vmem:[#allocation6 + $0x48] sm:$0xff]   ;;  %v3403_v0 = vld [vmem:[#allocation6 + $0x90] sm:$0xff]  }
 0x14b   : > { %1687 = vrot.lane.b32.xlu0 %v1583_v12, %s3704_s5  ;;  %v1685_v27 = vrot.slane %v1683_v7, 1  ;;  %v4857_v22 = vsel %vm1734_vm14, %v1756_v61, %v1757_v57  ;;  %v1709_v20 = vshll.u32 %v4860_v55, 16  ;;  %v1714_v30 = vshll.u32 %v3390_v8, 16  ;;  %3161 = vmatprep.subr.bf16.mxu0 %v3391_v14  ;;  %v3401_v1 = vld [vmem:[#allocation6 + $0xa0] ss:$0 sps:$4 sm:$0x33]  }
 0x14c   : > { %v4852_v50 = vsel %vm1559_vm15, %v1650_v58, %v1654_v11  ;;  %v1681_v25 = vor.u32 %v1680_v34, %v1676_v48  ;;  %v1621_v56 = vshrl.u32 %v4824_v18, 16  ;;  %v1625_v23 = vrot.slane %v1623_v52, 1  ;;  %v3396_v52 = vld [vmem:[#allocation6 + $0x10] sm:$0xff]   ;;  %v3399_v58 = vld [vmem:[#allocation6 + $0x40] sm:$0xff]   ;;  %3258 = vmatprep.subr.msk.bf16.mxu1 %vm2153_vm0, %v3401_v1 }
 0x14d   : > { %1720 = vrot.lane.b32.xlu1 %v4816_v47, %s3702_s9  ;;  %v1711_v49 = vrot.slane %v1709_v20, 1  ;;  %v1716_v46 = vrot.slane %v1714_v30, 1  ;;  %v1775_v43 = vrot.slane %v4839_v63, 1  ;;  %v1776_v17 = vrot.slane %v3382_v13, 1  ;;  %v4912_v11 = vld [vmem:[%s4758_s6 + $0x48] sm:$0xff]   ;;  %v3405_v14 = vld [vmem:[#allocation6 + $0x80] sm:$0xff]  }
 0x14e   : > { %v4869_v59 = vsel %vm1559_vm15, %v1681_v25, %v1685_v27  ;;  %v1628_v6 = vshll.u32 %v4866_v10, 16  ;;  %v1795_v19 = vrot.slane %v3390_v8, 1  ;;  %3162 = vmatpush3.bf16.msra.mxu0 %v3392_v32  ;;  %v1744_v39 = vrot.slane %v4786_v3, 1  ;;  %v3378_v7 = vld [vmem:[%s4758_s6 + $0x50] ss:$0 sps:$4 sm:$0x11]  }
 0x14f   : > { %1689 = vrot.lane.b32.xlu0 %v4800_v2, %s3704_s5  ;;  %v1712_v16 = vor.u32 %v1711_v49, %v1707_v4  ;;  %v4886_v44 = vsel %vm1734_vm14, %v1775_v43, %v1776_v17  ;;  %v1745_v36 = vrot.slane %v4795_v45, 1  ;;  %3163 = vmatprep.subr.bf16.mxu0 %v3393_v42  ;;  %v1626_v9 = vor.u32 %v1625_v23, %v1621_v56  ;;  %s2929_s6 = sshll.u32 %s3891_s12, 4  ;;  %s5485_s6 = int_to_ptr.vmem [resolvable:$true] %s2929_s6 }
 0x150   : > { %v1630_v37 = vrot.slane %v1628_v6, 1  ;;  %v1747_v35 = vrot.slane %v4808_v33, 1  ;;  %v1748_v48 = vrot.slane %v4819_v60, 1  ;;  %v1635_v61 = vshll.u32 %v4912_v11, 16  ;;  %v3402_v60 = vld [vmem:[#allocation6 + $0x98] sm:$0xff]  }
 0x151   : > { %1761 = vrot.lane.b32.xlu1 %v1740_v51, %s3700_s23  ;;  %v1614_v51 = vor.u32 %v1613_v41, %v1609_v15  ;;  %v4890_v15 = vsel %vm1559_vm15, %v1712_v16, %v1716_v46  ;;  %v4904_v45 = vsel %vm1734_vm14, %v1744_v39, %v1745_v36  ;;  %v2155_v57 = vsel %vm2153_vm0, %v3401_v1, 0 }
 0x152   : > { %3164 = vmatpush3.bf16.msra.mxu0 %v3394_v53  ;;  %v1631_v13 = vsel %vm1559_vm15, %v1626_v9, %v1630_v37  ;;  %3233 = vmatpush3.bf16.msra.mxu1 %v2155_v57  ;;  %v1749_v38 = vsel %vm1734_vm14, %v1747_v35, %v1748_v48  ;;  %v1633_v34 = vshrl.u32 %v4912_v11, 16  ;;  %v1637_v27 = vrot.slane %v1635_v61, 1 }
 0x153   : > { %1500 = vrot.lane.b32.xlu0 %v4770_v40, %s3698_s8  ;;  %v4880_v12 = vsel %vm1559_vm15, %v1614_v51, %v1618_v21  ;;  %3165 = vmatprep.subr.bf16.mxu0 %v3395_v29  ;;  %v1640_v28 = vshll.u32 %v3378_v7, 16  ;;  %v3404_v51 = vld [vmem:[#allocation6 + $0x88] sm:$0xff]   ;;  %v1750_v4 = vrot.slane %v4824_v18, 1  ;;  %v1751_v20 = vrot.slane %v4866_v10, 1 }
 0x154   : > { %3234 = vmatprep.subr.bf16.mxu1 %v3402_v60  ;;  %v1638_v25 = vor.u32 %v1637_v27, %v1633_v34  ;;  %v1753_v10 = vrot.slane %v4912_v11, 1  ;;  %v1754_v56 = vrot.slane %v3378_v7, 1 }
 0x155   : > { %1780 = vrot.lane.b32.xlu1 %v4844_v54, %s3701_s27  ;;  %v1642_v8 = vrot.slane %v1640_v28, 1  ;;  %v1752_v30 = vsel %vm1734_vm14, %v1750_v4, %v1751_v20 }
 0x156   : > { %3166 = vmatpush3.bf16.msra.mxu0 %v3396_v52  ;;  %3235 = vmatpush3.bf16.msra.mxu1 %v3402_v60  ;;  %v1755_v32 = vsel %vm1734_vm14, %v1753_v10, %v1754_v56 }
 0x157   : > { %1521 = vrot.lane.b32.xlu0 %v4786_v3, %s3699_s10  ;;  %3167 = vmatprep.subr.bf16.mxu0 %v3397_v5  ;;  %v1643_v21 = vsel %vm1559_vm15, %v1638_v25, %v1642_v8 }
 0x158   : > { %3236 = vmatprep.subr.bf16.mxu1 %v3403_v0 }
 0x159   : > { %1691 = vrot.lane.b32.xlu1 %v4816_v47, %s3704_s5 }
 0x15a   : > { %3168 = vmatpush3.bf16.msra.mxu0 %v3398_v31  ;;  %3237 = vmatpush3.bf16.msra.mxu1 %v3403_v0 }
 0x15b   : > { %1660 = vrot.lane.b32.xlu0 %v4800_v2, %s3703_s3  ;;  %v1794_v2 = vrot.slane %v4860_v55, 1  ;;  %3169 = vmatprep.subr.bf16.mxu0 %v3399_v58 }
 0x15c   : > { %3238 = vmatprep.subr.bf16.mxu1 %v3404_v51 }
 0x15d   : > { %1502 = vrot.lane.b32.xlu1 %v4786_v3, %s3698_s8  ;;  %v4897_v41 = vsel %vm1734_vm14, %v1794_v2, %v1795_v19 }
 0x15e   : > { %3239 = vmatpush3.bf16.msra.mxu1 %v3404_v51 }
 0x15f   : > { %1722 = vrot.lane.b32.xlu0 %v4880_v12, %s3702_s9  ;;  %3240 = vmatprep.subr.bf16.mxu1 %v3405_v14 }
 0x161   : > { %1523 = vrot.lane.b32.xlu1 %v4808_v33, %s3699_s10 }
 0x162   : > { %3241 = vmatpush3.bf16.msra.mxu1 %v3405_v14 }
 0x163   : > { %1763 = vrot.lane.b32.xlu0 %v4844_v54, %s3700_s23 }
 0x165   : > { %1662 = vrot.lane.b32.xlu1 %v4816_v47, %s3703_s3  ;;  %v3400_v47 = vld [vmem:[#allocation6] sm:$0xff]  }
 0x166   : > { %3170 = vmatpush3.bf16.msra.mxu0 %v3400_v47 }
 0x167   : > { %1782 = vrot.lane.b32.xlu0 %v4904_v45, %s3701_s27 }
 0x169   : > { %1724 = vrot.lane.b32.xlu1 %v1631_v13, %s3702_s9 }
 0x16b   : > { %1693 = vrot.lane.b32.xlu0 %v4880_v12, %s3704_s5 }
 0x16d   : > { %1765 = vrot.lane.b32.xlu1 %v4904_v45, %s3700_s23 }
 0x16f   : > { %1504 = vrot.lane.b32.xlu0 %v4808_v33, %s3698_s8 }
 0x171   : > { %1784 = vrot.lane.b32.xlu1 %v1749_v38, %s3701_s27 }
 0x173   : > { %1525 = vrot.lane.b32.xlu0 %v4824_v18, %s3699_s10 }
 0x175   : > { %1695 = vrot.lane.b32.xlu1 %v1631_v13, %s3704_s5 }
 0x177   : > { %1664 = vrot.lane.b32.xlu0 %v4880_v12, %s3703_s3 }
 0x179   : > { %1506 = vrot.lane.b32.xlu1 %v4824_v18, %s3698_s8 }
 0x17b   : > { %1726 = vrot.lane.b32.xlu0 %v1643_v21, %s3702_s9 }
 0x17d   : > { %1527 = vrot.lane.b32.xlu1 %v4912_v11, %s3699_s10 }
 0x17f   : > { %1767 = vrot.lane.b32.xlu0 %v1749_v38, %s3700_s23 }
 0x181   : > { %1797 = vrot.lane.b32.xlu1 %v4844_v54, %s3705_s7 }
 0x183   : > { %1786 = vrot.lane.b32.xlu0 %v1752_v30, %s3701_s27 }
 0x185   : > { %1697 = vrot.lane.b32.xlu1 %v1643_v21, %s3704_s5 }
 0x187   : > { %1666 = vrot.lane.b32.xlu0 %v1631_v13, %s3703_s3 }
 0x189   : > { %1728 = vrot.lane.b32.xlu1 %v4852_v50, %s3702_s9 }
 0x18b   : > { %1799 = vrot.lane.b32.xlu0 %v4904_v45, %s3705_s7 }
 0x18d   : > { %1769 = vrot.lane.b32.xlu1 %v1752_v30, %s3700_s23 }
 0x18f   : > { %1508 = vrot.lane.b32.xlu0 %v4912_v11, %s3698_s8 }
 0x191   : > { %1788 = vrot.lane.b32.xlu1 %v1755_v32, %s3701_s27 }
 0x193   : > { %1529 = vrot.lane.b32.xlu0 %v4813_v62, %s3699_s10 }
 0x195   : > { %1668 = vrot.lane.b32.xlu1 %v1643_v21, %s3703_s3 }
 0x197   : > { %1801 = vrot.lane.b32.xlu0 %v1749_v38, %s3705_s7 }
 0x199   : > { %1803 = vrot.lane.b32.xlu1 %v1752_v30, %s3705_s7 }
 0x19b   : > { %1699 = vrot.lane.b32.xlu0 %v4852_v50, %s3704_s5 }
 0x19d   : > { %1510 = vrot.lane.b32.xlu1 %v4813_v62, %s3698_s8 }
 0x19f   : > { %1730 = vrot.lane.b32.xlu0 %v4869_v59, %s3702_s9 }
 0x1a1   : > { %1531 = vrot.lane.b32.xlu1 %v4839_v63, %s3699_s10 }
 0x1a3   : > { %1771 = vrot.lane.b32.xlu0 %v1755_v32, %s3700_s23 }
 0x1a5   : > { %1805 = vrot.lane.b32.xlu1 %v1755_v32, %s3705_s7 }
 0x1a7   : > { %1790 = vrot.lane.b32.xlu0 %v4857_v22, %s3701_s27 }
 0x1a9   : > { %1701 = vrot.lane.b32.xlu1 %v4869_v59, %s3704_s5 }
 0x1ab   : > { %1670 = vrot.lane.b32.xlu0 %v4852_v50, %s3703_s3  ;;  %s3707_s3 = smov [#allocation8]  }
 0x1ac   : > { %s3592_s5 = sshll.u32 %s3707_s3, 4  ;;  %s3593_s5 = int_to_ptr.vmem [resolvable:$false] %s3592_s5 }
 0x1ad   : > { %1732 = vrot.lane.b32.xlu1 %v4890_v15, %s3702_s9  ;;  %s3588_s9 = scalar_lea.vmem %s5485_s6, 2048  ;;  %p3595_p3 = scmp.lt.s32.totalorder %s5485_s6, %s3593_s5 }
 0x1ae   : > { %v1499_v54 = vpop.permute.xlu1 %1498  ;;  %p3589_p1 = scmp.ne.s32.totalorder %s5485_s6, %s3588_s9 }
 0x1af   : > { %1807 = vrot.lane.b32.xlu0 %v4857_v22, %s3705_s7 }
 0x1b0   : > { %p3590_p2 = pnand %p3589_p1, %p3828_p11 }
 0x1b1   : > { %1773 = vrot.lane.b32.xlu1 %v4857_v22, %s3700_s23  ;;  %v1760_v49 = vpop.permute.xlu0 %1759  ;;  %v2464_v22 = vld [vmem:[%s3869_s13 + $0x8] sm:$0xff]  ;;  %s5584_s23 = sld [smem:[#allocation18_spill]] }
 0x1b2   : > { %v1520_v46 = vpop.permute.xlu1 %1519  ;;  %p3591_p0 = pneg %p3590_p2 }
 0x1b3   : > { %1512 = vrot.lane.b32.xlu0 %v4839_v63, %s3698_s8  ;;  %v2463_v63 = vld [vmem:[%s3869_s13] sm:$0xff] }
 0x1b5   : > { %1792 = vrot.lane.b32.xlu1 %v4886_v44, %s3701_s27  ;;  %v4989_v50 = vpop.permute.xlu0 %1778 }
 0x1b7   : > { %v1719_v59 = vpop.permute.xlu1 %1718  ;;  %1533 = vrot.lane.b32.xlu0 %v4860_v55, %s3699_s10  ;;  %v1815_v55 = vsel %vm1813_vm1, %v4766_v26, %v1499_v54  ;;  %s5585_s27 = smov %s5584_s23  ;;  %s5483_s21 = scalar_lea.hbm %s5584_s23, %s3147_s17 }
 0x1b8   : > { %v1832_v53 = vsel %vm1830_vm5, %v1815_v55, %v1520_v46 }
 0x1b9   : > { %1811 = vrot.lane.b32.xlu1 %v4897_v41, %s3705_s7  ;;  %v1657_v23 = vpop.permute.xlu0 %1656 }
 0x1ba   : > { %v1849_v19 = vsel %vm1847_vm7, %v1832_v53, %v1657_v23 }
 0x1bb   : > { %v1659_v42 = vpop.permute.xlu1 %1658  ;;  %1809 = vrot.lane.b32.xlu0 %v4886_v44, %s3705_s7 }
 0x1bd   : > { %v1688_v43 = vpop.permute.xlu0 %1687  ;;  %2497 = vrot.lane.b32.xlu1 %v2464_v22, %s3705_s7 }
 0x1be   : > { %v1874_v17 = vsel %vm1872_vm2, %v1657_v23, %v1688_v43 }
 0x1bf   : > { %v1891_v12 = vsel %vm1889_vm3, %v1874_v17, %v1719_v59  ;;  %v1721_v16 = vpop.permute.xlu1 %1720  ;;  %2495 = vrot.lane.b32.xlu0 %v2463_v63, %s3705_s7 }
 0x1c0   : > { %v1908_v6 = vsel %vm1906_vm4, %v1891_v12, %v1760_v49 }
 0x1c1   : > { %v1690_v44 = vpop.permute.xlu0 %1689  ;;  %v1925_v2 = vsel %vm1923_vm6, %v1908_v6, %v4989_v50 }
 0x1c2   : > { %v1876_v26 = vsel %vm1872_vm2, %v1659_v42, %v1690_v44  ;;  %2189 = vmatprep.mubr.bf16.mxu0 %v1925_v2 }
 0x1c3   : > { %v1762_v15 = vpop.permute.xlu1 %1761  ;;  %2190 = vmatmul.mubr.bf16.vlgmr.msra.gmra.mxu0 %v1849_v19  ;;  %v1893_v39 = vsel %vm1889_vm3, %v1876_v26, %v1721_v16 }
 0x1c4   : > { %v1910_v29 = vsel %vm1906_vm4, %v1893_v39, %v1762_v15 }
 0x1c5   : > { %v1501_v36 = vpop.permute.xlu0 %1500 }
 0x1c6   : > { %v1817_v52 = vsel %vm1813_vm1, %v4761_v24, %v1501_v36 }
 0x1c7   : > { %v5013_v41 = vpop.permute.xlu1 %1780 }
 0x1c8   : > { %v1928_v37 = vsel %vm1923_vm6, %v1910_v29, %v5013_v41 }
 0x1c9   : > { %2197 = vmatprep.mubr.bf16.mxu0 %v1928_v37  ;;  %v1522_v5 = vpop.permute.xlu0 %1521 }
 0x1ca   : > { %v1834_v9 = vsel %vm1830_vm5, %v1817_v52, %v1522_v5 }
 0x1cb   : > { %v1692_v45 = vpop.permute.xlu1 %1691  ;;  %v1852_v13 = vsel %vm1847_vm7, %v1834_v9, %v1659_v42 }
 0x1cc   : > { %2198 = vmatmul.mubr.bf16.gmra.mxu0 %v1852_v13 }
 0x1cd   : > { %v1661_v31 = vpop.permute.xlu0 %1660 }
 0x1ce   : > { %v1878_v7 = vsel %vm1872_vm2, %v1661_v31, %v1692_v45 }
 0x1cf   : > { %v1503_v58 = vpop.permute.xlu1 %1502 }
 0x1d0   : > { %v1819_v47 = vsel %vm1813_vm1, %v4770_v40, %v1503_v58 }
 0x1d1   : > { %v1723_v35 = vpop.permute.xlu0 %1722 }
 0x1d2   : > { %v1895_v24 = vsel %vm1889_vm3, %v1878_v7, %v1723_v35 }
 0x1d3   : > { %v1524_v48 = vpop.permute.xlu1 %1523 }
 0x1d4   : > { %v1836_v57 = vsel %vm1830_vm5, %v1819_v47, %v1524_v48 }
 0x1d5   : > { %v1764_v1 = vpop.permute.xlu0 %1763  ;;  %v1855_v28 = vsel %vm1847_vm7, %v1836_v57, %v1661_v31 }
 0x1d6   : > { %v1912_v38 = vsel %vm1906_vm4, %v1895_v24, %v1764_v1 }
 0x1d7   : > { %v1663_v61 = vpop.permute.xlu1 %1662 }
 0x1d9   : > { %v5027_v60 = vpop.permute.xlu0 %1782 }
 0x1da   : > { %v1931_v34 = vsel %vm1923_vm6, %v1912_v38, %v5027_v60 }
 0x1db   : > { %v1725_v27 = vpop.permute.xlu1 %1724  ;;  %2205 = vmatprep.mubr.bf16.mxu0 %v1931_v34 }
 0x1dc   : > { %2206 = vmatmul.mubr.bf16.gmra.mxu0 %v1855_v28 }
 0x1dd   : > { %v1694_v40 = vpop.permute.xlu0 %1693 }
 0x1de   : > { %v1880_v0 = vsel %vm1872_vm2, %v1663_v61, %v1694_v40 }
 0x1df   : > { %v1766_v25 = vpop.permute.xlu1 %1765  ;;  %v1897_v8 = vsel %vm1889_vm3, %v1880_v0, %v1725_v27 }
 0x1e0   : > { %v1914_v21 = vsel %vm1906_vm4, %v1897_v8, %v1766_v25 }
 0x1e1   : > { %v1505_v51 = vpop.permute.xlu0 %1504 }
 0x1e2   : > { %v1821_v20 = vsel %vm1813_vm1, %v4786_v3, %v1505_v51 }
 0x1e3   : > { %v1785_v14 = vpop.permute.xlu1 %1784 }
 0x1e4   : > { %v1934_v4 = vsel %vm1923_vm6, %v1914_v21, %v1785_v14 }
 0x1e5   : > { %2213 = vmatprep.mubr.bf16.mxu0 %v1934_v4  ;;  %v1526_v30 = vpop.permute.xlu0 %1525 }
 0x1e6   : > { %v1838_v10 = vsel %vm1830_vm5, %v1821_v20, %v1526_v30 }
 0x1e7   : > { %v1696_v56 = vpop.permute.xlu1 %1695  ;;  %v1858_v32 = vsel %vm1847_vm7, %v1838_v10, %v1663_v61 }
 0x1e8   : > { %2214 = vmatmul.mubr.bf16.gmra.mxu0 %v1858_v32 }
 0x1e9   : > { %v1665_v54 = vpop.permute.xlu0 %1664 }
 0x1ea   : > { %v1882_v3 = vsel %vm1872_vm2, %v1665_v54, %v1696_v56 }
 0x1eb   : > { %v1507_v49 = vpop.permute.xlu1 %1506 }
 0x1ec   : > { %v1823_v23 = vsel %vm1813_vm1, %v4808_v33, %v1507_v49 }
 0x1ed   : > { %v1727_v46 = vpop.permute.xlu0 %1726 }
 0x1ee   : > { %v1899_v63 = vsel %vm1889_vm3, %v1882_v3, %v1727_v46 }
 0x1ef   : > { %v1528_v59 = vpop.permute.xlu1 %1527 }
 0x1f0   : > { %v1840_v43 = vsel %vm1830_vm5, %v1823_v23, %v1528_v59 }
 0x1f1   : > { %v1768_v22 = vpop.permute.xlu0 %1767  ;;  %v1861_v6 = vsel %vm1847_vm7, %v1840_v43, %v1665_v54 }
 0x1f2   : > { %v1916_v17 = vsel %vm1906_vm4, %v1899_v63, %v1768_v22 }
 0x1f3   : > { %v1798_v42 = vpop.permute.xlu1 %1797 }
 0x1f4   : > { %v1950_v55 = vsel %vm1948_vm8, %v4989_v50, %v1798_v42 }
 0x1f5   : > { %3242 = vmatprep.mubr.msk.bf16.mxu1 %vm2136_vm9, %v1950_v55  ;;  %v1787_v12 = vpop.permute.xlu0 %1786 }
 0x1f6   : > { %v1937_v33 = vsel %vm1923_vm6, %v1916_v17, %v1787_v12 }
 0x1f7   : > { %v1698_v16 = vpop.permute.xlu1 %1697  ;;  %2221 = vmatprep.mubr.bf16.mxu0 %v1937_v33 }
 0x1f8   : > { %2222 = vmatmul.mubr.bf16.gmra.mxu0 %v1861_v6 }
 0x1f9   : > { %v1667_v53 = vpop.permute.xlu0 %1666 }
 0x1fa   : > { %v1884_v50 = vsel %vm1872_vm2, %v1667_v53, %v1698_v16 }
 0x1fb   : > { %v1729_v44 = vpop.permute.xlu1 %1728 }
 0x1fc   : > { %v1901_v39 = vsel %vm1889_vm3, %v1884_v50, %v1729_v44 }
 0x1fd   : > { %v1800_v2 = vpop.permute.xlu0 %1799 }
 0x1fe   : > { %v1952_v26 = vsel %vm1948_vm8, %v5013_v41, %v1800_v2 }
 0x1ff   : > { %v1770_v19 = vpop.permute.xlu1 %1769  ;;  %3243 = vmatmul.mubr.msk.bf16.vlgmr.msra.gmra.mxu1 %vm2136_vm9, %v1952_v26 }
 0x200   : > { %v1918_v36 = vsel %vm1906_vm4, %v1901_v39, %v1770_v19  ;;  %v5094_v39 = vld [vmem:[%s5546_s4] ss:$0 sm:$0xff] }
 0x201   : > { %v1509_v15 = vpop.permute.xlu0 %1508 }
 0x202   : > { %v1825_v52 = vsel %vm1813_vm1, %v4824_v18, %v1509_v15 }
 0x203   : > { %v1789_v29 = vpop.permute.xlu1 %1788 }
 0x204   : > { %v1940_v37 = vsel %vm1923_vm6, %v1918_v36, %v1789_v29 }
 0x205   : > { %2229 = vmatprep.mubr.bf16.mxu0 %v1940_v37  ;;  %v1530_v5 = vpop.permute.xlu0 %1529 }
 0x206   : > { %v1842_v41 = vsel %vm1830_vm5, %v1825_v52, %v1530_v5 }
 0x207   : > { %v1669_v9 = vpop.permute.xlu1 %1668  ;;  %v1864_v45 = vsel %vm1847_vm7, %v1842_v41, %v1667_v53 }
 0x208   : > { %2230 = vmatmul.mubr.bf16.gmra.mxu0 %v1864_v45 }
 0x209   : > { %v1802_v13 = vpop.permute.xlu0 %1801 }
 0x20a   : > { %v1954_v31 = vsel %vm1948_vm8, %v5027_v60, %v1802_v13 }
 0x20b   : > { %v1804_v58 = vpop.permute.xlu1 %1803  ;;  %3246 = vmatprep.mubr.msk.bf16.mxu1 %vm2136_vm9, %v1954_v31 }
 0x20c   : > { %v1956_v35 = vsel %vm1948_vm8, %v1785_v14, %v1804_v58 }
 0x20d   : > { %3247 = vmatmul.mubr.msk.bf16.gmra.mxu1 %vm2136_vm9, %v1956_v35  ;;  %v1700_v18 = vpop.permute.xlu0 %1699 }
 0x20e   : > { %v1886_v24 = vsel %vm1872_vm2, %v1669_v9, %v1700_v18 }
 0x20f   : > { %v1511_v48 = vpop.permute.xlu1 %1510 }
 0x210   : > { %v1827_v7 = vsel %vm1813_vm1, %v4912_v11, %v1511_v48 }
 0x211   : > { %v1731_v47 = vpop.permute.xlu0 %1730 }
 0x212   : > { %v1903_v38 = vsel %vm1889_vm3, %v1886_v24, %v1731_v47 }
 0x213   : > { %v1532_v1 = vpop.permute.xlu1 %1531 }
 0x214   : > { %v1844_v60 = vsel %vm1830_vm5, %v1827_v7, %v1532_v1 }
 0x215   : > { %v1772_v61 = vpop.permute.xlu0 %1771  ;;  %v1867_v11 = vsel %vm1847_vm7, %v1844_v60, %v1669_v9 }
 0x216   : > { %v1920_v27 = vsel %vm1906_vm4, %v1903_v38, %v1772_v61 }
 0x217   : > { %v1806_v57 = vpop.permute.xlu1 %1805 }
 0x218   : > { %v1958_v34 = vsel %vm1948_vm8, %v1787_v12, %v1806_v57 }
 0x219   : > { %3250 = vmatprep.mubr.msk.bf16.mxu1 %vm2136_vm9, %v1958_v34  ;;  %v1791_v28 = vpop.permute.xlu0 %1790 }
 0x21a   : > { %v1943_v40 = vsel %vm1923_vm6, %v1920_v27, %v1791_v28 }
 0x21b   : > { %v1702_v0 = vpop.permute.xlu1 %1701  ;;  %2237 = vmatprep.mubr.bf16.mxu0 %v1943_v40 }
 0x21c   : > { %2238 = vmatmul.mubr.bf16.gmra.mxu0 %v1867_v11 }
 0x21d   : > { %v1671_v25 = vpop.permute.xlu0 %1670 }
 0x21e   : > { %v1888_v14 = vsel %vm1872_vm2, %v1671_v25, %v1702_v0 }
 0x21f   : > { %v1733_v8 = vpop.permute.xlu1 %1732 }
 0x220   : > { %v1905_v30 = vsel %vm1889_vm3, %v1888_v14, %v1733_v8 }
 0x221   : > { %v1808_v51 = vpop.permute.xlu0 %1807 }
 0x222   : > { %v1960_v21 = vsel %vm1948_vm8, %v1789_v29, %v1808_v51 }
 0x223   : > { %v1774_v4 = vpop.permute.xlu1 %1773  ;;  %3251 = vmatmul.mubr.msk.bf16.gmra.mxu1 %vm2136_vm9, %v1960_v21 }
 0x224   : > { %v1922_v10 = vsel %vm1906_vm4, %v1905_v30, %v1774_v4 }
 0x225   : > { %v1513_v20 = vpop.permute.xlu0 %1512 }
 0x226   : > { %v1829_v54 = vsel %vm1813_vm1, %v4813_v62, %v1513_v20 }
 0x227   : > { %v1793_v56 = vpop.permute.xlu1 %1792 }
 0x228   : > { %v1946_v32 = vsel %vm1923_vm6, %v1922_v10, %v1793_v56 }
 0x229   : > { %2245 = vmatprep.mubr.bf16.mxu0 %v1946_v32  ;;  %v1534_v49 = vpop.permute.xlu0 %1533 }
 0x22a   : > { %v1846_v46 = vsel %vm1830_vm5, %v1829_v54, %v1534_v49 }
 0x22b   : > { %v1870_v59 = vsel %vm1847_vm7, %v1846_v46, %v1671_v25  ;;  %v1812_v23 = vpop.permute.xlu1 %1811 }
 0x22c   : > { %2246 = vmatmul.mubr.bf16.gmra.mxu0 %v1870_v59  ;;  %v1964_v42 = vsel %vm1948_vm8, %v1793_v56, %v1812_v23 }
 0x22d   : > { %v1810_v22 = vpop.permute.xlu0 %1809 }
 0x22e   : > { %v1962_v3 = vsel %vm1948_vm8, %v1791_v28, %v1810_v22 }
 0x22f   : > { %3254 = vmatprep.mubr.msk.bf16.mxu1 %vm2136_vm9, %v1962_v3 }
 0x230   : > { %3255 = vmatmul.mubr.msk.bf16.gmra.mxu1 %vm2136_vm9, %v1964_v42 }
 0x283   : > { %v3171_v63 = vpop.f32.mrf.mxu0 }
 0x285   : > { %v3172_v43 = vpop.f32.mrf.mxu0 }
 0x286   : > { %v3173_v19 = vadd.f32 %v3172_v43, %v3171_v63 }
 0x287   : > { %v3174_v62 = vpop.f32.mrf.mxu0 }
 0x288   : > { %v2192_v5 = vadd.f32 %v3173_v19, %v5094_v39 }
 0x289   : > { %v3175_v55 = vpop.f32.mrf.mxu0 }
 0x28a   : > { %v3176_v37 = vadd.f32 %v3175_v55, %v3174_v62 }
 0x28c   : > { %v3177_v17 = vpop.f32.mrf.mxu0  ;;  %v2195_v18 = vadd.f32 %v3176_v37, %v5094_v39 }
 0x28e   : > { %v3178_v12 = vpop.f32.mrf.mxu0 }
 0x28f   : > { %v3179_v36 = vadd.f32 %v3178_v12, %v3177_v17 }
 0x290   : > { %v3180_v33 = vpop.f32.mrf.mxu0 }
 0x291   : > { %v2200_v45 = vadd.f32 %v3179_v36, %v5094_v39 }
 0x292   : > { %v3181_v16 = vpop.f32.mrf.mxu0 }
 0x293   : > { %v3182_v31 = vadd.f32 %v3181_v16, %v3180_v33 }
 0x295   : > { %v2203_v7 = vadd.f32 %v3182_v31, %v5094_v39 }
 0x29c   : > { %v3183_v6 = vpop.f32.mrf.mxu0 }
 0x29e   : > { %v3184_v53 = vpop.f32.mrf.mxu0 }
 0x29f   : > { %v3185_v24 = vadd.f32 %v3184_v53, %v3183_v6 }
 0x2a0   : > { %v3186_v44 = vpop.f32.mrf.mxu0 }
 0x2a1   : > { %v2208_v27 = vadd.f32 %v3185_v24, %v5094_v39 }
 0x2a2   : > { %v3187_v2 = vpop.f32.mrf.mxu0 }
 0x2a3   : > { %v3188_v51 = vadd.f32 %v3187_v2, %v3186_v44 }
 0x2a5   : > { %v2211_v56 = vadd.f32 %v3188_v51, %v5094_v39 }
 0x2a8   : > { %v3189_v26 = vpop.f32.mrf.mxu0 }
 0x2aa   : > { %v3190_v50 = vpop.f32.mrf.mxu0 }
 0x2ab   : > { %v3191_v38 = vadd.f32 %v3190_v50, %v3189_v26 }
 0x2ac   : > { %v3192_v15 = vpop.f32.mrf.mxu0 }
 0x2ad   : > { %v2216_v11 = vadd.f32 %v3191_v38, %v5094_v39 }
 0x2ae   : > { %v3193_v52 = vpop.f32.mrf.mxu0 }
 0x2af   : > { %v3194_v10 = vadd.f32 %v3193_v52, %v3192_v15 }
 0x2b1   : > { %v2219_v46 = vadd.f32 %v3194_v10, %v5094_v39  ;;  %v2465_v10 = vld [vmem:[%s3869_s13 + $0x10] sm:$0xff] }
 0x2b8   : > { %v3195_v9 = vpop.f32.mrf.mxu0 }
 0x2ba   : > { %v3196_v47 = vpop.f32.mrf.mxu0 }
 0x2bb   : > { %v3197_v42 = vadd.f32 %v3196_v47, %v3195_v9 }
 0x2bc   : > { %v3198_v57 = vpop.f32.mrf.mxu0 }
 0x2bd   : > { %v2224_v17 = vadd.f32 %v3197_v42, %v5094_v39  ;;  %v2473_v42 = vld [vmem:[%s3869_s13 + $0x50] sm:$0xff] }
 0x2be   : > { %v3199_v34 = vpop.f32.mrf.mxu0 }
 0x2bf   : > { %v3244_v29 = vpop.f32.mrf.mxu1  ;;  %v3200_v12 = vadd.f32 %v3199_v34, %v3198_v57 }
 0x2c0   : > { %v5100_v35 = vadd.f32 %v3244_v29, %v2200_v45 }
 0x2c1   : > { %v2288_v41 = vpop.f32.mrf.mxu1  ;;  %v2227_v19 = vadd.f32 %v3200_v12, %v5094_v39 }
 0x2c2   : > { %v5098_v13 = vadd.f32 %v2288_v41, %v2192_v5  ;;  %v3129_v12 = vmul.f32 -1.442695, %v5100_v35 }
 0x2c3   : > { %v3245_v58 = vpop.f32.mrf.mxu1 }
 0x2c4   : > { %3406 = vtanh.f32 %v5098_v13  ;;  %v5108_v61 = vadd.f32 %v3245_v58, %v2203_v7 }
 0x2c5   : > { %v2291_v48 = vpop.f32.mrf.mxu1  ;;  %3408 = vtanh.f32 %v5100_v35 }
 0x2c6   : > { %v5104_v1 = vadd.f32 %v2291_v48, %v2195_v18 }
 0x2c8   : > { %3410 = vtanh.f32 %v5104_v1  ;;  %v3201_v40 = vpop.f32.mrf.mxu0 }
 0x2c9   : > { %3412 = vtanh.f32 %v5108_v61 }
 0x2ca   : > { %v3202_v14 = vpop.f32.mrf.mxu0 }
 0x2cb   : > { %v3203_v43 = vadd.f32 %v3202_v14, %v3201_v40 }
 0x2cc   : > { %v3204_v32 = vpop.f32.mrf.mxu0 }
 0x2cd   : > { %v3248_v60 = vpop.f32.mrf.mxu1  ;;  %v2232_v53 = vadd.f32 %v3203_v43, %v5094_v39  ;;  %v2475_v43 = vld [vmem:[%s3869_s13 + $0x60] sm:$0xff] }
 0x2ce   : > { %v5116_v21 = vadd.f32 %v3248_v60, %v2216_v11  ;;  %v3205_v59 = vpop.f32.mrf.mxu0 }
 0x2cf   : > { %v2304_v28 = vpop.f32.mrf.mxu1  ;;  %v3206_v26 = vadd.f32 %v3205_v59, %v3204_v32  ;;  %v2467_v32 = vld [vmem:[%s3869_s13 + $0x20] sm:$0xff]  ;;  %v2466_v59 = vld [vmem:[%s3869_s13 + $0x18] sm:$0xff] }
 0x2d0   : > { %v5113_v0 = vadd.f32 %v2304_v28, %v2208_v27 }
 0x2d1   : > { %v3249_v25 = vpop.f32.mrf.mxu1  ;;  %v3407_v8 = vpop.eup %3406  ;;  %v2235_v41 = vadd.f32 %v3206_v26, %v5094_v39 }
 0x2d2   : > { %3414 = vtanh.f32 %v5113_v0  ;;  %2575 = vrot.lane.b32.xlu0 %v3407_v8, %s3705_s7  ;;  %v3409_v4 = vpop.eup %3408  ;;  %v5128_v23 = vadd.f32 %v3249_v25, %v2219_v46  ;;  %v2469_v46 = vld [vmem:[%s3869_s13 + $0x30] sm:$0xff]  ;;  %v3131_v35 = vmul.f32 -1.442695, %v5113_v0 }
 0x2d3   : > { %v2307_v20 = vpop.f32.mrf.mxu1  ;;  %3416 = vtanh.f32 %v5116_v21 }
 0x2d4   : > { %v5124_v54 = vadd.f32 %v2307_v20, %v2211_v56 }
 0x2d5   : > { %v3411_v30 = vpop.eup %3410 }
 0x2d6   : > { %2577 = vrot.lane.b32.xlu1 %v3411_v30, %s3705_s7  ;;  %2579 = vrot.lane.b32.xlu0 %v3409_v4, %s3705_s7  ;;  %v3413_v49 = vpop.eup %3412  ;;  %3418 = vtanh.f32 %v5124_v54 }
 0x2d7   : > { %3420 = vtanh.f32 %v5128_v23 }
 0x2da   : > { %2581 = vrot.lane.b32.xlu1 %v3413_v49, %s3705_s7 }
 0x2dc   : > { %v3207_v22 = vpop.f32.mrf.mxu0 }
 0x2de   : > { %v3208_v63 = vpop.f32.mrf.mxu0 }
 0x2df   : > { %v3415_v3 = vpop.eup %3414  ;;  %v3209_v5 = vadd.f32 %v3208_v63, %v3207_v22  ;;  %v2471_v22 = vld [vmem:[%s3869_s13 + $0x40] sm:$0xff]  ;;  %v2470_v63 = vld [vmem:[%s3869_s13 + $0x38] sm:$0xff] }
 0x2e0   : > { %2583 = vrot.lane.b32.xlu0 %v3415_v3, %s3705_s7  ;;  %v3417_v55 = vpop.eup %3416  ;;  %v3210_v16 = vpop.f32.mrf.mxu0  ;;  %v2468_v3 = vld [vmem:[%s3869_s13 + $0x28] sm:$0xff] }
 0x2e1   : > { %v2240_v48 = vadd.f32 %v3209_v5, %v5094_v39  ;;  %v3134_v5 = vmul.f32 -1.442695, %v5128_v23 }
 0x2e2   : > { %v3211_v36 = vpop.f32.mrf.mxu0 }
 0x2e3   : > { %v3252_v62 = vpop.f32.mrf.mxu1  ;;  %v3419_v2 = vpop.eup %3418  ;;  %v3212_v34 = vadd.f32 %v3211_v36, %v3210_v16  ;;  %v3128_v16 = vmul.f32 -1.442695, %v5104_v1  ;;  %v3133_v1 = vmul.f32 -1.442695, %v5116_v21 }
 0x2e4   : > { %2587 = vrot.lane.b32.xlu0 %v3417_v55, %s3705_s7  ;;  %v5138_v50 = vadd.f32 %v3252_v62, %v2232_v53  ;;  %2585 = vrot.lane.b32.xlu1 %v3419_v2, %s3705_s7  ;;  %v3421_v52 = vpop.eup %3420  ;;  %v2472_v62 = vld [vmem:[%s3869_s13 + $0x48] sm:$0xff]  ;;  %v3127_v55 = vmul.f32 -1.442695, %v5098_v13  ;;  %v2478_v13 = vld [vmem:[%s3869_s13 + $0x78] sm:$0xff]  ;;  %v5212_v21 = vpop.permute.xlu0 %2495 }
 0x2e5   : > { %v2320_v33 = vpop.f32.mrf.mxu1  ;;  %v2243_v25 = vadd.f32 %v3212_v34, %v5094_v39  ;;  %v2476_v53 = vld [vmem:[%s3869_s13 + $0x68] sm:$0xff] }
 0x2e6   : > { %v5135_v6 = vadd.f32 %v2320_v33, %v2224_v17  ;;  %v2477_v17 = vld [vmem:[%s3869_s13 + $0x70] sm:$0xff]  ;;  %v2474_v33 = vld [vmem:[%s3869_s13 + $0x58] sm:$0xff]  ;;  %s3706_s13 = smov 64  }
 0x2e7   : > { %v3253_v44 = vpop.f32.mrf.mxu1 }
 0x2e8   : > { %3422 = vtanh.f32 %v5135_v6  ;;  %2589 = vrot.lane.b32.xlu1 %v3421_v52, %s3705_s7  ;;  %v5148_v45 = vadd.f32 %v3253_v44, %v2235_v41  ;;  %v3130_v44 = vmul.f32 -1.442695, %v5108_v61  ;;  %v3132_v61 = vmul.f32 -1.442695, %v5124_v54  ;;  %v5217_v54 = vpop.permute.xlu1 %2497 }
 0x2e9   : > { %v2323_v15 = vpop.f32.mrf.mxu1  ;;  %3424 = vtanh.f32 %v5138_v50 }
 0x2ea   : > { %v5143_v29 = vadd.f32 %v2323_v15, %v2227_v19 }
 0x2ec   : > { %v3213_v37 = vpop.f32.mrf.mxu0  ;;  %3426 = vtanh.f32 %v5143_v29 }
 0x2ed   : > { %3428 = vtanh.f32 %v5148_v45 }
 0x2ee   : > { %v3214_v9 = vpop.f32.mrf.mxu0 }
 0x2ef   : > { %v3215_v31 = vadd.f32 %v3214_v9, %v3213_v37 }
 0x2f0   : > { %v3256_v58 = vpop.f32.mrf.mxu1  ;;  %v3216_v18 = vpop.f32.mrf.mxu0 }
 0x2f1   : > { %v2248_v47 = vadd.f32 %v3215_v31, %v5094_v39 }
 0x2f2   : > { %v2336_v7 = vpop.f32.mrf.mxu1  ;;  %v3217_v57 = vpop.f32.mrf.mxu0 }
 0x2f3   : > { %v5154_v24 = vadd.f32 %v2336_v7, %v2240_v48  ;;  %v5156_v27 = vadd.f32 %v3256_v58, %v2248_v47  ;;  %v3218_v28 = vadd.f32 %v3217_v57, %v3216_v18  ;;  %v3135_v58 = vmul.f32 -1.442695, %v5135_v6 }
 0x2f4   : > { %v3257_v38 = vpop.f32.mrf.mxu1 }
 0x2f5   : > { %v3423_v60 = vpop.eup %3422  ;;  %3430 = vtanh.f32 %v5154_v24  ;;  %v2251_v51 = vadd.f32 %v3218_v28, %v5094_v39  ;;  %v3136_v28 = vmul.f32 -1.442695, %v5143_v29 }
 0x2f6   : > { %2591 = vrot.lane.b32.xlu0 %v3423_v60, %s3705_s7  ;;  %v2339_v40 = vpop.f32.mrf.mxu1  ;;  %v3425_v11 = vpop.eup %3424  ;;  %3432 = vtanh.f32 %v5156_v27 }
 0x2f7   : > { %v5164_v14 = vadd.f32 %v2339_v40, %v2243_v25  ;;  %v5167_v20 = vadd.f32 %v3257_v38, %v2251_v51  ;;  %v3137_v38 = vmul.f32 -1.442695, %v5138_v50 }
 0x2f9   : > { %v3427_v8 = vpop.eup %3426  ;;  %3434 = vtanh.f32 %v5164_v14 }
 0x2fa   : > { %2595 = vrot.lane.b32.xlu0 %v3425_v11, %s3705_s7  ;;  %2593 = vrot.lane.b32.xlu1 %v3427_v8, %s3705_s7  ;;  %v3429_v4 = vpop.eup %3428  ;;  %3436 = vtanh.f32 %v5167_v20 }
 0x2fb   : > { %3438 = vpow2.f32 %v3127_v55 }
 0x2fc   : > { %3440 = vpow2.f32 %v3129_v12 }
 0x2fd   : > { %3442 = vpow2.f32 %v3128_v16 }
 0x2fe   : > { %2597 = vrot.lane.b32.xlu1 %v3429_v4, %s3705_s7  ;;  %3444 = vpow2.f32 %v3130_v44  ;;  %v3138_v4 = vmul.f32 -1.442695, %v5148_v45 }
 0x2ff   : > { %3446 = vpow2.f32 %v3131_v35 }
 0x300   : > { %3448 = vpow2.f32 %v3133_v1 }
 0x302   : > { %v3431_v30 = vpop.eup %3430 }
 0x303   : > { %2599 = vrot.lane.b32.xlu0 %v3431_v30, %s3705_s7  ;;  %v3433_v39 = vpop.eup %3432 }
 0x306   : > { %v3435_v56 = vpop.eup %3434 }
 0x307   : > { %2603 = vrot.lane.b32.xlu0 %v3433_v39, %s3705_s7  ;;  %2601 = vrot.lane.b32.xlu1 %v3435_v56, %s3705_s7  ;;  %v3437_v49 = vpop.eup %3436  ;;  %v3139_v39 = vmul.f32 -1.442695, %v5154_v24 }
 0x308   : > { %v3439_v2 = vpop.eup %3438 }
 0x309   : > { %v3441_v26 = vpop.eup %3440  ;;  %v2399_v19 = vadd.f32 1.0, %v3439_v2 }
 0x30a   : > { %v3443_v15 = vpop.eup %3442  ;;  %v2401_v36 = vadd.f32 1.0, %v3441_v26 }
 0x30b   : > { %2499 = vrot.lane.b32.xlu0 %v2465_v10, %s3705_s7  ;;  %2605 = vrot.lane.b32.xlu1 %v3437_v49, %s3705_s7  ;;  %3450 = vrcp.f32 %v2399_v19  ;;  %v2400_v37 = vadd.f32 1.0, %v3443_v15  ;;  %v3445_v52 = vpop.eup %3444 }
 0x30c   : > { %3452 = vrcp.f32 %v2401_v36  ;;  %v2402_v0 = vadd.f32 1.0, %v3445_v52  ;;  %v3447_v41 = vpop.eup %3446 }
 0x30d   : > { %3454 = vpow2.f32 %v3132_v61  ;;  %v2403_v9 = vadd.f32 1.0, %v3447_v41  ;;  %v3449_v31 = vpop.eup %3448 }
 0x30e   : > { %3456 = vrcp.f32 %v2400_v37  ;;  %v2405_v47 = vadd.f32 1.0, %v3449_v31 }
 0x30f   : > { %2503 = vrot.lane.b32.xlu0 %v2467_v32, %s3705_s7  ;;  %2501 = vrot.lane.b32.xlu1 %v2466_v59, %s3705_s7  ;;  %3458 = vpow2.f32 %v3134_v5 }
 0x310   : > { %3460 = vrcp.f32 %v2402_v0 }
 0x311   : > { %3462 = vrcp.f32 %v2403_v9 }
 0x312   : > { %3464 = vpow2.f32 %v3135_v58 }
 0x313   : > { %2507 = vrot.lane.b32.xlu0 %v2469_v46, %s3705_s7  ;;  %2505 = vrot.lane.b32.xlu1 %v2468_v3, %s3705_s7  ;;  %3466 = vrcp.f32 %v2405_v47  ;;  %v3141_v46 = vmul.f32 -1.442695, %v5156_v27 }
 0x314   : > { %3468 = vpow2.f32 %v3137_v38 }
 0x315   : > { %3470 = vpow2.f32 %v3136_v28 }
 0x317   : > { %2511 = vrot.lane.b32.xlu0 %v2471_v22, %s3705_s7  ;;  %2509 = vrot.lane.b32.xlu1 %v2470_v63, %s3705_s7  ;;  %v3140_v63 = vmul.f32 -1.442695, %v5164_v14 }
 0x318   : > { %v5215_v18 = vpop.eup %3450 }
 0x319   : > { %v5220_v7 = vpop.eup %3452 }
 0x31a   : > { %v3455_v57 = vpop.eup %3454 }
 0x31b   : > { %2515 = vrot.lane.b32.xlu0 %v2473_v42, %s3705_s7  ;;  %2513 = vrot.lane.b32.xlu1 %v2472_v62, %s3705_s7  ;;  %v5224_v60 = vpop.eup %3456  ;;  %v2404_v25 = vadd.f32 1.0, %v3455_v57 }
 0x31c   : > { %v3459_v8 = vpop.eup %3458 }
 0x31d   : > { %v5231_v50 = vpop.eup %3460  ;;  %v2406_v29 = vadd.f32 1.0, %v3459_v8  ;;  %3472 = vrcp.f32 %v2404_v25 }
 0x31e   : > { %3474 = vpow2.f32 %v3138_v4  ;;  %v5237_v10 = vpop.eup %3462 }
 0x31f   : > { %2519 = vrot.lane.b32.xlu0 %v2475_v43, %s3705_s7  ;;  %2517 = vrot.lane.b32.xlu1 %v2474_v33, %s3705_s7  ;;  %3476 = vrcp.f32 %v2406_v29  ;;  %v3465_v49 = vpop.eup %3464  ;;  %v3142_v33 = vmul.f32 -1.442695, %v5167_v20 }
 0x320   : > { %3478 = vpow2.f32 %v3139_v39  ;;  %v5242_v45 = vpop.eup %3466  ;;  %v2407_v22 = vadd.f32 1.0, %v3465_v49 }
 0x321   : > { %v3469_v24 = vpop.eup %3468  ;;  %3480 = vpow2.f32 %v3141_v46 }
 0x322   : > { %v3471_v42 = vpop.eup %3470  ;;  %v2409_v62 = vadd.f32 1.0, %v3469_v24  ;;  %3482 = vrcp.f32 %v2407_v22 }
 0x323   : > { %2523 = vrot.lane.b32.xlu0 %v2477_v17, %s3705_s7  ;;  %2521 = vrot.lane.b32.xlu1 %v2476_v53, %s3705_s7  ;;  %v2408_v17 = vadd.f32 1.0, %v3471_v42  ;;  %3484 = vpow2.f32 %v3140_v63 }
 0x324   : > { %3486 = vrcp.f32 %v2409_v62  ;;  %v2543_v62 = vmul.f32 %v5215_v18, %v5212_v21 }
 0x325   : > { %3488 = vrcp.f32 %v2408_v17 }
 0x326   : > { %3490 = vpow2.f32 %v3142_v33 }
 0x327   : > { %2525 = vrot.lane.b32.xlu1 %v2478_v13, %s3705_s7 }
 0x32a   : > { %v5247_v43 = vpop.eup %3472 }
 0x32b   : > { %v3475_v12 = vpop.eup %3474 }
 0x32c   : > { %v5252_v16 = vpop.eup %3476  ;;  %v2410_v13 = vadd.f32 1.0, %v3475_v12  ;;  %v2544_v12 = vmul.f32 %v5224_v60, %v5217_v54 }
 0x32d   : > { %v3479_v44 = vpop.eup %3478 }
 0x32e   : > { %v2411_v35 = vadd.f32 1.0, %v3479_v44  ;;  %v3481_v2 = vpop.eup %3480  ;;  %3492 = vrcp.f32 %v2410_v13 }
 0x32f   : > { %v5256_v1 = vpop.eup %3482  ;;  %v2413_v20 = vadd.f32 1.0, %v3481_v2 }
 0x330   : > { %3494 = vrcp.f32 %v2411_v35  ;;  %v3485_v15 = vpop.eup %3484 }
 0x331   : > { %v5260_v36 = vpop.eup %3486  ;;  %3496 = vrcp.f32 %v2413_v20  ;;  %v2412_v5 = vadd.f32 1.0, %v3485_v15 }
 0x332   : > { %v5263_v52 = vpop.eup %3488 }
 0x333   : > { %v3491_v41 = vpop.eup %3490  ;;  %3498 = vrcp.f32 %v2412_v5 }
 0x334   : > { %v2414_v58 = vadd.f32 1.0, %v3491_v41 }
 0x336   : > { %3500 = vrcp.f32 %v2414_v58 }
 0x33b   : > { %v5268_v31 = vpop.eup %3492 }
 0x344   : > { %v2576_v48 = vpop.permute.xlu0 %2575 }
 0x345   : > { %v2623_v23 = vmul.f32 %v5215_v18, %v2576_v48 }
 0x347   : > { %2655 = vrot.lane.b32.xlu0 %v2623_v23, %s3705_s7  ;;  %v5271_v23 = vpop.eup %3494 }
 0x348   : > { %v2578_v6 = vpop.permute.xlu1 %2577  ;;  %v2580_v34 = vpop.permute.xlu0 %2579 }
 0x349   : > { %v2624_v40 = vmul.f32 %v5224_v60, %v2578_v6  ;;  %v2625_v11 = vmul.f32 %v5220_v7, %v2580_v34  ;;  %v5276_v6 = vpop.eup %3496 }
 0x34b   : > { %2657 = vrot.lane.b32.xlu1 %v2624_v40, %s3705_s7  ;;  %2659 = vrot.lane.b32.xlu0 %v2625_v11, %s3705_s7  ;;  %v5280_v40 = vpop.eup %3498 }
 0x34c   : > { %v2582_v51 = vpop.permute.xlu1 %2581  ;;  %v5284_v8 = vpop.eup %3500 }
 0x34d   : > { %v2626_v30 = vmul.f32 %v5231_v50, %v2582_v51 }
 0x34f   : > { %2661 = vrot.lane.b32.xlu1 %v2626_v30, %s3705_s7 }
 0x352   : > { %v2584_v56 = vpop.permute.xlu0 %2583 }
 0x353   : > { %v2627_v32 = vmul.f32 %v5237_v10, %v2584_v56 }
 0x355   : > { %2663 = vrot.lane.b32.xlu0 %v2627_v32, %s3705_s7 }
 0x356   : > { %v2588_v59 = vpop.permute.xlu0 %2587  ;;  %v2586_v27 = vpop.permute.xlu1 %2585 }
 0x357   : > { %v2629_v3 = vmul.f32 %v5242_v45, %v2588_v59  ;;  %v2628_v55 = vmul.f32 %v5247_v43, %v2586_v27 }
 0x359   : > { %2667 = vrot.lane.b32.xlu0 %v2629_v3, %s3705_s7  ;;  %2665 = vrot.lane.b32.xlu1 %v2628_v55, %s3705_s7 }
 0x35a   : > { %v2590_v53 = vpop.permute.xlu1 %2589 }
 0x35b   : > { %v2630_v14 = vmul.f32 %v5252_v16, %v2590_v53 }
 0x35d   : > { %2669 = vrot.lane.b32.xlu1 %v2630_v14, %s3705_s7 }
 0x368   : > { %v2592_v26 = vpop.permute.xlu0 %2591 }
 0x369   : > { %v2631_v19 = vmul.f32 %v5256_v1, %v2592_v26 }
 0x36b   : > { %2671 = vrot.lane.b32.xlu0 %v2631_v19, %s3705_s7 }
 0x36c   : > { %v2596_v61 = vpop.permute.xlu0 %2595  ;;  %v2594_v0 = vpop.permute.xlu1 %2593 }
 0x36d   : > { %v2633_v37 = vmul.f32 %v5260_v36, %v2596_v61  ;;  %v2632_v9 = vmul.f32 %v5263_v52, %v2594_v0 }
 0x36f   : > { %2675 = vrot.lane.b32.xlu0 %v2633_v37, %s3705_s7  ;;  %2673 = vrot.lane.b32.xlu1 %v2632_v9, %s3705_s7 }
 0x370   : > { %v2598_v48 = vpop.permute.xlu1 %2597 }
 0x371   : > { %v2634_v47 = vmul.f32 %v5268_v31, %v2598_v48 }
 0x373   : > { %2677 = vrot.lane.b32.xlu1 %v2634_v47, %s3705_s7 }
 0x375   : > { %v2600_v57 = vpop.permute.xlu0 %2599 }
 0x376   : > { %v2635_v38 = vmul.f32 %v5271_v23, %v2600_v57 }
 0x378   : > { %2679 = vrot.lane.b32.xlu0 %v2635_v38, %s3705_s7 }
 0x379   : > { %v2604_v34 = vpop.permute.xlu0 %2603  ;;  %v2602_v11 = vpop.permute.xlu1 %2601 }
 0x37a   : > { %v2637_v28 = vmul.f32 %v5276_v6, %v2604_v34  ;;  %v2636_v25 = vmul.f32 %v5280_v40, %v2602_v11 }
 0x37c   : > { %2683 = vrot.lane.b32.xlu0 %v2637_v28, %s3705_s7  ;;  %2681 = vrot.lane.b32.xlu1 %v2636_v25, %s3705_s7 }
 0x37d   : > { %v2606_v51 = vpop.permute.xlu1 %2605  ;;  %v2500_v30 = vpop.permute.xlu0 %2499 }
 0x37e   : > { %v2638_v4 = vmul.f32 %v5284_v8, %v2606_v51  ;;  %v2545_v33 = vmul.f32 %v5220_v7, %v2500_v30 }
 0x380   : > { %2685 = vrot.lane.b32.xlu1 %v2638_v4, %s3705_s7 }
 0x381   : > { %v2502_v29 = vpop.permute.xlu1 %2501  ;;  %v2504_v39 = vpop.permute.xlu0 %2503 }
 0x382   : > { %v2546_v21 = vmul.f32 %v5231_v50, %v2502_v29  ;;  %v2547_v54 = vmul.f32 %v5237_v10, %v2504_v39 }
 0x385   : > { %v2506_v56 = vpop.permute.xlu1 %2505  ;;  %v2508_v32 = vpop.permute.xlu0 %2507 }
 0x386   : > { %v2549_v15 = vmul.f32 %v5242_v45, %v2508_v32  ;;  %v2548_v41 = vmul.f32 %v5247_v43, %v2506_v56 }
 0x389   : > { %v2510_v49 = vpop.permute.xlu1 %2509  ;;  %v2512_v46 = vpop.permute.xlu0 %2511 }
 0x38a   : > { %v2550_v47 = vmul.f32 %v5252_v16, %v2510_v49  ;;  %v2551_v11 = vmul.f32 %v5256_v1, %v2512_v46 }
 0x38d   : > { %v2514_v59 = vpop.permute.xlu1 %2513  ;;  %v2516_v22 = vpop.permute.xlu0 %2515 }
 0x38e   : > { %v2553_v30 = vmul.f32 %v5260_v36, %v2516_v22  ;;  %v2552_v39 = vmul.f32 %v5263_v52, %v2514_v59 }
 0x391   : > { %v5288_v3 = vpop.permute.xlu1 %2517  ;;  %v5290_v24 = vpop.permute.xlu0 %2519 }
 0x392   : > { %v2554_v22 = vmul.f32 %v5268_v31, %v5288_v3  ;;  %v2555_v59 = vmul.f32 %v5271_v23, %v5290_v24 }
 0x395   : > { %v5292_v42 = vpop.permute.xlu1 %2521  ;;  %v5294_v63 = vpop.permute.xlu0 %2523 }
 0x399   : > { %v5298_v27 = vpop.permute.xlu1 %2525 }
 0x3b9   : > { %v2656_v55 = vpop.permute.xlu0 %2655 }
 0x3ba   : > { %v5300_v17 = vadd.f32 %v2656_v55, %v2543_v62 }
 0x3bc   : > { %3502 = vtanh.f32 %v5300_v17 }
 0x3bd   : > { %v2658_v53 = vpop.permute.xlu1 %2657  ;;  %v2660_v14 = vpop.permute.xlu0 %2659 }
 0x3be   : > { %v5306_v44 = vadd.f32 %v2658_v53, %v2544_v12  ;;  %v5308_v13 = vadd.f32 %v2660_v14, %v2545_v33  ;;  %v2557_v14 = vmul.f32 %v5276_v6, %v5294_v63 }
 0x3c0   : > { %3504 = vtanh.f32 %v5306_v44 }
 0x3c1   : > { %3506 = vtanh.f32 %v5308_v13  ;;  %v2662_v35 = vpop.permute.xlu1 %2661 }
 0x3c2   : > { %v5313_v2 = vadd.f32 %v2662_v35, %v2546_v21 }
 0x3c4   : > { %3508 = vtanh.f32 %v5313_v2 }
 0x3c7   : > { %v2664_v20 = vpop.permute.xlu0 %2663 }
 0x3c8   : > { %v5317_v26 = vadd.f32 %v2664_v20, %v2547_v54  ;;  %v2556_v54 = vmul.f32 %v5280_v40, %v5292_v42 }
 0x3c9   : > { %v3503_v19 = vpop.eup %3502 }
 0x3ca   : > { %3510 = vtanh.f32 %v5317_v26  ;;  %2751 = vrot.lane.b32.xlu0 %v3503_v19, %s3705_s7 }
 0x3cb   : > { %v2668_v61 = vpop.permute.xlu0 %2667  ;;  %v2666_v9 = vpop.permute.xlu1 %2665 }
 0x3cc   : > { %v5322_v37 = vadd.f32 %v2668_v61, %v2549_v15  ;;  %v5328_v48 = vadd.f32 %v2666_v9, %v2548_v41  ;;  %v2558_v15 = vmul.f32 %v5284_v8, %v5298_v27 }
 0x3cd   : > { %v3505_v5 = vpop.eup %3504 }
 0x3ce   : > { %v3507_v0 = vpop.eup %3506  ;;  %3512 = vtanh.f32 %v5322_v37  ;;  %2753 = vrot.lane.b32.xlu1 %v3505_v5, %s3705_s7 }
 0x3cf   : > { %2755 = vrot.lane.b32.xlu0 %v3507_v0, %s3705_s7  ;;  %3514 = vtanh.f32 %v5328_v48  ;;  %v2670_v57 = vpop.permute.xlu1 %2669 }
 0x3d0   : > { %v5333_v38 = vadd.f32 %v2670_v57, %v2550_v47 }
 0x3d1   : > { %v3509_v58 = vpop.eup %3508 }
 0x3d2   : > { %2757 = vrot.lane.b32.xlu1 %v3509_v58, %s3705_s7  ;;  %3516 = vtanh.f32 %v5333_v38 }
 0x3d7   : > { %v3511_v34 = vpop.eup %3510 }
 0x3d8   : > { %2759 = vrot.lane.b32.xlu0 %v3511_v34, %s3705_s7 }
 0x3db   : > { %v3513_v28 = vpop.eup %3512 }
 0x3dc   : > { %2763 = vrot.lane.b32.xlu0 %v3513_v28, %s3705_s7  ;;  %v3515_v4 = vpop.eup %3514 }
 0x3dd   : > { %v2672_v25 = vpop.permute.xlu0 %2671  ;;  %2761 = vrot.lane.b32.xlu1 %v3515_v4, %s3705_s7 }
 0x3de   : > { %v5339_v51 = vadd.f32 %v2672_v25, %v2551_v11 }
 0x3df   : > { %v3517_v49 = vpop.eup %3516 }
 0x3e0   : > { %3518 = vtanh.f32 %v5339_v51 }
 0x3e1   : > { %v2676_v29 = vpop.permute.xlu0 %2675  ;;  %v2674_v32 = vpop.permute.xlu1 %2673  ;;  %2765 = vrot.lane.b32.xlu1 %v3517_v49, %s3705_s7 }
 0x3e2   : > { %v5345_v56 = vadd.f32 %v2676_v29, %v2553_v30  ;;  %v5347_v46 = vadd.f32 %v2674_v32, %v2552_v39 }
 0x3e4   : > { %3520 = vtanh.f32 %v5345_v56 }
 0x3e5   : > { %3522 = vtanh.f32 %v5347_v46  ;;  %v2678_v62 = vpop.permute.xlu1 %2677 }
 0x3e6   : > { %v5354_v55 = vadd.f32 %v2678_v62, %v2554_v22 }
 0x3e8   : > { %3524 = vtanh.f32 %v5354_v55 }
 0x3ea   : > { %v2680_v12 = vpop.permute.xlu0 %2679 }
 0x3eb   : > { %v5359_v33 = vadd.f32 %v2680_v12, %v2555_v59 }
 0x3ed   : > { %v3519_v53 = vpop.eup %3518  ;;  %3526 = vtanh.f32 %v5359_v33 }
 0x3ee   : > { %2767 = vrot.lane.b32.xlu0 %v3519_v53, %s3705_s7  ;;  %v2684_v3 = vpop.permute.xlu0 %2683  ;;  %v2682_v20 = vpop.permute.xlu1 %2681 }
 0x3ef   : > { %v5365_v21 = vadd.f32 %v2684_v3, %v2557_v14  ;;  %v5372_v63 = vadd.f32 %v2682_v20, %v2556_v54 }
 0x3f1   : > { %v3521_v35 = vpop.eup %3520  ;;  %3528 = vtanh.f32 %v5365_v21 }
 0x3f2   : > { %2771 = vrot.lane.b32.xlu0 %v3521_v35, %s3705_s7  ;;  %v3523_v24 = vpop.eup %3522  ;;  %3530 = vtanh.f32 %v5372_v63  ;;  %v2686_v61 = vpop.permute.xlu1 %2685 }
 0x3f3   : > { %2769 = vrot.lane.b32.xlu1 %v3523_v24, %s3705_s7  ;;  %v5378_v5 = vadd.f32 %v2686_v61, %v2558_v15 }
 0x3f5   : > { %v3525_v19 = vpop.eup %3524  ;;  %3532 = vtanh.f32 %v5378_v5 }
 0x3f7   : > { %2773 = vrot.lane.b32.xlu1 %v3525_v19, %s3705_s7 }
 0x3fa   : > { %v3527_v0 = vpop.eup %3526 }
 0x3fb   : > { %2775 = vrot.lane.b32.xlu0 %v3527_v0, %s3705_s7 }
 0x3fe   : > { %v3529_v42 = vpop.eup %3528 }
 0x3ff   : > { %2779 = vrot.lane.b32.xlu0 %v3529_v42, %s3705_s7  ;;  %v3531_v41 = vpop.eup %3530 }
 0x400   : > { %2777 = vrot.lane.b32.xlu1 %v3531_v41, %s3705_s7 }
 0x402   : > { %v3533_v9 = vpop.eup %3532 }
 0x404   : > { %2781 = vrot.lane.b32.xlu1 %v3533_v9, %s3705_s7  ;;  %s3594_s7 = scalar_lea.vmem %s3593_s5, 4096 }
 0x405   : > { %p3596_p5 = scmp.lt.s32.totalorder %s3594_s7, %s3588_s9 }
 0x407   : > { %p3597_p4 = por %p3596_p5, %p3595_p3 }
 0x409   : > { %p3598_p6 = pnand %p3597_p4, %p3591_p0 }
 0x43c   : > { %v2752_v27 = vpop.permute.xlu0 %2751 }
 0x43d   : > { %v2799_v58 = vmul.f32 %v5215_v18, %v2752_v27 }
 0x43f   : > { %2831 = vrot.lane.b32.xlu0 %v2799_v58, %s3706_s13 }
 0x440   : > { %v2754_v47 = vpop.permute.xlu1 %2753 }
 0x441   : > { %v2800_v57 = vmul.f32 %v5224_v60, %v2754_v47  ;;  %v2756_v34 = vpop.permute.xlu0 %2755 }
 0x442   : > { %v2801_v28 = vmul.f32 %v5220_v7, %v2756_v34 }
 0x443   : > { %2833 = vrot.lane.b32.xlu1 %v2800_v57, %s3706_s13 }
 0x444   : > { %2835 = vrot.lane.b32.xlu0 %v2801_v28, %s3706_s13  ;;  %v2758_v11 = vpop.permute.xlu1 %2757 }
 0x445   : > { %v2802_v25 = vmul.f32 %v5231_v50, %v2758_v11 }
 0x447   : > { %2837 = vrot.lane.b32.xlu1 %v2802_v25, %s3706_s13 }
 0x44a   : > { %v2760_v4 = vpop.permute.xlu0 %2759 }
 0x44b   : > { %v2803_v18 = vmul.f32 %v5237_v10, %v2760_v4 }
 0x44d   : > { %2839 = vrot.lane.b32.xlu0 %v2803_v18, %s3706_s13 }
 0x44e   : > { %v2764_v30 = vpop.permute.xlu0 %2763 }
 0x44f   : > { %v2805_v60 = vmul.f32 %v5242_v45, %v2764_v30  ;;  %v2762_v7 = vpop.permute.xlu1 %2761 }
 0x450   : > { %v2804_v29 = vmul.f32 %v5247_v43, %v2762_v7 }
 0x451   : > { %2843 = vrot.lane.b32.xlu0 %v2805_v60, %s3706_s13 }
 0x452   : > { %2841 = vrot.lane.b32.xlu1 %v2804_v29, %s3706_s13 }
 0x453   : > { %v2766_v39 = vpop.permute.xlu1 %2765 }
 0x454   : > { %v2806_v50 = vmul.f32 %v5252_v16, %v2766_v39 }
 0x456   : > { %2845 = vrot.lane.b32.xlu1 %v2806_v50, %s3706_s13 }
 0x460   : > { %v2768_v32 = vpop.permute.xlu0 %2767 }
 0x461   : > { %v2807_v10 = vmul.f32 %v5256_v1, %v2768_v32 }
 0x463   : > { %2847 = vrot.lane.b32.xlu0 %v2807_v10, %s3706_s13 }
 0x464   : > { %v2772_v49 = vpop.permute.xlu0 %2771 }
 0x465   : > { %v2809_v45 = vmul.f32 %v5260_v36, %v2772_v49  ;;  %v2770_v22 = vpop.permute.xlu1 %2769 }
 0x466   : > { %v2808_v62 = vmul.f32 %v5263_v52, %v2770_v22 }
 0x467   : > { %2851 = vrot.lane.b32.xlu0 %v2809_v45, %s3706_s13 }
 0x468   : > { %2849 = vrot.lane.b32.xlu1 %v2808_v62, %s3706_s13 }
 0x469   : > { %v2774_v43 = vpop.permute.xlu1 %2773 }
 0x46a   : > { %v2810_v16 = vmul.f32 %v5268_v31, %v2774_v43 }
 0x46c   : > { %2853 = vrot.lane.b32.xlu1 %v2810_v16, %s3706_s13 }
 0x46d   : > { %v2776_v59 = vpop.permute.xlu0 %2775 }
 0x46e   : > { %v2811_v1 = vmul.f32 %v5271_v23, %v2776_v59 }
 0x470   : > { %2855 = vrot.lane.b32.xlu0 %v2811_v1, %s3706_s13 }
 0x471   : > { %v2780_v12 = vpop.permute.xlu0 %2779 }
 0x472   : > { %v2813_v36 = vmul.f32 %v5276_v6, %v2780_v12  ;;  %v2778_v52 = vpop.permute.xlu1 %2777 }
 0x473   : > { %v2812_v53 = vmul.f32 %v5280_v40, %v2778_v52 }
 0x474   : > { %2859 = vrot.lane.b32.xlu0 %v2813_v36, %s3706_s13 }
 0x475   : > { %2857 = vrot.lane.b32.xlu1 %v2812_v53, %s3706_s13 }
 0x476   : > { %v2782_v31 = vpop.permute.xlu1 %2781 }
 0x477   : > { %v2814_v14 = vmul.f32 %v5284_v8, %v2782_v31 }
 0x479   : > { %2861 = vrot.lane.b32.xlu1 %v2814_v14, %s3706_s13 }
 0x4b1   : > { %v2832_v23 = vpop.permute.xlu0 %2831 }
 0x4b2   : > { %v2879_v6 = vsel %vm1948_vm8, %v2832_v23, %v5300_v17 }
 0x4b3   : > { %2896 = vst.msk [vmem:[%s3891_s12] sm:$0xff] %vm2895_vm10, %v2879_v6 }
 0x4b5   : > { %v2834_v3 = vpop.permute.xlu1 %2833 }
 0x4b6   : > { %v2880_v40 = vsel %vm1948_vm8, %v2834_v3, %v5306_v44  ;;  %v2836_v35 = vpop.permute.xlu0 %2835 }
 0x4b7   : > { %2897 = vst.msk [vmem:[%s3891_s12 + $0x8] sm:$0xff] %vm2895_vm10, %v2880_v40  ;;  %v2881_v8 = vsel %vm1948_vm8, %v2836_v35, %v5308_v13 }
 0x4b8   : > { %2898 = vst.msk [vmem:[%s3891_s12 + $0x10] sm:$0xff] %vm2895_vm10, %v2881_v8 }
 0x4b9   : > { %v2838_v24 = vpop.permute.xlu1 %2837 }
 0x4ba   : > { %v2882_v17 = vsel %vm1948_vm8, %v2838_v24, %v5313_v2 }
 0x4bb   : > { %2899 = vst.msk [vmem:[%s3891_s12 + $0x18] sm:$0xff] %vm2895_vm10, %v2882_v17 }
 0x4bf   : > { %v2840_v54 = vpop.permute.xlu0 %2839 }
 0x4c0   : > { %v2883_v44 = vsel %vm1948_vm8, %v2840_v54, %v5317_v26 }
 0x4c1   : > { %2900 = vst.msk [vmem:[%s3891_s12 + $0x20] sm:$0xff] %vm2895_vm10, %v2883_v44 }
 0x4c3   : > { %v2844_v20 = vpop.permute.xlu0 %2843 }
 0x4c4   : > { %v2885_v13 = vsel %vm1948_vm8, %v2844_v20, %v5322_v37  ;;  %v2842_v19 = vpop.permute.xlu1 %2841 }
 0x4c5   : > { %2902 = vst.msk [vmem:[%s3891_s12 + $0x30] sm:$0xff] %vm2895_vm10, %v2885_v13  ;;  %v2884_v2 = vsel %vm1948_vm8, %v2842_v19, %v5328_v48 }
 0x4c6   : > { %2901 = vst.msk [vmem:[%s3891_s12 + $0x28] sm:$0xff] %vm2895_vm10, %v2884_v2 }
 0x4c8   : > { %v2846_v15 = vpop.permute.xlu1 %2845 }
 0x4c9   : > { %v2886_v26 = vsel %vm1948_vm8, %v2846_v15, %v5333_v38 }
 0x4ca   : > { %2903 = vst.msk [vmem:[%s3891_s12 + $0x38] sm:$0xff] %vm2895_vm10, %v2886_v26 }
 0x4d5   : > { %v2848_v61 = vpop.permute.xlu0 %2847 }
 0x4d6   : > { %v2887_v37 = vsel %vm1948_vm8, %v2848_v61, %v5339_v51 }
 0x4d7   : > { %2904 = vst.msk [vmem:[%s3891_s12 + $0x40] sm:$0xff] %vm2895_vm10, %v2887_v37 }
 0x4d9   : > { %v2852_v0 = vpop.permute.xlu0 %2851 }
 0x4da   : > { %v2889_v48 = vsel %vm1948_vm8, %v2852_v0, %v5345_v56  ;;  %v2850_v42 = vpop.permute.xlu1 %2849 }
 0x4db   : > { %2906 = vst.msk [vmem:[%s3891_s12 + $0x50] sm:$0xff] %vm2895_vm10, %v2889_v48  ;;  %v2888_v38 = vsel %vm1948_vm8, %v2850_v42, %v5347_v46 }
 0x4dc   : > { %2905 = vst.msk [vmem:[%s3891_s12 + $0x48] sm:$0xff] %vm2895_vm10, %v2888_v38 }
 0x4de   : > { %v2854_v41 = vpop.permute.xlu1 %2853 }
 0x4df   : > { %v2890_v51 = vsel %vm1948_vm8, %v2854_v41, %v5354_v55 }
 0x4e0   : > { %2907 = vst.msk [vmem:[%s3891_s12 + $0x58] sm:$0xff] %vm2895_vm10, %v2890_v51 }
 0x4e2   : > { %v2856_v9 = vpop.permute.xlu0 %2855 }
 0x4e3   : > { %v2891_v56 = vsel %vm1948_vm8, %v2856_v9, %v5359_v33 }
 0x4e4   : > { %2908 = vst.msk [vmem:[%s3891_s12 + $0x60] sm:$0xff] %vm2895_vm10, %v2891_v56 }
 0x4e6   : > { %v2860_v27 = vpop.permute.xlu0 %2859 }
 0x4e7   : > { %v2893_v46 = vsel %vm1948_vm8, %v2860_v27, %v5365_v21  ;;  %v2858_v55 = vpop.permute.xlu1 %2857 }
 0x4e8   : > { %2910 = vst.msk [vmem:[%s3891_s12 + $0x70] sm:$0xff] %vm2895_vm10, %v2893_v46  ;;  %v2892_v33 = vsel %vm1948_vm8, %v2858_v55, %v5372_v63 }
 0x4e9   : > { %2909 = vst.msk [vmem:[%s3891_s12 + $0x68] sm:$0xff] %vm2895_vm10, %v2892_v33 }
 0x4eb   : > { %v2862_v21 = vpop.permute.xlu1 %2861 }
 0x4ec   : > { %v2894_v58 = vsel %vm1948_vm8, %v2862_v21, %v5378_v5 }
 0x4ed   : > { %2911 = vst.msk [vmem:[%s3891_s12 + $0x78] sm:$0xff] %vm2895_vm10, %v2894_v58 }
 0x4ee   : > { %3601 = shalt.err (!%p3598_p6)
}
 0x4ef   : > { %s3602_s12 = scalar_lea.hbm %s5483_s21, 2048  ;;  %s3606_s13 = scalar_lea.hbm %s5585_s27, 8192 }
 0x4f0   : > { %p3603_p7 = scmp.ne.s32.totalorder %s5483_s21, %s3602_s12  ;;  %p3607_p12 = scmp.lt.s32.totalorder %s5483_s21, %s5585_s27 }
 0x4f1   : > { %p3608_p8 = scmp.lt.s32.totalorder %s3606_s13, %s3602_s12 }
 0x4f2   : > { %p3604_p9 = pnand %p3603_p7, %p3828_p11 }
 0x4f3   : > { %p3609_p13 = por %p3608_p8, %p3607_p12 }
 0x4f4   : > { %p3605_p10 = pneg %p3604_p9 }
 0x4f6   : > { %p3610_p1 = pnand %p3609_p13, %p3605_p10 }
 0x4f8   : > { %3613 = shalt.err (!%p3610_p1)
}
 0x4f9   : > { %s3708_s28 = smov 128   ;;  %s3709_s17 = smov 8  }
 0x4fa   : > { %3265 = dma.vmem_to_hbm [thread:$0]  (%p3828_p11), %s5485_s6, 2048, %s5483_s21, %s2913_s22, %s3708_s28, %s3708_s28, %s3709_s17  }
 0x4fb PF: > { %s5586_s8 = sld [smem:[#allocation12_spill]]  ;;  %p3282_p2 = scmp.ge.s32.totalorder %s3688_s25, 2 }
 0x4fc   : > { %s5587_s10 = sld [smem:[#allocation14_spill]] }
 0x501   : > { %s2944_s23 = sand.u32 1, %s5586_s8  }
 0x502   : > { %p5588_p0 = scmp.ne.s32.totalorder %s5587_s10, 0  ;;  %s2945_s9 = scalar_lea.sflag [#allocation5], %s2944_s23 }
 0x504   : > { %p3276_p3 = pnand %p3282_p2, %p5588_p0 }
 0x506   : > { %p3277_p5 = pneg %p3276_p3 }
 0x508   : > { %3655 = dma.done.wait (%p3277_p5), %s2945_s9, 2048  }
 0x509   : > { %3657 = vsyncadd (%p3277_p5), %s2945_s9, 4294965248  ;;  %s22_s25 = sadd.s32 1, %s3688_s25   ;;  %s5589_s21 = sld [smem:[#allocation13_spill]] }
 0x50a   : > { %p19_p4 = scmp.ge.s32.totalorder %s22_s25, 6   ;;  %s5590_s23 = sld [smem:[#allocation15_spill]] }
 0x50b   : > { %s5591_s18 = smov %s3664_s19  ;;  %s5592_s19 = smov %s3668_s20 }
 0x50c   : > { %s5593_s20 = smov %s3845_s15  ;;  %s5594_s22 = smov %s3684_s24 }
 0x50d   : > { %s5595_s24 = smov %s5601_s16  ;;  %21 = sbr.rel (!%p19_p4) target bundleno = 11 (0xb), region = 101 }
 0x512   :  { %2950 = vsyncpa [#allocation4], 1 }
 0x513   :  { %2952 = vsyncpa [#allocation4 + $0x1], 1 }
 0x514   :  { %2953 = vsyncpa [#allocation7], 1 }
 0x515   :  { %2954 = vsyncpa [#allocation5], 1 }
 0x516   :  { %2956 = vsyncpa [#allocation5 + $0x1], 1 }

</bundles_post_ra>
